<compile_context>
chip_gen: v7x
topology: tpu7x:2x2x1
jax: 0.10.0
libtpu: 0.0.40
codegen_flags: <defaults>
</compile_context>

<pallas_src>
import functools

import jax
import jax.numpy as jnp
from jax.experimental import pallas as pl
from jax.experimental.pallas import tpu as pltpu


def _round_up(x, m):
    return ((x + m - 1) // m) * m


# ----------------------------------------------------------------------------
# Fused Pallas kernel: all LSTM layers, full sequence, zero initial state.
#
# refs layout:
#   x_ref                     : (T, Bp, E)   bf16  time-major embedded input
#   per layer l (3 refs each) : wih_l (in, 4Hp) bf16, whh_l (Hp, 4Hp) bf16,
#                               b_l (1, 4Hp) f32 (combined, gate-block padded)
#   hidden_ref, cell_ref      : (L, Bp, Hp)  f32   final states (outputs)
#   act_ref                   : (T, Bp, Hp)  f32   inter-layer activations
#   xg_ref                    : (T, Bp, 4Hp) f32   precomputed input gates
# ----------------------------------------------------------------------------
def _encoder_lstm_kernel(num_layers, T, Bp, Hp, *refs):
    n_in = 1 + 3 * num_layers
    x_ref = refs[0]
    layer_refs = refs[1:n_in]
    hidden_ref = refs[n_in]
    cell_ref = refs[n_in + 1]
    act_ref = refs[n_in + 2]
    xg_ref = refs[n_in + 3]

    G = 4 * Hp

    for layer in range(num_layers):
        wih_ref = layer_refs[3 * layer + 0]
        whh_ref = layer_refs[3 * layer + 1]
        b_ref = layer_refs[3 * layer + 2]

        # ---- Phase 1: whole-sequence input projection as one big MXU GEMM ----
        if layer == 0:
            xin = x_ref[...]                              # (T, Bp, E) bf16
        else:
            xin = act_ref[...].astype(wih_ref.dtype)      # (T, Bp, Hp) -> bf16
        xflat = xin.reshape(T * Bp, xin.shape[-1])
        xg = jnp.dot(xflat, wih_ref[...],
                     preferred_element_type=jnp.float32)  # (T*Bp, 4Hp) f32
        # Combined bias added once here (hoisted out of the recurrence).
        xg_ref[...] = xg.reshape(T, Bp, G) + b_ref[...]

        # ---- Phase 2: serial recurrence, only h @ W_hh per step ----
        whh = whh_ref[...]                                # hoisted (Hp, 4Hp) bf16
        last_layer = layer == num_layers - 1

        def step(t, carry):
            h, c = carry                                  # f32 (Bp, Hp)
            g = xg_ref[t] + jnp.dot(h.astype(whh.dtype), whh,
                                    preferred_element_type=jnp.float32)
            # PyTorch gate order: i, f, g, o ; Hp is a multiple of 128 so every
            # slice is lane-aligned.
            i_g = jax.nn.sigmoid(g[:, 0 * Hp:1 * Hp])
            f_g = jax.nn.sigmoid(g[:, 1 * Hp:2 * Hp])
            g_g = jnp.tanh(g[:, 2 * Hp:3 * Hp])
            o_g = jax.nn.sigmoid(g[:, 3 * Hp:4 * Hp])
            c_new = f_g * c + i_g * g_g
            h_new = o_g * jnp.tanh(c_new)
            if not last_layer:                            # next layer's input
                act_ref[t] = h_new
            return (h_new, c_new)

        zeros = jnp.zeros((Bp, Hp), jnp.float32)
        h_f, c_f = jax.lax.fori_loop(0, T, step, (zeros, zeros), unroll=True)
        hidden_ref[layer] = h_f
        cell_ref[layer] = c_f


# ----------------------------------------------------------------------------
# One-time parameter preparation (done at setup, NOT per forward pass):
# transpose to (in, 4H), pad each gate block H -> Hp (multiple of 128 lanes),
# pad the recurrent input dim to Hp, combine biases, cast weights to bf16.
# Padded weights/bias are zero, so padded hidden units stay exactly 0.
# ----------------------------------------------------------------------------
def prepare_params(params, num_layers, lane=128):
    H = params["w_hh_0"].shape[1]
    Hp = _round_up(H, lane)
    prep = {"embedding": params["embedding"]}
    for layer in range(num_layers):
        w_ih = params[f"w_ih_{layer}"]                    # (4H, in_dim)
        w_hh = params[f"w_hh_{layer}"]                    # (4H, H)
        b = params[f"b_ih_{layer}"] + params[f"b_hh_{layer}"]
        in_dim = w_ih.shape[1]

        wih_t = jnp.transpose(w_ih).reshape(in_dim, 4, H)
        whh_t = jnp.transpose(w_hh).reshape(H, 4, H)
        b_t = b.reshape(4, H)

        # Layers >= 1 consume the Hp-padded activation buffer -> pad input rows.
        in_pad = 0 if layer == 0 else Hp - in_dim
        wih_p = jnp.pad(wih_t, ((0, in_pad), (0, 0), (0, Hp - H)))
        whh_p = jnp.pad(whh_t, ((0, Hp - H), (0, 0), (0, Hp - H)))
        b_p = jnp.pad(b_t, ((0, 0), (0, Hp - H)))

        prep[f"wih_{layer}"] = wih_p.reshape(in_dim + in_pad, 4 * Hp).astype(jnp.bfloat16)
        prep[f"whh_{layer}"] = whh_p.reshape(Hp, 4 * Hp).astype(jnp.bfloat16)
        prep[f"b_{layer}"] = b_p.reshape(1, 4 * Hp).astype(jnp.float32)
    return prep


# ----------------------------------------------------------------------------
# Encoder forward: embedding lookup (plain JAX glue) + fused Pallas LSTM stack.
# Returns (hidden, cell) with PyTorch shapes (num_layers, B, H).
# ----------------------------------------------------------------------------
def encoder_forward(prep, tokens, *, num_layers, hidden_dim):
    B, T = tokens.shape
    H = hidden_dim
    Hp = prep["whh_0"].shape[0]                           # padded hidden size
    Bp = _round_up(B, 16)                                 # sublane pad (bf16/f32 safe)

    emb = jnp.take(prep["embedding"], tokens, axis=0)     # (B, T, E) f32 gather (glue)
    x_tm = jnp.transpose(emb, (1, 0, 2))                  # time-major (T, B, E)
    x_tm = jnp.pad(x_tm, ((0, 0), (0, Bp - B), (0, 0))).astype(jnp.bfloat16)

    inputs = [x_tm]
    for layer in range(num_layers):
        inputs += [prep[f"wih_{layer}"], prep[f"whh_{layer}"], prep[f"b_{layer}"]]

    vmem = pl.BlockSpec(memory_space=pltpu.MemorySpace.VMEM)
    kernel = functools.partial(_encoder_lstm_kernel, num_layers, T, Bp, Hp)

    hidden_p, cell_p = pl.pallas_call(
        kernel,
        out_shape=(
            jax.ShapeDtypeStruct((num_layers, Bp, Hp), jnp.float32),
            jax.ShapeDtypeStruct((num_layers, Bp, Hp), jnp.float32),
        ),
        in_specs=[vmem] * len(inputs),
        out_specs=(vmem, vmem),
        scratch_shapes=[
            pltpu.VMEM((T, Bp, Hp), jnp.float32),         # inter-layer activations
            pltpu.VMEM((T, Bp, 4 * Hp), jnp.float32),     # precomputed input gates
        ],
    )(*inputs)

    return hidden_p[:, :B, :H], cell_p[:, :B, :H]


# ----------------------------------------------------------------------------
# Pure-JAX f32 reference (lax.scan), used only for numerical validation.
# ----------------------------------------------------------------------------
def encoder_forward_ref(params, tokens, num_layers):
    emb = jnp.take(params["embedding"], tokens, axis=0)   # (B, T, E)
    x = jnp.transpose(emb, (1, 0, 2))                     # (T, B, E)
    B = tokens.shape[0]

    hiddens, cells = [], []
    for layer in range(num_layers):
        w_ih = params[f"w_ih_{layer}"]
        w_hh = params[f"w_hh_{layer}"]
        b = params[f"b_ih_{layer}"] + params[f"b_hh_{layer}"]
        H = w_hh.shape[1]

        def step(carry, x_t):
            h, c = carry
            gates = x_t @ w_ih.T + h @ w_hh.T + b
            i_g = jax.nn.sigmoid(gates[:, 0 * H:1 * H])
            f_g = jax.nn.sigmoid(gates[:, 1 * H:2 * H])
            g_g = jnp.tanh(gates[:, 2 * H:3 * H])
            o_g = jax.nn.sigmoid(gates[:, 3 * H:4 * H])
            c_new = f_g * c + i_g * g_g
            h_new = o_g * jnp.tanh(c_new)
            return (h_new, c_new), h_new

        init = (jnp.zeros((B, H), jnp.float32), jnp.zeros((B, H), jnp.float32))
        (h_f, c_f), outs = jax.lax.scan(step, init, x)
        hiddens.append(h_f)
        cells.append(c_f)
        x = outs
    return jnp.stack(hiddens, axis=0), jnp.stack(cells, axis=0)


# ----------------------------------------------------------------------------
# Deterministic parameter init (shapes mirror nn.Embedding / nn.LSTM).
# ----------------------------------------------------------------------------
def init_params(key, vocab_size, embedding_dim, hidden_dim, num_layers):
    params = {}
    k = 1.0 / jnp.sqrt(jnp.float32(hidden_dim))
    key, sub = jax.random.split(key)
    params["embedding"] = jax.random.normal(
        sub, (vocab_size, embedding_dim), jnp.float32)
    for layer in range(num_layers):
        in_dim = embedding_dim if layer == 0 else hidden_dim
        key, k1, k2, k3, k4 = jax.random.split(key, 5)
        params[f"w_ih_{layer}"] = jax.random.uniform(
            k1, (4 * hidden_dim, in_dim), jnp.float32, -k, k)
        params[f"w_hh_{layer}"] = jax.random.uniform(
            k2, (4 * hidden_dim, hidden_dim), jnp.float32, -k, k)
        params[f"b_ih_{layer}"] = jax.random.uniform(
            k3, (4 * hidden_dim,), jnp.float32, -k, k)
        params[f"b_hh_{layer}"] = jax.random.uniform(
            k4, (4 * hidden_dim,), jnp.float32, -k, k)
    return params


if __name__ == "__main__":
    vocab_size = 50
    embedding_dim = 32
    hidden_dim = 32
    num_layers = 2
    batch = 2
    seq_len = 8

    key = jax.random.PRNGKey(0)
    key, pkey, tkey = jax.random.split(key, 3)
    params = init_params(pkey, vocab_size, embedding_dim, hidden_dim, num_layers)
    tokens = jax.random.randint(tkey, (batch, seq_len), 0, vocab_size, jnp.int32)

    # One-time weight preparation (transpose / pad / combine bias / bf16 cast).
    prep = prepare_params(params, num_layers)

    fwd = jax.jit(functools.partial(
        encoder_forward, num_layers=num_layers, hidden_dim=hidden_dim))
    hidden, cell = fwd(prep, tokens)
    jax.block_until_ready((hidden, cell))

    # Validate against pure-f32 JAX reference (bf16 matmuls -> looser tolerance).
    hidden_ref, cell_ref = encoder_forward_ref(params, tokens, num_layers)
    assert hidden.shape == (num_layers, batch, hidden_dim)
    assert cell.shape == (num_layers, batch, hidden_dim)
    assert jnp.allclose(hidden, hidden_ref, atol=5e-2, rtol=5e-2)
    assert jnp.allclose(cell, cell_ref, atol=5e-2, rtol=5e-2)

    print("KERNEL_OK")
</pallas_src>

<mosaic_0001>
module attributes {stable_mosaic.version = 11 : i64} {
  func.func @_encoder_lstm_kernel(%arg0: memref<8x16x32xbf16, #tpu.memory_space<vmem>>, %arg1: memref<32x512xbf16, #tpu.memory_space<vmem>>, %arg2: memref<128x512xbf16, #tpu.memory_space<vmem>>, %arg3: memref<1x512xf32, #tpu.memory_space<vmem>>, %arg4: memref<128x512xbf16, #tpu.memory_space<vmem>>, %arg5: memref<128x512xbf16, #tpu.memory_space<vmem>>, %arg6: memref<1x512xf32, #tpu.memory_space<vmem>>, %arg7: memref<2x16x128xf32, #tpu.memory_space<vmem>>, %arg8: memref<2x16x128xf32, #tpu.memory_space<vmem>>, %arg9: memref<8x16x128xf32, #tpu.memory_space<vmem>>, %arg10: memref<8x16x512xf32, #tpu.memory_space<vmem>>) attributes {dimension_semantics = [], scalar_prefetch = 0 : i64, scratch_operands = 2 : i64, tpu.core_type = #tpu.core_type<tc>} {
    %c0 = arith.constant 0 : index
    %c0_0 = arith.constant 0 : index
    %c0_1 = arith.constant 0 : index
    %0 = vector.load %arg0[%c0, %c0_0, %c0_1] : memref<8x16x32xbf16, #tpu.memory_space<vmem>>, vector<8x16x32xbf16>
    %1 = vector.shape_cast %0 : vector<8x16x32xbf16> to vector<128x32xbf16>
    %c0_2 = arith.constant 0 : index
    %c0_3 = arith.constant 0 : index
    %2 = vector.load %arg1[%c0_2, %c0_3] : memref<32x512xbf16, #tpu.memory_space<vmem>>, vector<32x512xbf16>
    %cst = arith.constant dense<0.000000e+00> : vector<128x512xf32>
    %3 = tpu.matmul %1, %2, %cst {dimension_numbers = #tpu.dot_dimension_numbers<[1], [0], [0], [1], [0, 0, 1, 1], [], []>} : vector<128x32xbf16>, vector<32x512xbf16>, vector<128x512xf32> -> vector<128x512xf32>
    %4 = vector.shape_cast %3 : vector<128x512xf32> to vector<8x16x512xf32>
    %c0_4 = arith.constant 0 : index
    %c0_5 = arith.constant 0 : index
    %5 = vector.load %arg3[%c0_4, %c0_5] : memref<1x512xf32, #tpu.memory_space<vmem>>, vector<1x512xf32>
    %6 = vector.shape_cast %5 : vector<1x512xf32> to vector<1x1x512xf32>
    %7 = vector.broadcast %6 : vector<1x1x512xf32> to vector<8x16x512xf32>
    %8 = arith.addf %4, %7 : vector<8x16x512xf32>
    %c0_6 = arith.constant 0 : index
    %c0_7 = arith.constant 0 : index
    %c0_8 = arith.constant 0 : index
    %9 = vector.load %arg10[%c0_6, %c0_7, %c0_8] : memref<8x16x512xf32, #tpu.memory_space<vmem>>, vector<8x16x512xf32>
    tpu.vector_store %arg10[%c0_6, %c0_7, %c0_8], %8 {strides = array<i32>} : memref<8x16x512xf32, #tpu.memory_space<vmem>>, vector<8x16x512xf32>,
    %c0_9 = arith.constant 0 : index
    %c0_10 = arith.constant 0 : index
    %10 = vector.load %arg2[%c0_9, %c0_10] : memref<128x512xbf16, #tpu.memory_space<vmem>>, vector<128x512xbf16>
    %cst_11 = arith.constant 0.000000e+00 : f32
    %11 = vector.broadcast %cst_11 : f32 to vector<16x128xf32>
    %c0_i32 = arith.constant 0 : i32
    %12 = arith.index_cast %c0_i32 : i32 to index
    %c0_12 = arith.constant 0 : index
    %c0_13 = arith.constant 0 : index
    %13 = vector.load %arg10[%12, %c0_12, %c0_13] : memref<8x16x512xf32, #tpu.memory_space<vmem>>, vector<1x16x512xf32>
    %14 = vector.shape_cast %13 : vector<1x16x512xf32> to vector<16x512xf32>
    %15 = arith.truncf %11 : vector<16x128xf32> to vector<16x128xbf16>
    %cst_14 = arith.constant dense<0.000000e+00> : vector<16x512xf32>
    %16 = tpu.matmul %15, %10, %cst_14 {dimension_numbers = #tpu.dot_dimension_numbers<[1], [0], [0], [1], [0, 0, 1, 1], [], []>} : vector<16x128xbf16>, vector<128x512xbf16>, vector<16x512xf32> -> vector<16x512xf32>
    %17 = arith.addf %14, %16 : vector<16x512xf32>
    %18 = vector.extract_strided_slice %17 {offsets = [0, 0], sizes = [16, 128], strides = [1, 1]} : vector<16x512xf32> to vector<16x128xf32>
    %19 = arith.negf %18 : vector<16x128xf32>
    %20 = math.exp %19 : vector<16x128xf32>
    %cst_15 = arith.constant 1.000000e+00 : f32
    %21 = vector.broadcast %cst_15 : f32 to vector<16x128xf32>
    %22 = arith.addf %21, %20 : vector<16x128xf32>
    %23 = arith.divf %21, %22 : vector<16x128xf32>
    %24 = vector.extract_strided_slice %17 {offsets = [0, 128], sizes = [16, 128], strides = [1, 1]} : vector<16x512xf32> to vector<16x128xf32>
    %25 = arith.negf %24 : vector<16x128xf32>
    %26 = math.exp %25 : vector<16x128xf32>
    %cst_16 = arith.constant 1.000000e+00 : f32
    %27 = vector.broadcast %cst_16 : f32 to vector<16x128xf32>
    %28 = arith.addf %27, %26 : vector<16x128xf32>
    %29 = arith.divf %27, %28 : vector<16x128xf32>
    %30 = vector.extract_strided_slice %17 {offsets = [0, 256], sizes = [16, 128], strides = [1, 1]} : vector<16x512xf32> to vector<16x128xf32>
    %31 = math.tanh %30 : vector<16x128xf32>
    %32 = vector.extract_strided_slice %17 {offsets = [0, 384], sizes = [16, 128], strides = [1, 1]} : vector<16x512xf32> to vector<16x128xf32>
    %33 = arith.negf %32 : vector<16x128xf32>
    %34 = math.exp %33 : vector<16x128xf32>
    %cst_17 = arith.constant 1.000000e+00 : f32
    %35 = vector.broadcast %cst_17 : f32 to vector<16x128xf32>
    %36 = arith.addf %35, %34 : vector<16x128xf32>
    %37 = arith.divf %35, %36 : vector<16x128xf32>
    %38 = arith.mulf %29, %11 : vector<16x128xf32>
    %39 = arith.mulf %23, %31 : vector<16x128xf32>
    %40 = arith.addf %38, %39 : vector<16x128xf32>
    %41 = math.tanh %40 : vector<16x128xf32>
    %42 = arith.mulf %37, %41 : vector<16x128xf32>
    %43 = arith.index_cast %c0_i32 : i32 to index
    %c0_18 = arith.constant 0 : index
    %c0_19 = arith.constant 0 : index
    %44 = vector.load %arg9[%43, %c0_18, %c0_19] : memref<8x16x128xf32, #tpu.memory_space<vmem>>, vector<1x16x128xf32>
    %45 = vector.shape_cast %44 : vector<1x16x128xf32> to vector<16x128xf32>
    %46 = vector.shape_cast %42 : vector<16x128xf32> to vector<1x16x128xf32>
    tpu.vector_store %arg9[%43, %c0_18, %c0_19], %46 {strides = array<i32>} : memref<8x16x128xf32, #tpu.memory_space<vmem>>, vector<1x16x128xf32>,
    %c1_i32 = arith.constant 1 : i32
    %47 = arith.index_cast %c1_i32 : i32 to index
    %c0_20 = arith.constant 0 : index
    %c0_21 = arith.constant 0 : index
    %48 = vector.load %arg10[%47, %c0_20, %c0_21] : memref<8x16x512xf32, #tpu.memory_space<vmem>>, vector<1x16x512xf32>
    %49 = vector.shape_cast %48 : vector<1x16x512xf32> to vector<16x512xf32>
    %50 = arith.truncf %42 : vector<16x128xf32> to vector<16x128xbf16>
    %cst_22 = arith.constant dense<0.000000e+00> : vector<16x512xf32>
    %51 = tpu.matmul %50, %10, %cst_22 {dimension_numbers = #tpu.dot_dimension_numbers<[1], [0], [0], [1], [0, 0, 1, 1], [], []>} : vector<16x128xbf16>, vector<128x512xbf16>, vector<16x512xf32> -> vector<16x512xf32>
    %52 = arith.addf %49, %51 : vector<16x512xf32>
    %53 = vector.extract_strided_slice %52 {offsets = [0, 0], sizes = [16, 128], strides = [1, 1]} : vector<16x512xf32> to vector<16x128xf32>
    %54 = arith.negf %53 : vector<16x128xf32>
    %55 = math.exp %54 : vector<16x128xf32>
    %cst_23 = arith.constant 1.000000e+00 : f32
    %56 = vector.broadcast %cst_23 : f32 to vector<16x128xf32>
    %57 = arith.addf %56, %55 : vector<16x128xf32>
    %58 = arith.divf %56, %57 : vector<16x128xf32>
    %59 = vector.extract_strided_slice %52 {offsets = [0, 128], sizes = [16, 128], strides = [1, 1]} : vector<16x512xf32> to vector<16x128xf32>
    %60 = arith.negf %59 : vector<16x128xf32>
    %61 = math.exp %60 : vector<16x128xf32>
    %cst_24 = arith.constant 1.000000e+00 : f32
    %62 = vector.broadcast %cst_24 : f32 to vector<16x128xf32>
    %63 = arith.addf %62, %61 : vector<16x128xf32>
    %64 = arith.divf %62, %63 : vector<16x128xf32>
    %65 = vector.extract_strided_slice %52 {offsets = [0, 256], sizes = [16, 128], strides = [1, 1]} : vector<16x512xf32> to vector<16x128xf32>
    %66 = math.tanh %65 : vector<16x128xf32>
    %67 = vector.extract_strided_slice %52 {offsets = [0, 384], sizes = [16, 128], strides = [1, 1]} : vector<16x512xf32> to vector<16x128xf32>
    %68 = arith.negf %67 : vector<16x128xf32>
    %69 = math.exp %68 : vector<16x128xf32>
    %cst_25 = arith.constant 1.000000e+00 : f32
    %70 = vector.broadcast %cst_25 : f32 to vector<16x128xf32>
    %71 = arith.addf %70, %69 : vector<16x128xf32>
    %72 = arith.divf %70, %71 : vector<16x128xf32>
    %73 = arith.mulf %64, %40 : vector<16x128xf32>
    %74 = arith.mulf %58, %66 : vector<16x128xf32>
    %75 = arith.addf %73, %74 : vector<16x128xf32>
    %76 = math.tanh %75 : vector<16x128xf32>
    %77 = arith.mulf %72, %76 : vector<16x128xf32>
    %78 = arith.index_cast %c1_i32 : i32 to index
    %c0_26 = arith.constant 0 : index
    %c0_27 = arith.constant 0 : index
    %79 = vector.load %arg9[%78, %c0_26, %c0_27] : memref<8x16x128xf32, #tpu.memory_space<vmem>>, vector<1x16x128xf32>
    %80 = vector.shape_cast %79 : vector<1x16x128xf32> to vector<16x128xf32>
    %81 = vector.shape_cast %77 : vector<16x128xf32> to vector<1x16x128xf32>
    tpu.vector_store %arg9[%78, %c0_26, %c0_27], %81 {strides = array<i32>} : memref<8x16x128xf32, #tpu.memory_space<vmem>>, vector<1x16x128xf32>,
    %c2_i32 = arith.constant 2 : i32
    %82 = arith.index_cast %c2_i32 : i32 to index
    %c0_28 = arith.constant 0 : index
    %c0_29 = arith.constant 0 : index
    %83 = vector.load %arg10[%82, %c0_28, %c0_29] : memref<8x16x512xf32, #tpu.memory_space<vmem>>, vector<1x16x512xf32>
    %84 = vector.shape_cast %83 : vector<1x16x512xf32> to vector<16x512xf32>
    %85 = arith.truncf %77 : vector<16x128xf32> to vector<16x128xbf16>
    %cst_30 = arith.constant dense<0.000000e+00> : vector<16x512xf32>
    %86 = tpu.matmul %85, %10, %cst_30 {dimension_numbers = #tpu.dot_dimension_numbers<[1], [0], [0], [1], [0, 0, 1, 1], [], []>} : vector<16x128xbf16>, vector<128x512xbf16>, vector<16x512xf32> -> vector<16x512xf32>
    %87 = arith.addf %84, %86 : vector<16x512xf32>
    %88 = vector.extract_strided_slice %87 {offsets = [0, 0], sizes = [16, 128], strides = [1, 1]} : vector<16x512xf32> to vector<16x128xf32>
    %89 = arith.negf %88 : vector<16x128xf32>
    %90 = math.exp %89 : vector<16x128xf32>
    %cst_31 = arith.constant 1.000000e+00 : f32
    %91 = vector.broadcast %cst_31 : f32 to vector<16x128xf32>
    %92 = arith.addf %91, %90 : vector<16x128xf32>
    %93 = arith.divf %91, %92 : vector<16x128xf32>
    %94 = vector.extract_strided_slice %87 {offsets = [0, 128], sizes = [16, 128], strides = [1, 1]} : vector<16x512xf32> to vector<16x128xf32>
    %95 = arith.negf %94 : vector<16x128xf32>
    %96 = math.exp %95 : vector<16x128xf32>
    %cst_32 = arith.constant 1.000000e+00 : f32
    %97 = vector.broadcast %cst_32 : f32 to vector<16x128xf32>
    %98 = arith.addf %97, %96 : vector<16x128xf32>
    %99 = arith.divf %97, %98 : vector<16x128xf32>
    %100 = vector.extract_strided_slice %87 {offsets = [0, 256], sizes = [16, 128], strides = [1, 1]} : vector<16x512xf32> to vector<16x128xf32>
    %101 = math.tanh %100 : vector<16x128xf32>
    %102 = vector.extract_strided_slice %87 {offsets = [0, 384], sizes = [16, 128], strides = [1, 1]} : vector<16x512xf32> to vector<16x128xf32>
    %103 = arith.negf %102 : vector<16x128xf32>
    %104 = math.exp %103 : vector<16x128xf32>
    %cst_33 = arith.constant 1.000000e+00 : f32
    %105 = vector.broadcast %cst_33 : f32 to vector<16x128xf32>
    %106 = arith.addf %105, %104 : vector<16x128xf32>
    %107 = arith.divf %105, %106 : vector<16x128xf32>
    %108 = arith.mulf %99, %75 : vector<16x128xf32>
    %109 = arith.mulf %93, %101 : vector<16x128xf32>
    %110 = arith.addf %108, %109 : vector<16x128xf32>
    %111 = math.tanh %110 : vector<16x128xf32>
    %112 = arith.mulf %107, %111 : vector<16x128xf32>
    %113 = arith.index_cast %c2_i32 : i32 to index
    %c0_34 = arith.constant 0 : index
    %c0_35 = arith.constant 0 : index
    %114 = vector.load %arg9[%113, %c0_34, %c0_35] : memref<8x16x128xf32, #tpu.memory_space<vmem>>, vector<1x16x128xf32>
    %115 = vector.shape_cast %114 : vector<1x16x128xf32> to vector<16x128xf32>
    %116 = vector.shape_cast %112 : vector<16x128xf32> to vector<1x16x128xf32>
    tpu.vector_store %arg9[%113, %c0_34, %c0_35], %116 {strides = array<i32>} : memref<8x16x128xf32, #tpu.memory_space<vmem>>, vector<1x16x128xf32>,
    %c3_i32 = arith.constant 3 : i32
    %117 = arith.index_cast %c3_i32 : i32 to index
    %c0_36 = arith.constant 0 : index
    %c0_37 = arith.constant 0 : index
    %118 = vector.load %arg10[%117, %c0_36, %c0_37] : memref<8x16x512xf32, #tpu.memory_space<vmem>>, vector<1x16x512xf32>
    %119 = vector.shape_cast %118 : vector<1x16x512xf32> to vector<16x512xf32>
    %120 = arith.truncf %112 : vector<16x128xf32> to vector<16x128xbf16>
    %cst_38 = arith.constant dense<0.000000e+00> : vector<16x512xf32>
    %121 = tpu.matmul %120, %10, %cst_38 {dimension_numbers = #tpu.dot_dimension_numbers<[1], [0], [0], [1], [0, 0, 1, 1], [], []>} : vector<16x128xbf16>, vector<128x512xbf16>, vector<16x512xf32> -> vector<16x512xf32>
    %122 = arith.addf %119, %121 : vector<16x512xf32>
    %123 = vector.extract_strided_slice %122 {offsets = [0, 0], sizes = [16, 128], strides = [1, 1]} : vector<16x512xf32> to vector<16x128xf32>
    %124 = arith.negf %123 : vector<16x128xf32>
    %125 = math.exp %124 : vector<16x128xf32>
    %cst_39 = arith.constant 1.000000e+00 : f32
    %126 = vector.broadcast %cst_39 : f32 to vector<16x128xf32>
    %127 = arith.addf %126, %125 : vector<16x128xf32>
    %128 = arith.divf %126, %127 : vector<16x128xf32>
    %129 = vector.extract_strided_slice %122 {offsets = [0, 128], sizes = [16, 128], strides = [1, 1]} : vector<16x512xf32> to vector<16x128xf32>
    %130 = arith.negf %129 : vector<16x128xf32>
    %131 = math.exp %130 : vector<16x128xf32>
    %cst_40 = arith.constant 1.000000e+00 : f32
    %132 = vector.broadcast %cst_40 : f32 to vector<16x128xf32>
    %133 = arith.addf %132, %131 : vector<16x128xf32>
    %134 = arith.divf %132, %133 : vector<16x128xf32>
    %135 = vector.extract_strided_slice %122 {offsets = [0, 256], sizes = [16, 128], strides = [1, 1]} : vector<16x512xf32> to vector<16x128xf32>
    %136 = math.tanh %135 : vector<16x128xf32>
    %137 = vector.extract_strided_slice %122 {offsets = [0, 384], sizes = [16, 128], strides = [1, 1]} : vector<16x512xf32> to vector<16x128xf32>
    %138 = arith.negf %137 : vector<16x128xf32>
    %139 = math.exp %138 : vector<16x128xf32>
    %cst_41 = arith.constant 1.000000e+00 : f32
    %140 = vector.broadcast %cst_41 : f32 to vector<16x128xf32>
    %141 = arith.addf %140, %139 : vector<16x128xf32>
    %142 = arith.divf %140, %141 : vector<16x128xf32>
    %143 = arith.mulf %134, %110 : vector<16x128xf32>
    %144 = arith.mulf %128, %136 : vector<16x128xf32>
    %145 = arith.addf %143, %144 : vector<16x128xf32>
    %146 = math.tanh %145 : vector<16x128xf32>
    %147 = arith.mulf %142, %146 : vector<16x128xf32>
    %148 = arith.index_cast %c3_i32 : i32 to index
    %c0_42 = arith.constant 0 : index
    %c0_43 = arith.constant 0 : index
    %149 = vector.load %arg9[%148, %c0_42, %c0_43] : memref<8x16x128xf32, #tpu.memory_space<vmem>>, vector<1x16x128xf32>
    %150 = vector.shape_cast %149 : vector<1x16x128xf32> to vector<16x128xf32>
    %151 = vector.shape_cast %147 : vector<16x128xf32> to vector<1x16x128xf32>
    tpu.vector_store %arg9[%148, %c0_42, %c0_43], %151 {strides = array<i32>} : memref<8x16x128xf32, #tpu.memory_space<vmem>>, vector<1x16x128xf32>,
    %c4_i32 = arith.constant 4 : i32
    %152 = arith.index_cast %c4_i32 : i32 to index
    %c0_44 = arith.constant 0 : index
    %c0_45 = arith.constant 0 : index
    %153 = vector.load %arg10[%152, %c0_44, %c0_45] : memref<8x16x512xf32, #tpu.memory_space<vmem>>, vector<1x16x512xf32>
    %154 = vector.shape_cast %153 : vector<1x16x512xf32> to vector<16x512xf32>
    %155 = arith.truncf %147 : vector<16x128xf32> to vector<16x128xbf16>
    %cst_46 = arith.constant dense<0.000000e+00> : vector<16x512xf32>
    %156 = tpu.matmul %155, %10, %cst_46 {dimension_numbers = #tpu.dot_dimension_numbers<[1], [0], [0], [1], [0, 0, 1, 1], [], []>} : vector<16x128xbf16>, vector<128x512xbf16>, vector<16x512xf32> -> vector<16x512xf32>
    %157 = arith.addf %154, %156 : vector<16x512xf32>
    %158 = vector.extract_strided_slice %157 {offsets = [0, 0], sizes = [16, 128], strides = [1, 1]} : vector<16x512xf32> to vector<16x128xf32>
    %159 = arith.negf %158 : vector<16x128xf32>
    %160 = math.exp %159 : vector<16x128xf32>
    %cst_47 = arith.constant 1.000000e+00 : f32
    %161 = vector.broadcast %cst_47 : f32 to vector<16x128xf32>
    %162 = arith.addf %161, %160 : vector<16x128xf32>
    %163 = arith.divf %161, %162 : vector<16x128xf32>
    %164 = vector.extract_strided_slice %157 {offsets = [0, 128], sizes = [16, 128], strides = [1, 1]} : vector<16x512xf32> to vector<16x128xf32>
    %165 = arith.negf %164 : vector<16x128xf32>
    %166 = math.exp %165 : vector<16x128xf32>
    %cst_48 = arith.constant 1.000000e+00 : f32
    %167 = vector.broadcast %cst_48 : f32 to vector<16x128xf32>
    %168 = arith.addf %167, %166 : vector<16x128xf32>
    %169 = arith.divf %167, %168 : vector<16x128xf32>
    %170 = vector.extract_strided_slice %157 {offsets = [0, 256], sizes = [16, 128], strides = [1, 1]} : vector<16x512xf32> to vector<16x128xf32>
    %171 = math.tanh %170 : vector<16x128xf32>
    %172 = vector.extract_strided_slice %157 {offsets = [0, 384], sizes = [16, 128], strides = [1, 1]} : vector<16x512xf32> to vector<16x128xf32>
    %173 = arith.negf %172 : vector<16x128xf32>
    %174 = math.exp %173 : vector<16x128xf32>
    %cst_49 = arith.constant 1.000000e+00 : f32
    %175 = vector.broadcast %cst_49 : f32 to vector<16x128xf32>
    %176 = arith.addf %175, %174 : vector<16x128xf32>
    %177 = arith.divf %175, %176 : vector<16x128xf32>
    %178 = arith.mulf %169, %145 : vector<16x128xf32>
    %179 = arith.mulf %163, %171 : vector<16x128xf32>
    %180 = arith.addf %178, %179 : vector<16x128xf32>
    %181 = math.tanh %180 : vector<16x128xf32>
    %182 = arith.mulf %177, %181 : vector<16x128xf32>
    %183 = arith.index_cast %c4_i32 : i32 to index
    %c0_50 = arith.constant 0 : index
    %c0_51 = arith.constant 0 : index
    %184 = vector.load %arg9[%183, %c0_50, %c0_51] : memref<8x16x128xf32, #tpu.memory_space<vmem>>, vector<1x16x128xf32>
    %185 = vector.shape_cast %184 : vector<1x16x128xf32> to vector<16x128xf32>
    %186 = vector.shape_cast %182 : vector<16x128xf32> to vector<1x16x128xf32>
    tpu.vector_store %arg9[%183, %c0_50, %c0_51], %186 {strides = array<i32>} : memref<8x16x128xf32, #tpu.memory_space<vmem>>, vector<1x16x128xf32>,
    %c5_i32 = arith.constant 5 : i32
    %187 = arith.index_cast %c5_i32 : i32 to index
    %c0_52 = arith.constant 0 : index
    %c0_53 = arith.constant 0 : index
    %188 = vector.load %arg10[%187, %c0_52, %c0_53] : memref<8x16x512xf32, #tpu.memory_space<vmem>>, vector<1x16x512xf32>
    %189 = vector.shape_cast %188 : vector<1x16x512xf32> to vector<16x512xf32>
    %190 = arith.truncf %182 : vector<16x128xf32> to vector<16x128xbf16>
    %cst_54 = arith.constant dense<0.000000e+00> : vector<16x512xf32>
    %191 = tpu.matmul %190, %10, %cst_54 {dimension_numbers = #tpu.dot_dimension_numbers<[1], [0], [0], [1], [0, 0, 1, 1], [], []>} : vector<16x128xbf16>, vector<128x512xbf16>, vector<16x512xf32> -> vector<16x512xf32>
    %192 = arith.addf %189, %191 : vector<16x512xf32>
    %193 = vector.extract_strided_slice %192 {offsets = [0, 0], sizes = [16, 128], strides = [1, 1]} : vector<16x512xf32> to vector<16x128xf32>
    %194 = arith.negf %193 : vector<16x128xf32>
    %195 = math.exp %194 : vector<16x128xf32>
    %cst_55 = arith.constant 1.000000e+00 : f32
    %196 = vector.broadcast %cst_55 : f32 to vector<16x128xf32>
    %197 = arith.addf %196, %195 : vector<16x128xf32>
    %198 = arith.divf %196, %197 : vector<16x128xf32>
    %199 = vector.extract_strided_slice %192 {offsets = [0, 128], sizes = [16, 128], strides = [1, 1]} : vector<16x512xf32> to vector<16x128xf32>
    %200 = arith.negf %199 : vector<16x128xf32>
    %201 = math.exp %200 : vector<16x128xf32>
    %cst_56 = arith.constant 1.000000e+00 : f32
    %202 = vector.broadcast %cst_56 : f32 to vector<16x128xf32>
    %203 = arith.addf %202, %201 : vector<16x128xf32>
    %204 = arith.divf %202, %203 : vector<16x128xf32>
    %205 = vector.extract_strided_slice %192 {offsets = [0, 256], sizes = [16, 128], strides = [1, 1]} : vector<16x512xf32> to vector<16x128xf32>
    %206 = math.tanh %205 : vector<16x128xf32>
    %207 = vector.extract_strided_slice %192 {offsets = [0, 384], sizes = [16, 128], strides = [1, 1]} : vector<16x512xf32> to vector<16x128xf32>
    %208 = arith.negf %207 : vector<16x128xf32>
    %209 = math.exp %208 : vector<16x128xf32>
    %cst_57 = arith.constant 1.000000e+00 : f32
    %210 = vector.broadcast %cst_57 : f32 to vector<16x128xf32>
    %211 = arith.addf %210, %209 : vector<16x128xf32>
    %212 = arith.divf %210, %211 : vector<16x128xf32>
    %213 = arith.mulf %204, %180 : vector<16x128xf32>
    %214 = arith.mulf %198, %206 : vector<16x128xf32>
    %215 = arith.addf %213, %214 : vector<16x128xf32>
    %216 = math.tanh %215 : vector<16x128xf32>
    %217 = arith.mulf %212, %216 : vector<16x128xf32>
    %218 = arith.index_cast %c5_i32 : i32 to index
    %c0_58 = arith.constant 0 : index
    %c0_59 = arith.constant 0 : index
    %219 = vector.load %arg9[%218, %c0_58, %c0_59] : memref<8x16x128xf32, #tpu.memory_space<vmem>>, vector<1x16x128xf32>
    %220 = vector.shape_cast %219 : vector<1x16x128xf32> to vector<16x128xf32>
    %221 = vector.shape_cast %217 : vector<16x128xf32> to vector<1x16x128xf32>
    tpu.vector_store %arg9[%218, %c0_58, %c0_59], %221 {strides = array<i32>} : memref<8x16x128xf32, #tpu.memory_space<vmem>>, vector<1x16x128xf32>,
    %c6_i32 = arith.constant 6 : i32
    %222 = arith.index_cast %c6_i32 : i32 to index
    %c0_60 = arith.constant 0 : index
    %c0_61 = arith.constant 0 : index
    %223 = vector.load %arg10[%222, %c0_60, %c0_61] : memref<8x16x512xf32, #tpu.memory_space<vmem>>, vector<1x16x512xf32>
    %224 = vector.shape_cast %223 : vector<1x16x512xf32> to vector<16x512xf32>
    %225 = arith.truncf %217 : vector<16x128xf32> to vector<16x128xbf16>
    %cst_62 = arith.constant dense<0.000000e+00> : vector<16x512xf32>
    %226 = tpu.matmul %225, %10, %cst_62 {dimension_numbers = #tpu.dot_dimension_numbers<[1], [0], [0], [1], [0, 0, 1, 1], [], []>} : vector<16x128xbf16>, vector<128x512xbf16>, vector<16x512xf32> -> vector<16x512xf32>
    %227 = arith.addf %224, %226 : vector<16x512xf32>
    %228 = vector.extract_strided_slice %227 {offsets = [0, 0], sizes = [16, 128], strides = [1, 1]} : vector<16x512xf32> to vector<16x128xf32>
    %229 = arith.negf %228 : vector<16x128xf32>
    %230 = math.exp %229 : vector<16x128xf32>
    %cst_63 = arith.constant 1.000000e+00 : f32
    %231 = vector.broadcast %cst_63 : f32 to vector<16x128xf32>
    %232 = arith.addf %231, %230 : vector<16x128xf32>
    %233 = arith.divf %231, %232 : vector<16x128xf32>
    %234 = vector.extract_strided_slice %227 {offsets = [0, 128], sizes = [16, 128], strides = [1, 1]} : vector<16x512xf32> to vector<16x128xf32>
    %235 = arith.negf %234 : vector<16x128xf32>
    %236 = math.exp %235 : vector<16x128xf32>
    %cst_64 = arith.constant 1.000000e+00 : f32
    %237 = vector.broadcast %cst_64 : f32 to vector<16x128xf32>
    %238 = arith.addf %237, %236 : vector<16x128xf32>
    %239 = arith.divf %237, %238 : vector<16x128xf32>
    %240 = vector.extract_strided_slice %227 {offsets = [0, 256], sizes = [16, 128], strides = [1, 1]} : vector<16x512xf32> to vector<16x128xf32>
    %241 = math.tanh %240 : vector<16x128xf32>
    %242 = vector.extract_strided_slice %227 {offsets = [0, 384], sizes = [16, 128], strides = [1, 1]} : vector<16x512xf32> to vector<16x128xf32>
    %243 = arith.negf %242 : vector<16x128xf32>
    %244 = math.exp %243 : vector<16x128xf32>
    %cst_65 = arith.constant 1.000000e+00 : f32
    %245 = vector.broadcast %cst_65 : f32 to vector<16x128xf32>
    %246 = arith.addf %245, %244 : vector<16x128xf32>
    %247 = arith.divf %245, %246 : vector<16x128xf32>
    %248 = arith.mulf %239, %215 : vector<16x128xf32>
    %249 = arith.mulf %233, %241 : vector<16x128xf32>
    %250 = arith.addf %248, %249 : vector<16x128xf32>
    %251 = math.tanh %250 : vector<16x128xf32>
    %252 = arith.mulf %247, %251 : vector<16x128xf32>
    %253 = arith.index_cast %c6_i32 : i32 to index
    %c0_66 = arith.constant 0 : index
    %c0_67 = arith.constant 0 : index
    %254 = vector.load %arg9[%253, %c0_66, %c0_67] : memref<8x16x128xf32, #tpu.memory_space<vmem>>, vector<1x16x128xf32>
    %255 = vector.shape_cast %254 : vector<1x16x128xf32> to vector<16x128xf32>
    %256 = vector.shape_cast %252 : vector<16x128xf32> to vector<1x16x128xf32>
    tpu.vector_store %arg9[%253, %c0_66, %c0_67], %256 {strides = array<i32>} : memref<8x16x128xf32, #tpu.memory_space<vmem>>, vector<1x16x128xf32>,
    %c7_i32 = arith.constant 7 : i32
    %257 = arith.index_cast %c7_i32 : i32 to index
    %c0_68 = arith.constant 0 : index
    %c0_69 = arith.constant 0 : index
    %258 = vector.load %arg10[%257, %c0_68, %c0_69] : memref<8x16x512xf32, #tpu.memory_space<vmem>>, vector<1x16x512xf32>
    %259 = vector.shape_cast %258 : vector<1x16x512xf32> to vector<16x512xf32>
    %260 = arith.truncf %252 : vector<16x128xf32> to vector<16x128xbf16>
    %cst_70 = arith.constant dense<0.000000e+00> : vector<16x512xf32>
    %261 = tpu.matmul %260, %10, %cst_70 {dimension_numbers = #tpu.dot_dimension_numbers<[1], [0], [0], [1], [0, 0, 1, 1], [], []>} : vector<16x128xbf16>, vector<128x512xbf16>, vector<16x512xf32> -> vector<16x512xf32>
    %262 = arith.addf %259, %261 : vector<16x512xf32>
    %263 = vector.extract_strided_slice %262 {offsets = [0, 0], sizes = [16, 128], strides = [1, 1]} : vector<16x512xf32> to vector<16x128xf32>
    %264 = arith.negf %263 : vector<16x128xf32>
    %265 = math.exp %264 : vector<16x128xf32>
    %cst_71 = arith.constant 1.000000e+00 : f32
    %266 = vector.broadcast %cst_71 : f32 to vector<16x128xf32>
    %267 = arith.addf %266, %265 : vector<16x128xf32>
    %268 = arith.divf %266, %267 : vector<16x128xf32>
    %269 = vector.extract_strided_slice %262 {offsets = [0, 128], sizes = [16, 128], strides = [1, 1]} : vector<16x512xf32> to vector<16x128xf32>
    %270 = arith.negf %269 : vector<16x128xf32>
    %271 = math.exp %270 : vector<16x128xf32>
    %cst_72 = arith.constant 1.000000e+00 : f32
    %272 = vector.broadcast %cst_72 : f32 to vector<16x128xf32>
    %273 = arith.addf %272, %271 : vector<16x128xf32>
    %274 = arith.divf %272, %273 : vector<16x128xf32>
    %275 = vector.extract_strided_slice %262 {offsets = [0, 256], sizes = [16, 128], strides = [1, 1]} : vector<16x512xf32> to vector<16x128xf32>
    %276 = math.tanh %275 : vector<16x128xf32>
    %277 = vector.extract_strided_slice %262 {offsets = [0, 384], sizes = [16, 128], strides = [1, 1]} : vector<16x512xf32> to vector<16x128xf32>
    %278 = arith.negf %277 : vector<16x128xf32>
    %279 = math.exp %278 : vector<16x128xf32>
    %cst_73 = arith.constant 1.000000e+00 : f32
    %280 = vector.broadcast %cst_73 : f32 to vector<16x128xf32>
    %281 = arith.addf %280, %279 : vector<16x128xf32>
    %282 = arith.divf %280, %281 : vector<16x128xf32>
    %283 = arith.mulf %274, %250 : vector<16x128xf32>
    %284 = arith.mulf %268, %276 : vector<16x128xf32>
    %285 = arith.addf %283, %284 : vector<16x128xf32>
    %286 = math.tanh %285 : vector<16x128xf32>
    %287 = arith.mulf %282, %286 : vector<16x128xf32>
    %288 = arith.index_cast %c7_i32 : i32 to index
    %c0_74 = arith.constant 0 : index
    %c0_75 = arith.constant 0 : index
    %289 = vector.load %arg9[%288, %c0_74, %c0_75] : memref<8x16x128xf32, #tpu.memory_space<vmem>>, vector<1x16x128xf32>
    %290 = vector.shape_cast %289 : vector<1x16x128xf32> to vector<16x128xf32>
    %291 = vector.shape_cast %287 : vector<16x128xf32> to vector<1x16x128xf32>
    tpu.vector_store %arg9[%288, %c0_74, %c0_75], %291 {strides = array<i32>} : memref<8x16x128xf32, #tpu.memory_space<vmem>>, vector<1x16x128xf32>,
    %c8_i32 = arith.constant 8 : i32
    %c0_76 = arith.constant 0 : index
    %c0_77 = arith.constant 0 : index
    %c0_78 = arith.constant 0 : index
    %292 = vector.load %arg7[%c0_76, %c0_77, %c0_78] : memref<2x16x128xf32, #tpu.memory_space<vmem>>, vector<1x16x128xf32>
    %293 = vector.shape_cast %292 : vector<1x16x128xf32> to vector<16x128xf32>
    %294 = vector.shape_cast %287 : vector<16x128xf32> to vector<1x16x128xf32>
    tpu.vector_store %arg7[%c0_76, %c0_77, %c0_78], %294 {strides = array<i32>} : memref<2x16x128xf32, #tpu.memory_space<vmem>>, vector<1x16x128xf32>,
    %c0_79 = arith.constant 0 : index
    %c0_80 = arith.constant 0 : index
    %c0_81 = arith.constant 0 : index
    %295 = vector.load %arg8[%c0_79, %c0_80, %c0_81] : memref<2x16x128xf32, #tpu.memory_space<vmem>>, vector<1x16x128xf32>
    %296 = vector.shape_cast %295 : vector<1x16x128xf32> to vector<16x128xf32>
    %297 = vector.shape_cast %285 : vector<16x128xf32> to vector<1x16x128xf32>
    tpu.vector_store %arg8[%c0_79, %c0_80, %c0_81], %297 {strides = array<i32>} : memref<2x16x128xf32, #tpu.memory_space<vmem>>, vector<1x16x128xf32>,
    %c0_82 = arith.constant 0 : index
    %c0_83 = arith.constant 0 : index
    %c0_84 = arith.constant 0 : index
    %298 = vector.load %arg9[%c0_82, %c0_83, %c0_84] : memref<8x16x128xf32, #tpu.memory_space<vmem>>, vector<8x16x128xf32>
    %299 = arith.truncf %298 : vector<8x16x128xf32> to vector<8x16x128xbf16>
    %300 = vector.shape_cast %299 : vector<8x16x128xbf16> to vector<128x128xbf16>
    %c0_85 = arith.constant 0 : index
    %c0_86 = arith.constant 0 : index
    %301 = vector.load %arg4[%c0_85, %c0_86] : memref<128x512xbf16, #tpu.memory_space<vmem>>, vector<128x512xbf16>
    %cst_87 = arith.constant dense<0.000000e+00> : vector<128x512xf32>
    %302 = tpu.matmul %300, %301, %cst_87 {dimension_numbers = #tpu.dot_dimension_numbers<[1], [0], [0], [1], [0, 0, 1, 1], [], []>} : vector<128x128xbf16>, vector<128x512xbf16>, vector<128x512xf32> -> vector<128x512xf32>
    %303 = vector.shape_cast %302 : vector<128x512xf32> to vector<8x16x512xf32>
    %c0_88 = arith.constant 0 : index
    %c0_89 = arith.constant 0 : index
    %304 = vector.load %arg6[%c0_88, %c0_89] : memref<1x512xf32, #tpu.memory_space<vmem>>, vector<1x512xf32>
    %305 = vector.shape_cast %304 : vector<1x512xf32> to vector<1x1x512xf32>
    %306 = vector.broadcast %305 : vector<1x1x512xf32> to vector<8x16x512xf32>
    %307 = arith.addf %303, %306 : vector<8x16x512xf32>
    %c0_90 = arith.constant 0 : index
    %c0_91 = arith.constant 0 : index
    %c0_92 = arith.constant 0 : index
    %308 = vector.load %arg10[%c0_90, %c0_91, %c0_92] : memref<8x16x512xf32, #tpu.memory_space<vmem>>, vector<8x16x512xf32>
    tpu.vector_store %arg10[%c0_90, %c0_91, %c0_92], %307 {strides = array<i32>} : memref<8x16x512xf32, #tpu.memory_space<vmem>>, vector<8x16x512xf32>,
    %c0_93 = arith.constant 0 : index
    %c0_94 = arith.constant 0 : index
    %309 = vector.load %arg5[%c0_93, %c0_94] : memref<128x512xbf16, #tpu.memory_space<vmem>>, vector<128x512xbf16>
    %cst_95 = arith.constant 0.000000e+00 : f32
    %310 = vector.broadcast %cst_95 : f32 to vector<16x128xf32>
    %c0_i32_96 = arith.constant 0 : i32
    %311 = arith.index_cast %c0_i32_96 : i32 to index
    %c0_97 = arith.constant 0 : index
    %c0_98 = arith.constant 0 : index
    %312 = vector.load %arg10[%311, %c0_97, %c0_98] : memref<8x16x512xf32, #tpu.memory_space<vmem>>, vector<1x16x512xf32>
    %313 = vector.shape_cast %312 : vector<1x16x512xf32> to vector<16x512xf32>
    %314 = arith.truncf %310 : vector<16x128xf32> to vector<16x128xbf16>
    %cst_99 = arith.constant dense<0.000000e+00> : vector<16x512xf32>
    %315 = tpu.matmul %314, %309, %cst_99 {dimension_numbers = #tpu.dot_dimension_numbers<[1], [0], [0], [1], [0, 0, 1, 1], [], []>} : vector<16x128xbf16>, vector<128x512xbf16>, vector<16x512xf32> -> vector<16x512xf32>
    %316 = arith.addf %313, %315 : vector<16x512xf32>
    %317 = vector.extract_strided_slice %316 {offsets = [0, 0], sizes = [16, 128], strides = [1, 1]} : vector<16x512xf32> to vector<16x128xf32>
    %318 = arith.negf %317 : vector<16x128xf32>
    %319 = math.exp %318 : vector<16x128xf32>
    %cst_100 = arith.constant 1.000000e+00 : f32
    %320 = vector.broadcast %cst_100 : f32 to vector<16x128xf32>
    %321 = arith.addf %320, %319 : vector<16x128xf32>
    %322 = arith.divf %320, %321 : vector<16x128xf32>
    %323 = vector.extract_strided_slice %316 {offsets = [0, 128], sizes = [16, 128], strides = [1, 1]} : vector<16x512xf32> to vector<16x128xf32>
    %324 = arith.negf %323 : vector<16x128xf32>
    %325 = math.exp %324 : vector<16x128xf32>
    %cst_101 = arith.constant 1.000000e+00 : f32
    %326 = vector.broadcast %cst_101 : f32 to vector<16x128xf32>
    %327 = arith.addf %326, %325 : vector<16x128xf32>
    %328 = arith.divf %326, %327 : vector<16x128xf32>
    %329 = vector.extract_strided_slice %316 {offsets = [0, 256], sizes = [16, 128], strides = [1, 1]} : vector<16x512xf32> to vector<16x128xf32>
    %330 = math.tanh %329 : vector<16x128xf32>
    %331 = vector.extract_strided_slice %316 {offsets = [0, 384], sizes = [16, 128], strides = [1, 1]} : vector<16x512xf32> to vector<16x128xf32>
    %332 = arith.negf %331 : vector<16x128xf32>
    %333 = math.exp %332 : vector<16x128xf32>
    %cst_102 = arith.constant 1.000000e+00 : f32
    %334 = vector.broadcast %cst_102 : f32 to vector<16x128xf32>
    %335 = arith.addf %334, %333 : vector<16x128xf32>
    %336 = arith.divf %334, %335 : vector<16x128xf32>
    %337 = arith.mulf %328, %310 : vector<16x128xf32>
    %338 = arith.mulf %322, %330 : vector<16x128xf32>
    %339 = arith.addf %337, %338 : vector<16x128xf32>
    %340 = math.tanh %339 : vector<16x128xf32>
    %341 = arith.mulf %336, %340 : vector<16x128xf32>
    %c1_i32_103 = arith.constant 1 : i32
    %342 = arith.index_cast %c1_i32_103 : i32 to index
    %c0_104 = arith.constant 0 : index
    %c0_105 = arith.constant 0 : index
    %343 = vector.load %arg10[%342, %c0_104, %c0_105] : memref<8x16x512xf32, #tpu.memory_space<vmem>>, vector<1x16x512xf32>
    %344 = vector.shape_cast %343 : vector<1x16x512xf32> to vector<16x512xf32>
    %345 = arith.truncf %341 : vector<16x128xf32> to vector<16x128xbf16>
    %cst_106 = arith.constant dense<0.000000e+00> : vector<16x512xf32>
    %346 = tpu.matmul %345, %309, %cst_106 {dimension_numbers = #tpu.dot_dimension_numbers<[1], [0], [0], [1], [0, 0, 1, 1], [], []>} : vector<16x128xbf16>, vector<128x512xbf16>, vector<16x512xf32> -> vector<16x512xf32>
    %347 = arith.addf %344, %346 : vector<16x512xf32>
    %348 = vector.extract_strided_slice %347 {offsets = [0, 0], sizes = [16, 128], strides = [1, 1]} : vector<16x512xf32> to vector<16x128xf32>
    %349 = arith.negf %348 : vector<16x128xf32>
    %350 = math.exp %349 : vector<16x128xf32>
    %cst_107 = arith.constant 1.000000e+00 : f32
    %351 = vector.broadcast %cst_107 : f32 to vector<16x128xf32>
    %352 = arith.addf %351, %350 : vector<16x128xf32>
    %353 = arith.divf %351, %352 : vector<16x128xf32>
    %354 = vector.extract_strided_slice %347 {offsets = [0, 128], sizes = [16, 128], strides = [1, 1]} : vector<16x512xf32> to vector<16x128xf32>
    %355 = arith.negf %354 : vector<16x128xf32>
    %356 = math.exp %355 : vector<16x128xf32>
    %cst_108 = arith.constant 1.000000e+00 : f32
    %357 = vector.broadcast %cst_108 : f32 to vector<16x128xf32>
    %358 = arith.addf %357, %356 : vector<16x128xf32>
    %359 = arith.divf %357, %358 : vector<16x128xf32>
    %360 = vector.extract_strided_slice %347 {offsets = [0, 256], sizes = [16, 128], strides = [1, 1]} : vector<16x512xf32> to vector<16x128xf32>
    %361 = math.tanh %360 : vector<16x128xf32>
    %362 = vector.extract_strided_slice %347 {offsets = [0, 384], sizes = [16, 128], strides = [1, 1]} : vector<16x512xf32> to vector<16x128xf32>
    %363 = arith.negf %362 : vector<16x128xf32>
    %364 = math.exp %363 : vector<16x128xf32>
    %cst_109 = arith.constant 1.000000e+00 : f32
    %365 = vector.broadcast %cst_109 : f32 to vector<16x128xf32>
    %366 = arith.addf %365, %364 : vector<16x128xf32>
    %367 = arith.divf %365, %366 : vector<16x128xf32>
    %368 = arith.mulf %359, %339 : vector<16x128xf32>
    %369 = arith.mulf %353, %361 : vector<16x128xf32>
    %370 = arith.addf %368, %369 : vector<16x128xf32>
    %371 = math.tanh %370 : vector<16x128xf32>
    %372 = arith.mulf %367, %371 : vector<16x128xf32>
    %c2_i32_110 = arith.constant 2 : i32
    %373 = arith.index_cast %c2_i32_110 : i32 to index
    %c0_111 = arith.constant 0 : index
    %c0_112 = arith.constant 0 : index
    %374 = vector.load %arg10[%373, %c0_111, %c0_112] : memref<8x16x512xf32, #tpu.memory_space<vmem>>, vector<1x16x512xf32>
    %375 = vector.shape_cast %374 : vector<1x16x512xf32> to vector<16x512xf32>
    %376 = arith.truncf %372 : vector<16x128xf32> to vector<16x128xbf16>
    %cst_113 = arith.constant dense<0.000000e+00> : vector<16x512xf32>
    %377 = tpu.matmul %376, %309, %cst_113 {dimension_numbers = #tpu.dot_dimension_numbers<[1], [0], [0], [1], [0, 0, 1, 1], [], []>} : vector<16x128xbf16>, vector<128x512xbf16>, vector<16x512xf32> -> vector<16x512xf32>
    %378 = arith.addf %375, %377 : vector<16x512xf32>
    %379 = vector.extract_strided_slice %378 {offsets = [0, 0], sizes = [16, 128], strides = [1, 1]} : vector<16x512xf32> to vector<16x128xf32>
    %380 = arith.negf %379 : vector<16x128xf32>
    %381 = math.exp %380 : vector<16x128xf32>
    %cst_114 = arith.constant 1.000000e+00 : f32
    %382 = vector.broadcast %cst_114 : f32 to vector<16x128xf32>
    %383 = arith.addf %382, %381 : vector<16x128xf32>
    %384 = arith.divf %382, %383 : vector<16x128xf32>
    %385 = vector.extract_strided_slice %378 {offsets = [0, 128], sizes = [16, 128], strides = [1, 1]} : vector<16x512xf32> to vector<16x128xf32>
    %386 = arith.negf %385 : vector<16x128xf32>
    %387 = math.exp %386 : vector<16x128xf32>
    %cst_115 = arith.constant 1.000000e+00 : f32
    %388 = vector.broadcast %cst_115 : f32 to vector<16x128xf32>
    %389 = arith.addf %388, %387 : vector<16x128xf32>
    %390 = arith.divf %388, %389 : vector<16x128xf32>
    %391 = vector.extract_strided_slice %378 {offsets = [0, 256], sizes = [16, 128], strides = [1, 1]} : vector<16x512xf32> to vector<16x128xf32>
    %392 = math.tanh %391 : vector<16x128xf32>
    %393 = vector.extract_strided_slice %378 {offsets = [0, 384], sizes = [16, 128], strides = [1, 1]} : vector<16x512xf32> to vector<16x128xf32>
    %394 = arith.negf %393 : vector<16x128xf32>
    %395 = math.exp %394 : vector<16x128xf32>
    %cst_116 = arith.constant 1.000000e+00 : f32
    %396 = vector.broadcast %cst_116 : f32 to vector<16x128xf32>
    %397 = arith.addf %396, %395 : vector<16x128xf32>
    %398 = arith.divf %396, %397 : vector<16x128xf32>
    %399 = arith.mulf %390, %370 : vector<16x128xf32>
    %400 = arith.mulf %384, %392 : vector<16x128xf32>
    %401 = arith.addf %399, %400 : vector<16x128xf32>
    %402 = math.tanh %401 : vector<16x128xf32>
    %403 = arith.mulf %398, %402 : vector<16x128xf32>
    %c3_i32_117 = arith.constant 3 : i32
    %404 = arith.index_cast %c3_i32_117 : i32 to index
    %c0_118 = arith.constant 0 : index
    %c0_119 = arith.constant 0 : index
    %405 = vector.load %arg10[%404, %c0_118, %c0_119] : memref<8x16x512xf32, #tpu.memory_space<vmem>>, vector<1x16x512xf32>
    %406 = vector.shape_cast %405 : vector<1x16x512xf32> to vector<16x512xf32>
    %407 = arith.truncf %403 : vector<16x128xf32> to vector<16x128xbf16>
    %cst_120 = arith.constant dense<0.000000e+00> : vector<16x512xf32>
    %408 = tpu.matmul %407, %309, %cst_120 {dimension_numbers = #tpu.dot_dimension_numbers<[1], [0], [0], [1], [0, 0, 1, 1], [], []>} : vector<16x128xbf16>, vector<128x512xbf16>, vector<16x512xf32> -> vector<16x512xf32>
    %409 = arith.addf %406, %408 : vector<16x512xf32>
    %410 = vector.extract_strided_slice %409 {offsets = [0, 0], sizes = [16, 128], strides = [1, 1]} : vector<16x512xf32> to vector<16x128xf32>
    %411 = arith.negf %410 : vector<16x128xf32>
    %412 = math.exp %411 : vector<16x128xf32>
    %cst_121 = arith.constant 1.000000e+00 : f32
    %413 = vector.broadcast %cst_121 : f32 to vector<16x128xf32>
    %414 = arith.addf %413, %412 : vector<16x128xf32>
    %415 = arith.divf %413, %414 : vector<16x128xf32>
    %416 = vector.extract_strided_slice %409 {offsets = [0, 128], sizes = [16, 128], strides = [1, 1]} : vector<16x512xf32> to vector<16x128xf32>
    %417 = arith.negf %416 : vector<16x128xf32>
    %418 = math.exp %417 : vector<16x128xf32>
    %cst_122 = arith.constant 1.000000e+00 : f32
    %419 = vector.broadcast %cst_122 : f32 to vector<16x128xf32>
    %420 = arith.addf %419, %418 : vector<16x128xf32>
    %421 = arith.divf %419, %420 : vector<16x128xf32>
    %422 = vector.extract_strided_slice %409 {offsets = [0, 256], sizes = [16, 128], strides = [1, 1]} : vector<16x512xf32> to vector<16x128xf32>
    %423 = math.tanh %422 : vector<16x128xf32>
    %424 = vector.extract_strided_slice %409 {offsets = [0, 384], sizes = [16, 128], strides = [1, 1]} : vector<16x512xf32> to vector<16x128xf32>
    %425 = arith.negf %424 : vector<16x128xf32>
    %426 = math.exp %425 : vector<16x128xf32>
    %cst_123 = arith.constant 1.000000e+00 : f32
    %427 = vector.broadcast %cst_123 : f32 to vector<16x128xf32>
    %428 = arith.addf %427, %426 : vector<16x128xf32>
    %429 = arith.divf %427, %428 : vector<16x128xf32>
    %430 = arith.mulf %421, %401 : vector<16x128xf32>
    %431 = arith.mulf %415, %423 : vector<16x128xf32>
    %432 = arith.addf %430, %431 : vector<16x128xf32>
    %433 = math.tanh %432 : vector<16x128xf32>
    %434 = arith.mulf %429, %433 : vector<16x128xf32>
    %c4_i32_124 = arith.constant 4 : i32
    %435 = arith.index_cast %c4_i32_124 : i32 to index
    %c0_125 = arith.constant 0 : index
    %c0_126 = arith.constant 0 : index
    %436 = vector.load %arg10[%435, %c0_125, %c0_126] : memref<8x16x512xf32, #tpu.memory_space<vmem>>, vector<1x16x512xf32>
    %437 = vector.shape_cast %436 : vector<1x16x512xf32> to vector<16x512xf32>
    %438 = arith.truncf %434 : vector<16x128xf32> to vector<16x128xbf16>
    %cst_127 = arith.constant dense<0.000000e+00> : vector<16x512xf32>
    %439 = tpu.matmul %438, %309, %cst_127 {dimension_numbers = #tpu.dot_dimension_numbers<[1], [0], [0], [1], [0, 0, 1, 1], [], []>} : vector<16x128xbf16>, vector<128x512xbf16>, vector<16x512xf32> -> vector<16x512xf32>
    %440 = arith.addf %437, %439 : vector<16x512xf32>
    %441 = vector.extract_strided_slice %440 {offsets = [0, 0], sizes = [16, 128], strides = [1, 1]} : vector<16x512xf32> to vector<16x128xf32>
    %442 = arith.negf %441 : vector<16x128xf32>
    %443 = math.exp %442 : vector<16x128xf32>
    %cst_128 = arith.constant 1.000000e+00 : f32
    %444 = vector.broadcast %cst_128 : f32 to vector<16x128xf32>
    %445 = arith.addf %444, %443 : vector<16x128xf32>
    %446 = arith.divf %444, %445 : vector<16x128xf32>
    %447 = vector.extract_strided_slice %440 {offsets = [0, 128], sizes = [16, 128], strides = [1, 1]} : vector<16x512xf32> to vector<16x128xf32>
    %448 = arith.negf %447 : vector<16x128xf32>
    %449 = math.exp %448 : vector<16x128xf32>
    %cst_129 = arith.constant 1.000000e+00 : f32
    %450 = vector.broadcast %cst_129 : f32 to vector<16x128xf32>
    %451 = arith.addf %450, %449 : vector<16x128xf32>
    %452 = arith.divf %450, %451 : vector<16x128xf32>
    %453 = vector.extract_strided_slice %440 {offsets = [0, 256], sizes = [16, 128], strides = [1, 1]} : vector<16x512xf32> to vector<16x128xf32>
    %454 = math.tanh %453 : vector<16x128xf32>
    %455 = vector.extract_strided_slice %440 {offsets = [0, 384], sizes = [16, 128], strides = [1, 1]} : vector<16x512xf32> to vector<16x128xf32>
    %456 = arith.negf %455 : vector<16x128xf32>
    %457 = math.exp %456 : vector<16x128xf32>
    %cst_130 = arith.constant 1.000000e+00 : f32
    %458 = vector.broadcast %cst_130 : f32 to vector<16x128xf32>
    %459 = arith.addf %458, %457 : vector<16x128xf32>
    %460 = arith.divf %458, %459 : vector<16x128xf32>
    %461 = arith.mulf %452, %432 : vector<16x128xf32>
    %462 = arith.mulf %446, %454 : vector<16x128xf32>
    %463 = arith.addf %461, %462 : vector<16x128xf32>
    %464 = math.tanh %463 : vector<16x128xf32>
    %465 = arith.mulf %460, %464 : vector<16x128xf32>
    %c5_i32_131 = arith.constant 5 : i32
    %466 = arith.index_cast %c5_i32_131 : i32 to index
    %c0_132 = arith.constant 0 : index
    %c0_133 = arith.constant 0 : index
    %467 = vector.load %arg10[%466, %c0_132, %c0_133] : memref<8x16x512xf32, #tpu.memory_space<vmem>>, vector<1x16x512xf32>
    %468 = vector.shape_cast %467 : vector<1x16x512xf32> to vector<16x512xf32>
    %469 = arith.truncf %465 : vector<16x128xf32> to vector<16x128xbf16>
    %cst_134 = arith.constant dense<0.000000e+00> : vector<16x512xf32>
    %470 = tpu.matmul %469, %309, %cst_134 {dimension_numbers = #tpu.dot_dimension_numbers<[1], [0], [0], [1], [0, 0, 1, 1], [], []>} : vector<16x128xbf16>, vector<128x512xbf16>, vector<16x512xf32> -> vector<16x512xf32>
    %471 = arith.addf %468, %470 : vector<16x512xf32>
    %472 = vector.extract_strided_slice %471 {offsets = [0, 0], sizes = [16, 128], strides = [1, 1]} : vector<16x512xf32> to vector<16x128xf32>
    %473 = arith.negf %472 : vector<16x128xf32>
    %474 = math.exp %473 : vector<16x128xf32>
    %cst_135 = arith.constant 1.000000e+00 : f32
    %475 = vector.broadcast %cst_135 : f32 to vector<16x128xf32>
    %476 = arith.addf %475, %474 : vector<16x128xf32>
    %477 = arith.divf %475, %476 : vector<16x128xf32>
    %478 = vector.extract_strided_slice %471 {offsets = [0, 128], sizes = [16, 128], strides = [1, 1]} : vector<16x512xf32> to vector<16x128xf32>
    %479 = arith.negf %478 : vector<16x128xf32>
    %480 = math.exp %479 : vector<16x128xf32>
    %cst_136 = arith.constant 1.000000e+00 : f32
    %481 = vector.broadcast %cst_136 : f32 to vector<16x128xf32>
    %482 = arith.addf %481, %480 : vector<16x128xf32>
    %483 = arith.divf %481, %482 : vector<16x128xf32>
    %484 = vector.extract_strided_slice %471 {offsets = [0, 256], sizes = [16, 128], strides = [1, 1]} : vector<16x512xf32> to vector<16x128xf32>
    %485 = math.tanh %484 : vector<16x128xf32>
    %486 = vector.extract_strided_slice %471 {offsets = [0, 384], sizes = [16, 128], strides = [1, 1]} : vector<16x512xf32> to vector<16x128xf32>
    %487 = arith.negf %486 : vector<16x128xf32>
    %488 = math.exp %487 : vector<16x128xf32>
    %cst_137 = arith.constant 1.000000e+00 : f32
    %489 = vector.broadcast %cst_137 : f32 to vector<16x128xf32>
    %490 = arith.addf %489, %488 : vector<16x128xf32>
    %491 = arith.divf %489, %490 : vector<16x128xf32>
    %492 = arith.mulf %483, %463 : vector<16x128xf32>
    %493 = arith.mulf %477, %485 : vector<16x128xf32>
    %494 = arith.addf %492, %493 : vector<16x128xf32>
    %495 = math.tanh %494 : vector<16x128xf32>
    %496 = arith.mulf %491, %495 : vector<16x128xf32>
    %c6_i32_138 = arith.constant 6 : i32
    %497 = arith.index_cast %c6_i32_138 : i32 to index
    %c0_139 = arith.constant 0 : index
    %c0_140 = arith.constant 0 : index
    %498 = vector.load %arg10[%497, %c0_139, %c0_140] : memref<8x16x512xf32, #tpu.memory_space<vmem>>, vector<1x16x512xf32>
    %499 = vector.shape_cast %498 : vector<1x16x512xf32> to vector<16x512xf32>
    %500 = arith.truncf %496 : vector<16x128xf32> to vector<16x128xbf16>
    %cst_141 = arith.constant dense<0.000000e+00> : vector<16x512xf32>
    %501 = tpu.matmul %500, %309, %cst_141 {dimension_numbers = #tpu.dot_dimension_numbers<[1], [0], [0], [1], [0, 0, 1, 1], [], []>} : vector<16x128xbf16>, vector<128x512xbf16>, vector<16x512xf32> -> vector<16x512xf32>
    %502 = arith.addf %499, %501 : vector<16x512xf32>
    %503 = vector.extract_strided_slice %502 {offsets = [0, 0], sizes = [16, 128], strides = [1, 1]} : vector<16x512xf32> to vector<16x128xf32>
    %504 = arith.negf %503 : vector<16x128xf32>
    %505 = math.exp %504 : vector<16x128xf32>
    %cst_142 = arith.constant 1.000000e+00 : f32
    %506 = vector.broadcast %cst_142 : f32 to vector<16x128xf32>
    %507 = arith.addf %506, %505 : vector<16x128xf32>
    %508 = arith.divf %506, %507 : vector<16x128xf32>
    %509 = vector.extract_strided_slice %502 {offsets = [0, 128], sizes = [16, 128], strides = [1, 1]} : vector<16x512xf32> to vector<16x128xf32>
    %510 = arith.negf %509 : vector<16x128xf32>
    %511 = math.exp %510 : vector<16x128xf32>
    %cst_143 = arith.constant 1.000000e+00 : f32
    %512 = vector.broadcast %cst_143 : f32 to vector<16x128xf32>
    %513 = arith.addf %512, %511 : vector<16x128xf32>
    %514 = arith.divf %512, %513 : vector<16x128xf32>
    %515 = vector.extract_strided_slice %502 {offsets = [0, 256], sizes = [16, 128], strides = [1, 1]} : vector<16x512xf32> to vector<16x128xf32>
    %516 = math.tanh %515 : vector<16x128xf32>
    %517 = vector.extract_strided_slice %502 {offsets = [0, 384], sizes = [16, 128], strides = [1, 1]} : vector<16x512xf32> to vector<16x128xf32>
    %518 = arith.negf %517 : vector<16x128xf32>
    %519 = math.exp %518 : vector<16x128xf32>
    %cst_144 = arith.constant 1.000000e+00 : f32
    %520 = vector.broadcast %cst_144 : f32 to vector<16x128xf32>
    %521 = arith.addf %520, %519 : vector<16x128xf32>
    %522 = arith.divf %520, %521 : vector<16x128xf32>
    %523 = arith.mulf %514, %494 : vector<16x128xf32>
    %524 = arith.mulf %508, %516 : vector<16x128xf32>
    %525 = arith.addf %523, %524 : vector<16x128xf32>
    %526 = math.tanh %525 : vector<16x128xf32>
    %527 = arith.mulf %522, %526 : vector<16x128xf32>
    %c7_i32_145 = arith.constant 7 : i32
    %528 = arith.index_cast %c7_i32_145 : i32 to index
    %c0_146 = arith.constant 0 : index
    %c0_147 = arith.constant 0 : index
    %529 = vector.load %arg10[%528, %c0_146, %c0_147] : memref<8x16x512xf32, #tpu.memory_space<vmem>>, vector<1x16x512xf32>
    %530 = vector.shape_cast %529 : vector<1x16x512xf32> to vector<16x512xf32>
    %531 = arith.truncf %527 : vector<16x128xf32> to vector<16x128xbf16>
    %cst_148 = arith.constant dense<0.000000e+00> : vector<16x512xf32>
    %532 = tpu.matmul %531, %309, %cst_148 {dimension_numbers = #tpu.dot_dimension_numbers<[1], [0], [0], [1], [0, 0, 1, 1], [], []>} : vector<16x128xbf16>, vector<128x512xbf16>, vector<16x512xf32> -> vector<16x512xf32>
    %533 = arith.addf %530, %532 : vector<16x512xf32>
    %534 = vector.extract_strided_slice %533 {offsets = [0, 0], sizes = [16, 128], strides = [1, 1]} : vector<16x512xf32> to vector<16x128xf32>
    %535 = arith.negf %534 : vector<16x128xf32>
    %536 = math.exp %535 : vector<16x128xf32>
    %cst_149 = arith.constant 1.000000e+00 : f32
    %537 = vector.broadcast %cst_149 : f32 to vector<16x128xf32>
    %538 = arith.addf %537, %536 : vector<16x128xf32>
    %539 = arith.divf %537, %538 : vector<16x128xf32>
    %540 = vector.extract_strided_slice %533 {offsets = [0, 128], sizes = [16, 128], strides = [1, 1]} : vector<16x512xf32> to vector<16x128xf32>
    %541 = arith.negf %540 : vector<16x128xf32>
    %542 = math.exp %541 : vector<16x128xf32>
    %cst_150 = arith.constant 1.000000e+00 : f32
    %543 = vector.broadcast %cst_150 : f32 to vector<16x128xf32>
    %544 = arith.addf %543, %542 : vector<16x128xf32>
    %545 = arith.divf %543, %544 : vector<16x128xf32>
    %546 = vector.extract_strided_slice %533 {offsets = [0, 256], sizes = [16, 128], strides = [1, 1]} : vector<16x512xf32> to vector<16x128xf32>
    %547 = math.tanh %546 : vector<16x128xf32>
    %548 = vector.extract_strided_slice %533 {offsets = [0, 384], sizes = [16, 128], strides = [1, 1]} : vector<16x512xf32> to vector<16x128xf32>
    %549 = arith.negf %548 : vector<16x128xf32>
    %550 = math.exp %549 : vector<16x128xf32>
    %cst_151 = arith.constant 1.000000e+00 : f32
    %551 = vector.broadcast %cst_151 : f32 to vector<16x128xf32>
    %552 = arith.addf %551, %550 : vector<16x128xf32>
    %553 = arith.divf %551, %552 : vector<16x128xf32>
    %554 = arith.mulf %545, %525 : vector<16x128xf32>
    %555 = arith.mulf %539, %547 : vector<16x128xf32>
    %556 = arith.addf %554, %555 : vector<16x128xf32>
    %557 = math.tanh %556 : vector<16x128xf32>
    %558 = arith.mulf %553, %557 : vector<16x128xf32>
    %c8_i32_152 = arith.constant 8 : i32
    %c1 = arith.constant 1 : index
    %c0_153 = arith.constant 0 : index
    %c0_154 = arith.constant 0 : index
    %559 = vector.load %arg7[%c1, %c0_153, %c0_154] : memref<2x16x128xf32, #tpu.memory_space<vmem>>, vector<1x16x128xf32>
    %560 = vector.shape_cast %559 : vector<1x16x128xf32> to vector<16x128xf32>
    %561 = vector.shape_cast %558 : vector<16x128xf32> to vector<1x16x128xf32>
    tpu.vector_store %arg7[%c1, %c0_153, %c0_154], %561 {strides = array<i32>} : memref<2x16x128xf32, #tpu.memory_space<vmem>>, vector<1x16x128xf32>,
    %c1_155 = arith.constant 1 : index
    %c0_156 = arith.constant 0 : index
    %c0_157 = arith.constant 0 : index
    %562 = vector.load %arg8[%c1_155, %c0_156, %c0_157] : memref<2x16x128xf32, #tpu.memory_space<vmem>>, vector<1x16x128xf32>
    %563 = vector.shape_cast %562 : vector<1x16x128xf32> to vector<16x128xf32>
    %564 = vector.shape_cast %556 : vector<16x128xf32> to vector<1x16x128xf32>
    tpu.vector_store %arg8[%c1_155, %c0_156, %c0_157], %564 {strides = array<i32>} : memref<2x16x128xf32, #tpu.memory_space<vmem>>, vector<1x16x128xf32>,
    return
  }
}

</mosaic_0001>

<bundles_post_ra>
// kernel: encoder_forward.1
= control target key start
LH: loop header
LB: loop body
LE: loop exit
PB: predicated region body
PF: predicated region fallthrough
CT: control target
= control target key end

     0   :  { %14 = vsyncpa [#allocation5], 0  ;;  %s6836_s0 = inlined_call_operand.vmem [shape: bf16[8,16,32], index: 0, kind: input, shape index: {}]   ;;  %s6837_s1 = inlined_call_operand.hbm [shape: bf16[32,512], index: 1, kind: input, shape index: {}]   ;;  %s6838_s2 = inlined_call_operand.vmem [shape: bf16[128,512], index: 2, kind: input, shape index: {}]   ;;  %s6839_s3 = inlined_call_operand.vmem [shape: f32[1,512], index: 3, kind: input, shape index: {}]   ;;  %s6840_s4 = inlined_call_operand.hbm [shape: bf16[128,512], index: 4, kind: input, shape index: {}]   ;;  %s6841_s5 = inlined_call_operand.hbm [shape: bf16[128,512], index: 5, kind: input, shape index: {}]   ;;  %s6842_s6 = inlined_call_operand.vmem [shape: f32[1,512], index: 6, kind: input, shape index: {}]   ;;  %s6843_s7 = inlined_call_operand.vmem [shape: f32[2,16,128], index: 7, kind: output, shape index: {0}]   ;;  %s6844_s8 = inlined_call_operand.vmem [shape: f32[2,16,128], index: 8, kind: output, shape index: {1}]  }
   0x1   :  { %15 = vsyncpa [#allocation7], 0  ;;  %s5315_s27 = smov [#allocation6]   ;;  %s5316_s29 = smov [#allocation4]  }
   0x2   :  { %s39_s28 = sshll.u32 %s5315_s27, 4  ;;  %s23_s30 = sshll.u32 %s5316_s29, 4  ;;  %s40_s28 = int_to_ptr.vmem [resolvable:$true] %s39_s28  ;;  %s5366_s30 = int_to_ptr.vmem [resolvable:$true] %s23_s30 }
   0x3   :  { %s5245_s11 = scalar_lea.hbm %s6840_s4, 4096 }
   0x4   :  { %p5246_p0 = scmp.ne.s32.totalorder %s6840_s4, %s5245_s11  ;;  %p5249_p1 = scmp.lt.u32.totalorder %s5245_s11, %s6840_s4 }
   0x6   :  { %p5251_p2 = pnand %p5249_p1, %p5246_p0 }
   0x8   :  { %5254 = shalt.err (!%p5251_p2)
}
   0x9   :  { %s5255_s16 = scalar_lea.vmem %s40_s28, 4096  ;;  %p5260_p4 = scmp.lt.s32.totalorder %s40_s28, %s40_s28 }
   0xa   :  { %p5256_p3 = scmp.ne.s32.totalorder %s40_s28, %s5255_s16  ;;  %p5261_p5 = scmp.lt.s32.totalorder %s5255_s16, %s5255_s16 }
   0xc   :  { %p5262_p6 = por %p5261_p5, %p5260_p4 }
   0xe   :  { %p5263_p7 = pnand %p5262_p6, %p5256_p3 }
  0x10   :  { %5266 = shalt.err (!%p5263_p7)
}
  0x11   :  { %s5317_s17 = smov 256   ;;  %s5318_s18 = smov 16  }
  0x12   :  { %45 = dma.hbm_to_vmem [thread:$0]  %s6840_s4, 4096, %s40_s28, [#allocation7], %s5317_s17, %s5317_s17, %s5318_s18  }
  0x13   :  { %s5267_s23 = scalar_lea.hbm %s6837_s1, 1024 }
  0x14   :  { %p5268_p8 = scmp.ne.s32.totalorder %s6837_s1, %s5267_s23  ;;  %p5271_p9 = scmp.lt.u32.totalorder %s5267_s23, %s6837_s1 }
  0x16   :  { %p5273_p10 = pnand %p5271_p9, %p5268_p8 }
  0x18   :  { %5276 = shalt.err (!%p5273_p10)
}
  0x19   :  { %s5277_s29 = scalar_lea.vmem %s5366_s30, 1024  ;;  %p5282_p12 = scmp.lt.s32.totalorder %s5366_s30, %s5366_s30 }
  0x1a   :  { %p5278_p11 = scmp.ne.s32.totalorder %s5366_s30, %s5277_s29  ;;  %p5283_p13 = scmp.lt.s32.totalorder %s5277_s29, %s5277_s29 }
  0x1c   :  { %p5284_p0 = por %p5283_p13, %p5282_p12 }
  0x1e   :  { %p5285_p1 = pnand %p5284_p0, %p5278_p11 }
  0x20   :  { %5288 = shalt.err (!%p5285_p1)
}
  0x21   :  { %29 = dma.hbm_to_vmem [thread:$0]  %s6837_s1, 1024, %s5366_s30, [#allocation5], %s5317_s17, %s5317_s17, %s5318_s18  }
  0x22   :  { %s5319_s9 = smov [#allocation8]   ;;  %s5289_s13 = scalar_lea.hbm %s6841_s5, 4096 }
  0x23   :  { %s51_s10 = sshll.u32 %s5319_s9, 4  ;;  %p5290_p2 = scmp.ne.s32.totalorder %s6841_s5, %s5289_s13  ;;  %s52_s10 = int_to_ptr.vmem [resolvable:$true] %s51_s10 }
  0x24   :  { %p5293_p3 = scmp.lt.u32.totalorder %s5289_s13, %s6841_s5 }
  0x26   :  { %p5295_p4 = pnand %p5293_p3, %p5290_p2 }
  0x28   :  { %5298 = shalt.err (!%p5295_p4)
}
  0x29   :  { %s5299_s20 = scalar_lea.vmem %s52_s10, 4096  ;;  %p5304_p6 = scmp.lt.s32.totalorder %s52_s10, %s52_s10 }
  0x2a   :  { %p5300_p5 = scmp.ne.s32.totalorder %s52_s10, %s5299_s20  ;;  %p5305_p7 = scmp.lt.s32.totalorder %s5299_s20, %s5299_s20 }
  0x2c   :  { %p5306_p8 = por %p5305_p7, %p5304_p6 }
  0x2e   :  { %p5307_p9 = pnand %p5306_p8, %p5300_p5 }
  0x30   :  { %5310 = shalt.err (!%p5307_p9)
}
  0x31   :  { %57 = dma.hbm_to_vmem [thread:$0]  %s6841_s5, 4096, %s52_s10, [#allocation7], %s5317_s17, %s5317_s17, %s5318_s18  }
  0x32   :  { %5311 = dma.done.wait [#allocation5], 1024  }
  0x33   :  { %5312 = vsyncadd [#allocation5], 4294966272 }
  0x34   :  { %5313 = dma.done.wait [#allocation7], 8192  }
  0x35   :  { %5314 = vsyncadd [#allocation7], 4294959104  ;;  %v5320_v0 = vmov 0   ;;  %v4505_v1 = vld [vmem:[#allocation4 + $0x4] ss:$16 sps:$4 sm:$0xff]   ;;  %vm174_vm0 = vcmask 261120   ;;  %v427_v49 = vlaneseq }
  0x36   :  { %231 = vmatprep.mubr.bf16.mxu0 %v5320_v0  ;;  %344 = vmatprep.mubr.bf16.mxu1 %v5320_v0  ;;  %v4507_v2 = vld [vmem:[#allocation4 + $0xc] ss:$16 sps:$4 sm:$0xff]   ;;  %v4509_v3 = vld [vmem:[#allocation4] ss:$16 sps:$4 sm:$0xff]   ;;  %v4510_v4 = vld [vmem:[#allocation4 + $0x8] ss:$16 sps:$4 sm:$0xff]  }
  0x37   :  { %199 = vmatprep.subr.bf16.mxu0 %v4505_v1  ;;  %312 = vmatprep.subr.bf16.mxu1 %v4507_v2  ;;  %v4511_v5 = vld [vmem:[#allocation4 + $0x24] ss:$16 sps:$4 sm:$0xff]   ;;  %v4513_v6 = vld [vmem:[#allocation4 + $0x2c] ss:$16 sps:$4 sm:$0xff]   ;;  %v4515_v7 = vld [vmem:[#allocation4 + $0x20] ss:$16 sps:$4 sm:$0xff]  }
  0x38   :  { %200 = vmatpush1.bf16.msra.mxu0 %v4509_v3  ;;  %313 = vmatpush1.bf16.msra.mxu1 %v4510_v4  ;;  %v4516_v8 = vld [vmem:[#allocation4 + $0x28] ss:$16 sps:$4 sm:$0xff]   ;;  %v4517_v9 = vld [vmem:[%s6836_s0] sm:$0xff]   ;;  %v5442_v13 = vld [vmem:[%s6838_s2 + $0xc] ss:$16 sps:$4 sm:$0xff]   ;;  %v5706_v50 = vshrl.u32 %v427_v49, 7 }
  0x39   :  { %201 = vmatprep.subr.bf16.mxu0 %v4511_v5  ;;  %314 = vmatprep.subr.bf16.mxu1 %v4513_v6  ;;  %v5426_v10 = vld [vmem:[%s6838_s2 + $0x4] ss:$16 sps:$4 sm:$0xff]   ;;  %v5431_v11 = vld [vmem:[%s6838_s2] ss:$16 sps:$4 sm:$0xff]   ;;  %v5463_v16 = vld [vmem:[%s6838_s2 + $0x8] ss:$16 sps:$4 sm:$0xff]  }
  0x3a   :  { %v5437_v12 = vld [vmem:[%s6838_s2 + $0x24] ss:$16 sps:$4 sm:$0xff]   ;;  %v5451_v14 = vld [vmem:[%s6838_s2 + $0x20] ss:$16 sps:$4 sm:$0xff]   ;;  %v5469_v17 = vld [vmem:[%s6838_s2 + $0x2c] ss:$16 sps:$4 sm:$0xff]  }
  0x3b   :  { %v5458_v15 = vld [vmem:[%s6838_s2 + $0x44] ss:$16 sps:$4 sm:$0xff]   ;;  %v4521_v18 = vld [vmem:[%s6836_s0 + $0x8] sm:$0xff]   ;;  %v5479_v19 = vld [vmem:[%s6838_s2 + $0x40] ss:$16 sps:$4 sm:$0xff]   ;;  %v429_v51 = vsub.s32 0, %v5706_v50 }
  0x3c   :  { %202 = vmatpush1.bf16.msra.mxu0 %v4515_v7  ;;  %315 = vmatpush1.bf16.msra.mxu1 %v4516_v8  ;;  %v5485_v20 = vld [vmem:[%s6838_s2 + $0x64] ss:$16 sps:$4 sm:$0xff]   ;;  %v5491_v21 = vld [vmem:[%s6838_s2 + $0x28] ss:$16 sps:$4 sm:$0xff]   ;;  %v5496_v22 = vld [vmem:[%s6838_s2 + $0x4c] ss:$16 sps:$4 sm:$0xff]  }
  0x3d   :  { %775 = vmatprep.subr.bf16.mxu0 %v5426_v10  ;;  %818 = vmatprep.subr.bf16.mxu1 %v5442_v13  ;;  %v5505_v23 = vld [vmem:[%s6838_s2 + $0x60] ss:$16 sps:$4 sm:$0xff]   ;;  %v5510_v24 = vld [vmem:[%s6838_s2 + $0x84] ss:$16 sps:$4 sm:$0xff]   ;;  %v5517_v25 = vld [vmem:[%s6838_s2 + $0x48] ss:$16 sps:$4 sm:$0xff]  }
  0x3e   :  { %v5524_v26 = vld [vmem:[%s6838_s2 + $0x6c] ss:$16 sps:$4 sm:$0xff]   ;;  %v4527_v27 = vld [vmem:[%s6836_s0 + $0x10] sm:$0xff]   ;;  %v5544_v30 = vld [vmem:[%s6838_s2 + $0x68] ss:$16 sps:$4 sm:$0xff]   ;;  %v6847_v53 = vsub.s32 1, %v5706_v50 }
  0x3f   :  { %4031 = vmatmul.mubr.msk.bf16.vlgmr.msra.gmra.mrb[0].mxu0 %vm174_vm0, %v4517_v9  ;;  %4039 = vmatmul.mubr.msk.bf16.vlgmr.msra.gmra.mrb[0].mxu1 %vm174_vm0, %v4517_v9  ;;  %v5532_v28 = vld [vmem:[%s6838_s2 + $0x80] ss:$16 sps:$4 sm:$0xff]   ;;  %v5537_v29 = vld [vmem:[%s6838_s2 + $0xa4] ss:$16 sps:$4 sm:$0xff]   ;;  %v5551_v31 = vld [vmem:[%s6838_s2 + $0x8c] ss:$16 sps:$4 sm:$0xff]  }
  0x40   :  { %776 = vmatpush1.bf16.msra.mxu0 %v5431_v11  ;;  %241 = vmatprep.mubr.bf16.mxu0 %v5320_v0  ;;  %v5560_v32 = vld [vmem:[%s6838_s2 + $0xa0] ss:$16 sps:$4 sm:$0xff]   ;;  %v5567_v33 = vld [vmem:[%s6838_s2 + $0xc4] ss:$16 sps:$4 sm:$0xff]   ;;  %v5572_v34 = vld [vmem:[%s6838_s2 + $0x88] ss:$16 sps:$4 sm:$0xff]  }
  0x41   :  { %354 = vmatprep.mubr.bf16.mxu1 %v5320_v0  ;;  %777 = vmatprep.subr.bf16.mxu0 %v5437_v12  ;;  %v5579_v35 = vld [vmem:[%s6838_s2 + $0xac] ss:$16 sps:$4 sm:$0xff]   ;;  %v5587_v37 = vld [vmem:[%s6838_s2 + $0xc0] ss:$16 sps:$4 sm:$0xff]   ;;  %v5594_v38 = vld [vmem:[%s6838_s2 + $0xa8] ss:$16 sps:$4 sm:$0xff]  }
  0x42   :  { %819 = vmatpush1.bf16.msra.mxu1 %v5463_v16  ;;  %v4534_v36 = vld [vmem:[%s6836_s0 + $0x18] sm:$0xff]   ;;  %v5601_v39 = vld [vmem:[%s6838_s2 + $0xe4] ss:$16 sps:$4 sm:$0xff]   ;;  %v5613_v41 = vld [vmem:[%s6838_s2 + $0xe0] ss:$16 sps:$4 sm:$0xff]   ;;  %v6846_v58 = vsub.s32 3, %v5706_v50 }
  0x43   :  { %820 = vmatprep.subr.bf16.mxu1 %v5469_v17  ;;  %v5606_v40 = vld [vmem:[%s6838_s2 + $0xcc] ss:$16 sps:$4 sm:$0xff]   ;;  %v5618_v42 = vld [vmem:[%s6838_s2 + $0xc8] ss:$16 sps:$4 sm:$0xff]   ;;  %v4541_v44 = vld [vmem:[%s6836_s0 + $0x20] sm:$0xff]   ;;  %v6845_v3 = vsub.s32 2, %v5706_v50 }
  0x44   :  { %778 = vmatpush1.bf16.msra.mxu0 %v5451_v14  ;;  %v5625_v43 = vld [vmem:[%s6838_s2 + $0xec] ss:$16 sps:$4 sm:$0xff]   ;;  %v5637_v45 = vld [vmem:[%s6838_s2 + $0xe8] ss:$16 sps:$4 sm:$0xff]   ;;  %v4555_v47 = vld [vmem:[%s6836_s0 + $0x30] sm:$0xff]  }
  0x45   :  { %779 = vmatprep.subr.bf16.mxu0 %v5458_v15  ;;  %v4548_v46 = vld [vmem:[%s6836_s0 + $0x28] sm:$0xff]   ;;  %v4563_v48 = vld [vmem:[%s6836_s0 + $0x38] sm:$0xff]   ;;  %v425_v52 = vld [vmem:[%s6839_s3] sm:$0xf] }
  0x46   :  { %821 = vmatpush1.bf16.msra.mxu1 %v5491_v21  ;;  %v5715_v54 = vrot.slane %v425_v52, %v429_v51  ;;  %v5719_v55 = vrot.slane %v425_v52, %v6847_v53  ;;  %v5728_v8 = vrot.slane %v425_v52, %v6846_v58 }
  0x47   :  { %4032 = vmatmul.mubr.msk.bf16.gmra.mrb[4].mxu0 %vm174_vm0, %v4521_v18  ;;  %4040 = vmatmul.mubr.msk.bf16.gmra.mrb[4].mxu1 %vm174_vm0, %v4521_v18 }
  0x48   :  { %251 = vmatprep.mubr.bf16.mxu0 %v5320_v0  ;;  %364 = vmatprep.mubr.bf16.mxu1 %v5320_v0 }
  0x49   :  { %780 = vmatpush1.bf16.msra.mxu0 %v5479_v19  ;;  %822 = vmatprep.subr.bf16.mxu1 %v5496_v22 }
  0x4a   :  { %781 = vmatprep.subr.bf16.mxu0 %v5485_v20  ;;  %823 = vmatpush1.bf16.msra.mxu1 %v5517_v25 }
  0x4b   :  { %824 = vmatprep.subr.bf16.mxu1 %v5524_v26 }
  0x4d   :  { %782 = vmatpush1.bf16.msra.mxu0 %v5505_v23 }
  0x4e   :  { %783 = vmatprep.subr.bf16.mxu0 %v5510_v24  ;;  %825 = vmatpush1.bf16.msra.mxu1 %v5544_v30 }
  0x4f   :  { %4033 = vmatmul.mubr.msk.bf16.gmra.mrb[8].mxu0 %vm174_vm0, %v4527_v27  ;;  %4041 = vmatmul.mubr.msk.bf16.gmra.mrb[8].mxu1 %vm174_vm0, %v4527_v27 }
  0x50   :  { %261 = vmatprep.mubr.bf16.mxu0 %v5320_v0  ;;  %374 = vmatprep.mubr.bf16.mxu1 %v5320_v0 }
  0x51   :  { %784 = vmatpush1.bf16.msra.mxu0 %v5532_v28  ;;  %826 = vmatprep.subr.bf16.mxu1 %v5551_v31 }
  0x52   :  { %785 = vmatprep.subr.bf16.mxu0 %v5537_v29  ;;  %827 = vmatpush1.bf16.msra.mxu1 %v5572_v34 }
  0x53   :  { %828 = vmatprep.subr.bf16.mxu1 %v5579_v35 }
  0x55   :  { %786 = vmatpush1.bf16.msra.mxu0 %v5560_v32 }
  0x56   :  { %787 = vmatprep.subr.bf16.mxu0 %v5567_v33  ;;  %829 = vmatpush1.bf16.msra.mxu1 %v5594_v38 }
  0x57   :  { %4034 = vmatmul.mubr.msk.bf16.gmra.mrb[12].mxu0 %vm174_vm0, %v4534_v36  ;;  %4042 = vmatmul.mubr.msk.bf16.gmra.mrb[12].mxu1 %vm174_vm0, %v4534_v36  ;;  %v5733_v36 = vrot.slane %v425_v52, %v6845_v3 }
  0x58   :  { %271 = vmatprep.mubr.bf16.mxu0 %v5320_v0  ;;  %384 = vmatprep.mubr.bf16.mxu1 %v5320_v0 }
  0x59   :  { %788 = vmatpush1.bf16.msra.mxu0 %v5587_v37  ;;  %830 = vmatprep.subr.bf16.mxu1 %v5606_v40 }
  0x5a   :  { %789 = vmatprep.subr.bf16.mxu0 %v5601_v39  ;;  %831 = vmatpush1.bf16.msra.mxu1 %v5618_v42 }
  0x5b   :  { %832 = vmatprep.subr.bf16.mxu1 %v5625_v43 }
  0x5d   :  { %790 = vmatpush1.bf16.msra.mxu0 %v5613_v41 }
  0x5e   :  { %929 = vmatprep.subr.bf16.mxu0 %v5426_v10  ;;  %833 = vmatpush1.bf16.msra.mxu1 %v5637_v45 }
  0x5f   :  { %4035 = vmatmul.mubr.msk.bf16.gmra.mrb[16].mxu0 %vm174_vm0, %v4541_v44  ;;  %4043 = vmatmul.mubr.msk.bf16.gmra.mrb[16].mxu1 %vm174_vm0, %v4541_v44 }
  0x60   :  { %281 = vmatprep.mubr.bf16.mxu0 %v5320_v0  ;;  %394 = vmatprep.mubr.bf16.mxu1 %v5320_v0 }
  0x61   :  { %972 = vmatprep.subr.bf16.mxu1 %v5442_v13 }
  0x67   :  { %4036 = vmatmul.mubr.msk.bf16.gmra.mrb[20].mxu0 %vm174_vm0, %v4548_v46  ;;  %4044 = vmatmul.mubr.msk.bf16.gmra.mrb[20].mxu1 %vm174_vm0, %v4548_v46 }
  0x68   :  { %291 = vmatprep.mubr.bf16.mxu0 %v5320_v0  ;;  %404 = vmatprep.mubr.bf16.mxu1 %v5320_v0 }
  0x6f   :  { %4037 = vmatmul.mubr.msk.bf16.gmra.mrb[24].mxu0 %vm174_vm0, %v4555_v47  ;;  %4045 = vmatmul.mubr.msk.bf16.gmra.mrb[24].mxu1 %vm174_vm0, %v4555_v47 }
  0x70   :  { %301 = vmatprep.mubr.bf16.mxu0 %v5320_v0  ;;  %414 = vmatprep.mubr.bf16.mxu1 %v5320_v0 }
  0x77   :  { %4038 = vmatmul.mubr.msk.bf16.gmra.mrb[28].mxu0 %vm174_vm0, %v4563_v48  ;;  %4046 = vmatmul.mubr.msk.bf16.gmra.mrb[28].mxu1 %vm174_vm0, %v4563_v48 }
  0x78   :  { %807 = vmatprep.mubr.bf16.mxu0 %v5320_v0  ;;  %850 = vmatprep.mubr.bf16.mxu1 %v5320_v0 }
  0x7f   :  { %808 = vmatmul.mubr.bf16.vlgmr.msra.gmra.mrb[0].mxu0 %v5320_v0  ;;  %851 = vmatmul.mubr.bf16.vlgmr.msra.gmra.mrb[0].mxu1 %v5320_v0 }
  0x80   :  { %930 = vmatpush1.bf16.msra.mxu0 %v5431_v11  ;;  %973 = vmatpush1.bf16.msra.mxu1 %v5463_v16 }
  0x81   :  { %931 = vmatprep.subr.bf16.mxu0 %v5437_v12  ;;  %974 = vmatprep.subr.bf16.mxu1 %v5469_v17 }
  0x82   :  { %961 = vmatprep.mubr.bf16.mxu0 %v5320_v0  ;;  %1004 = vmatprep.mubr.bf16.mxu1 %v5320_v0 }
  0x84   :  { %932 = vmatpush1.bf16.msra.mxu0 %v5451_v14  ;;  %975 = vmatpush1.bf16.msra.mxu1 %v5491_v21 }
  0x85   :  { %933 = vmatprep.subr.bf16.mxu0 %v5458_v15  ;;  %976 = vmatprep.subr.bf16.mxu1 %v5496_v22 }
  0x88   :  { %934 = vmatpush1.bf16.msra.mxu0 %v5479_v19  ;;  %977 = vmatpush1.bf16.msra.mxu1 %v5517_v25 }
  0x89   :  { %935 = vmatprep.subr.bf16.mxu0 %v5485_v20  ;;  %978 = vmatprep.subr.bf16.mxu1 %v5524_v26 }
  0x8c   :  { %936 = vmatpush1.bf16.msra.mxu0 %v5505_v23  ;;  %979 = vmatpush1.bf16.msra.mxu1 %v5544_v30 }
  0x8d   :  { %937 = vmatprep.subr.bf16.mxu0 %v5510_v24  ;;  %980 = vmatprep.subr.bf16.mxu1 %v5551_v31 }
  0x90   :  { %938 = vmatpush1.bf16.msra.mxu0 %v5532_v28  ;;  %981 = vmatpush1.bf16.msra.mxu1 %v5572_v34 }
  0x91   :  { %939 = vmatprep.subr.bf16.mxu0 %v5537_v29  ;;  %982 = vmatprep.subr.bf16.mxu1 %v5579_v35 }
  0x94   :  { %940 = vmatpush1.bf16.msra.mxu0 %v5560_v32  ;;  %983 = vmatpush1.bf16.msra.mxu1 %v5594_v38 }
  0x95   :  { %941 = vmatprep.subr.bf16.mxu0 %v5567_v33  ;;  %984 = vmatprep.subr.bf16.mxu1 %v5606_v40 }
  0x98   :  { %942 = vmatpush1.bf16.msra.mxu0 %v5587_v37  ;;  %985 = vmatpush1.bf16.msra.mxu1 %v5618_v42 }
  0x99   :  { %943 = vmatprep.subr.bf16.mxu0 %v5601_v39  ;;  %986 = vmatprep.subr.bf16.mxu1 %v5625_v43 }
  0x9c   :  { %944 = vmatpush1.bf16.msra.mxu0 %v5613_v41  ;;  %987 = vmatpush1.bf16.msra.mxu1 %v5637_v45 }
  0x9d   :  { %1084 = vmatprep.subr.bf16.mxu0 %v5426_v10  ;;  %1127 = vmatprep.subr.bf16.mxu1 %v5442_v13 }
 0x152   :  { %v809_v56 = vpop.f32.mrb[0].mxu0  ;;  %v852_v57 = vpop.f32.mrb[0].mxu1 }
 0x153   :  { %v4243_v59 = vadd.f32 %v809_v56, %v5715_v54  ;;  %v811_v60 = vpop.f32.mrb[1].mxu0  ;;  %v854_v61 = vpop.f32.mrb[1].mxu1  ;;  %v4275_v46 = vadd.f32 %v852_v57, %v5733_v36 }
 0x154   :  { %v4244_v62 = vadd.f32 %v811_v60, %v5719_v55  ;;  %v813_v63 = vpop.f32.mrb[2].mxu0  ;;  %v856_v1 = vpop.f32.mrb[2].mxu1  ;;  %v4276_v44 = vadd.f32 %v854_v61, %v5728_v8 }
 0x155   :  { %v4079_v2 = vmul.f32 -1.442695, %v4243_v59  ;;  %v4245_v4 = vadd.f32 %v813_v63, %v5715_v54  ;;  %v815_v5 = vpop.f32.mrb[3].mxu0  ;;  %v858_v6 = vpop.f32.mrb[3].mxu1  ;;  %v4277_v49 = vadd.f32 %v856_v1, %v5733_v36 }
 0x156   :  { %v4081_v7 = vmul.f32 -1.442695, %v4244_v62  ;;  %v4246_v9 = vadd.f32 %v815_v5, %v5719_v55  ;;  %v4083_v47 = vmul.f32 -1.442695, %v4276_v44  ;;  %v4278_v48 = vadd.f32 %v858_v6, %v5728_v8 }
 0x157   :  { %4669 = vpow2.f32 %v4079_v2  ;;  %v4080_v18 = vmul.f32 -1.442695, %v4245_v4 }
 0x158   :  { %4671 = vpow2.f32 %v4081_v7  ;;  %v4082_v27 = vmul.f32 -1.442695, %v4246_v9  ;;  %v4084_v62 = vmul.f32 -1.442695, %v4278_v48 }
 0x159   :  { %4673 = vpow2.f32 %v4080_v18 }
 0x15a   :  { %4675 = vpow2.f32 %v4082_v27 }
 0x15b   :  { %4677 = vtanh.f32 %v4275_v46 }
 0x15c   :  { %4679 = vpow2.f32 %v4083_v47 }
 0x15d   :  { %4681 = vtanh.f32 %v4277_v49 }
 0x161   :  { %v4670_v56 = vpop.eup %4669 }
 0x162   :  { %v4672_v59 = vpop.eup %4671  ;;  %v875_v60 = vadd.f32 1.0, %v4670_v56 }
 0x163   :  { %v887_v63 = vadd.f32 1.0, %v4672_v59  ;;  %v4674_v52 = vpop.eup %4673 }
 0x164   :  { %4683 = vrcp.f32 %v875_v60  ;;  %v876_v61 = vadd.f32 1.0, %v4674_v52  ;;  %v4676_v2 = vpop.eup %4675 }
 0x165   :  { %4685 = vrcp.f32 %v887_v63  ;;  %v888_v57 = vadd.f32 1.0, %v4676_v2  ;;  %v4678_v4 = vpop.eup %4677 }
 0x166   :  { %4687 = vpow2.f32 %v4084_v62  ;;  %v4680_v5 = vpop.eup %4679 }
 0x167   :  { %4689 = vrcp.f32 %v876_v61  ;;  %v4682_v1 = vpop.eup %4681  ;;  %v901_v46 = vadd.f32 1.0, %v4680_v5 }
 0x168   :  { %4691 = vrcp.f32 %v888_v57 }
 0x169   :  { %4693 = vrcp.f32 %v901_v46 }
 0x16e   :  { %v4684_v6 = vpop.eup %4683 }
 0x16f   :  { %v4686_v7 = vpop.eup %4685  ;;  %v909_v9 = vmul.f32 %v4684_v6, %v4678_v4 }
 0x170   :  { %v4688_v18 = vpop.eup %4687  ;;  %v907_v27 = vmul.f32 0.0, %v4686_v7 }
 0x171   :  { %v4690_v44 = vpop.eup %4689  ;;  %v902_v56 = vadd.f32 1.0, %v4688_v18 }
 0x172   :  { %v5739_v47 = vadd.f32 %v909_v9, %v907_v27  ;;  %v910_v48 = vmul.f32 %v4690_v44, %v4682_v1  ;;  %v4692_v49 = vpop.eup %4691 }
 0x173   :  { %v908_v59 = vmul.f32 0.0, %v4692_v49  ;;  %v4694_v62 = vpop.eup %4693 }
 0x174   :  { %4695 = vtanh.f32 %v5739_v47 }
 0x175   :  { %v5742_v60 = vadd.f32 %v910_v48, %v908_v59  ;;  %4697 = vrcp.f32 %v902_v56 }
 0x177   :  { %4699 = vtanh.f32 %v5742_v60 }
 0x17e   :  { %v4696_v63 = vpop.eup %4695 }
 0x17f   :  { %v4698_v52 = vpop.eup %4697  ;;  %v915_v2 = vmul.f32 %v4696_v63, %v4694_v62 }
 0x181   :  { %v4700_v61 = vpop.eup %4699 }
 0x182   :  { %v916_v57 = vmul.f32 %v4700_v61, %v4698_v52 }
 0x184   :  { %v5745_v4 = vpack.c.bf16 %v916_v57, %v915_v2 }
 0x186   :  { %962 = vmatmul.mubr.bf16.vlgmr.msra.gmra.mrb[4].mxu0 %v5745_v4  ;;  %1005 = vmatmul.mubr.bf16.vlgmr.msra.gmra.mrb[4].mxu1 %v5745_v4 }
 0x187   :  { %1085 = vmatpush1.bf16.msra.mxu0 %v5431_v11  ;;  %1128 = vmatpush1.bf16.msra.mxu1 %v5463_v16 }
 0x188   :  { %1086 = vmatprep.subr.bf16.mxu0 %v5437_v12  ;;  %1129 = vmatprep.subr.bf16.mxu1 %v5469_v17 }
 0x189   :  { %1116 = vmatprep.mubr.bf16.mxu0 %v5320_v0  ;;  %1159 = vmatprep.mubr.bf16.mxu1 %v5320_v0 }
 0x18b   :  { %1087 = vmatpush1.bf16.msra.mxu0 %v5451_v14  ;;  %1130 = vmatpush1.bf16.msra.mxu1 %v5491_v21 }
 0x18c   :  { %1088 = vmatprep.subr.bf16.mxu0 %v5458_v15  ;;  %1131 = vmatprep.subr.bf16.mxu1 %v5496_v22 }
 0x18f   :  { %1089 = vmatpush1.bf16.msra.mxu0 %v5479_v19  ;;  %1132 = vmatpush1.bf16.msra.mxu1 %v5517_v25 }
 0x190   :  { %1090 = vmatprep.subr.bf16.mxu0 %v5485_v20  ;;  %1133 = vmatprep.subr.bf16.mxu1 %v5524_v26 }
 0x193   :  { %1091 = vmatpush1.bf16.msra.mxu0 %v5505_v23  ;;  %1134 = vmatpush1.bf16.msra.mxu1 %v5544_v30 }
 0x194   :  { %1092 = vmatprep.subr.bf16.mxu0 %v5510_v24  ;;  %1135 = vmatprep.subr.bf16.mxu1 %v5551_v31 }
 0x197   :  { %1093 = vmatpush1.bf16.msra.mxu0 %v5532_v28  ;;  %1136 = vmatpush1.bf16.msra.mxu1 %v5572_v34 }
 0x198   :  { %1094 = vmatprep.subr.bf16.mxu0 %v5537_v29  ;;  %1137 = vmatprep.subr.bf16.mxu1 %v5579_v35 }
 0x19b   :  { %1095 = vmatpush1.bf16.msra.mxu0 %v5560_v32  ;;  %1138 = vmatpush1.bf16.msra.mxu1 %v5594_v38 }
 0x19c   :  { %1096 = vmatprep.subr.bf16.mxu0 %v5567_v33  ;;  %1139 = vmatprep.subr.bf16.mxu1 %v5606_v40 }
 0x19f   :  { %1097 = vmatpush1.bf16.msra.mxu0 %v5587_v37  ;;  %1140 = vmatpush1.bf16.msra.mxu1 %v5618_v42 }
 0x1a0   :  { %1098 = vmatprep.subr.bf16.mxu0 %v5601_v39  ;;  %1141 = vmatprep.subr.bf16.mxu1 %v5625_v43 }
 0x1a3   :  { %1099 = vmatpush1.bf16.msra.mxu0 %v5613_v41  ;;  %1142 = vmatpush1.bf16.msra.mxu1 %v5637_v45 }
 0x1a4   :  { %1239 = vmatprep.subr.bf16.mxu0 %v5426_v10  ;;  %1282 = vmatprep.subr.bf16.mxu1 %v5442_v13 }
 0x259   :  { %v963_v5 = vpop.f32.mrb[4].mxu0  ;;  %v1006_v1 = vpop.f32.mrb[4].mxu1 }
 0x25a   :  { %v4247_v6 = vadd.f32 %v963_v5, %v5715_v54  ;;  %v965_v7 = vpop.f32.mrb[5].mxu0  ;;  %v1008_v9 = vpop.f32.mrb[5].mxu1  ;;  %v4279_v2 = vadd.f32 %v1006_v1, %v5733_v36 }
 0x25b   :  { %v4248_v18 = vadd.f32 %v965_v7, %v5719_v55  ;;  %v967_v27 = vpop.f32.mrb[6].mxu0  ;;  %v1010_v44 = vpop.f32.mrb[6].mxu1  ;;  %v4280_v61 = vadd.f32 %v1008_v9, %v5728_v8 }
 0x25c   :  { %v4085_v46 = vmul.f32 -1.442695, %v4247_v6  ;;  %v4249_v48 = vadd.f32 %v967_v27, %v5715_v54  ;;  %v969_v49 = vpop.f32.mrb[7].mxu0  ;;  %v1012_v56 = vpop.f32.mrb[7].mxu1  ;;  %v4281_v6 = vadd.f32 %v1010_v44, %v5733_v36 }
 0x25d   :  { %v4087_v59 = vmul.f32 -1.442695, %v4248_v18  ;;  %v4250_v62 = vadd.f32 %v969_v49, %v5719_v55  ;;  %v4089_v57 = vmul.f32 -1.442695, %v4280_v61  ;;  %v4282_v5 = vadd.f32 %v1012_v56, %v5728_v8 }
 0x25e   :  { %4701 = vpow2.f32 %v4085_v46  ;;  %v4086_v63 = vmul.f32 -1.442695, %v4249_v48 }
 0x25f   :  { %4703 = vpow2.f32 %v4087_v59  ;;  %v4088_v52 = vmul.f32 -1.442695, %v4250_v62  ;;  %v4090_v46 = vmul.f32 -1.442695, %v4282_v5 }
 0x260   :  { %4705 = vpow2.f32 %v4086_v63 }
 0x261   :  { %4707 = vpow2.f32 %v4088_v52 }
 0x262   :  { %4709 = vtanh.f32 %v4279_v2 }
 0x263   :  { %4711 = vpow2.f32 %v4089_v57 }
 0x264   :  { %4713 = vtanh.f32 %v4281_v6 }
 0x268   :  { %v4702_v7 = vpop.eup %4701 }
 0x269   :  { %v4704_v18 = vpop.eup %4703  ;;  %v1029_v27 = vadd.f32 1.0, %v4702_v7 }
 0x26a   :  { %v1041_v48 = vadd.f32 1.0, %v4704_v18  ;;  %v4706_v49 = vpop.eup %4705 }
 0x26b   :  { %4715 = vrcp.f32 %v1029_v27  ;;  %v1030_v9 = vadd.f32 1.0, %v4706_v49  ;;  %v4708_v59 = vpop.eup %4707 }
 0x26c   :  { %4717 = vrcp.f32 %v1041_v48  ;;  %v1042_v1 = vadd.f32 1.0, %v4708_v59  ;;  %v4710_v56 = vpop.eup %4709 }
 0x26d   :  { %4719 = vpow2.f32 %v4090_v46  ;;  %v4712_v62 = vpop.eup %4711 }
 0x26e   :  { %4721 = vrcp.f32 %v1030_v9  ;;  %v4714_v44 = vpop.eup %4713  ;;  %v1055_v6 = vadd.f32 1.0, %v4712_v62 }
 0x26f   :  { %4723 = vrcp.f32 %v1042_v1 }
 0x270   :  { %4725 = vrcp.f32 %v1055_v6 }
 0x275   :  { %v4716_v63 = vpop.eup %4715 }
 0x276   :  { %v4718_v52 = vpop.eup %4717  ;;  %v1063_v61 = vmul.f32 %v4716_v63, %v4710_v56 }
 0x277   :  { %v4720_v2 = vpop.eup %4719  ;;  %v1061_v57 = vmul.f32 %v4718_v52, %v5739_v47 }
 0x278   :  { %v4722_v5 = vpop.eup %4721  ;;  %v1056_v48 = vadd.f32 1.0, %v4720_v2 }
 0x279   :  { %v5792_v7 = vadd.f32 %v1063_v61, %v1061_v57  ;;  %v1064_v18 = vmul.f32 %v4722_v5, %v4714_v44  ;;  %v4724_v27 = vpop.eup %4723 }
 0x27a   :  { %v1062_v46 = vmul.f32 %v4724_v27, %v5742_v60  ;;  %v4726_v9 = vpop.eup %4725 }
 0x27b   :  { %4727 = vtanh.f32 %v5792_v7 }
 0x27c   :  { %v5796_v49 = vadd.f32 %v1064_v18, %v1062_v46  ;;  %4729 = vrcp.f32 %v1056_v48 }
 0x27e   :  { %4731 = vtanh.f32 %v5796_v49 }
 0x285   :  { %v4728_v59 = vpop.eup %4727 }
 0x286   :  { %v4730_v47 = vpop.eup %4729  ;;  %v1069_v56 = vmul.f32 %v4728_v59, %v4726_v9 }
 0x288   :  { %v4732_v1 = vpop.eup %4731 }
 0x289   :  { %v1070_v62 = vmul.f32 %v4732_v1, %v4730_v47 }
 0x28b   :  { %v5799_v63 = vpack.c.bf16 %v1070_v62, %v1069_v56 }
 0x28d   :  { %1117 = vmatmul.mubr.bf16.vlgmr.msra.gmra.mrb[8].mxu0 %v5799_v63  ;;  %1160 = vmatmul.mubr.bf16.vlgmr.msra.gmra.mrb[8].mxu1 %v5799_v63 }
 0x28e   :  { %1240 = vmatpush1.bf16.msra.mxu0 %v5431_v11  ;;  %1283 = vmatpush1.bf16.msra.mxu1 %v5463_v16 }
 0x28f   :  { %1241 = vmatprep.subr.bf16.mxu0 %v5437_v12  ;;  %1284 = vmatprep.subr.bf16.mxu1 %v5469_v17 }
 0x290   :  { %1271 = vmatprep.mubr.bf16.mxu0 %v5320_v0  ;;  %1314 = vmatprep.mubr.bf16.mxu1 %v5320_v0 }
 0x292   :  { %1242 = vmatpush1.bf16.msra.mxu0 %v5451_v14  ;;  %1285 = vmatpush1.bf16.msra.mxu1 %v5491_v21 }
 0x293   :  { %1243 = vmatprep.subr.bf16.mxu0 %v5458_v15  ;;  %1286 = vmatprep.subr.bf16.mxu1 %v5496_v22 }
 0x296   :  { %1244 = vmatpush1.bf16.msra.mxu0 %v5479_v19  ;;  %1287 = vmatpush1.bf16.msra.mxu1 %v5517_v25 }
 0x297   :  { %1245 = vmatprep.subr.bf16.mxu0 %v5485_v20  ;;  %1288 = vmatprep.subr.bf16.mxu1 %v5524_v26 }
 0x29a   :  { %1246 = vmatpush1.bf16.msra.mxu0 %v5505_v23  ;;  %1289 = vmatpush1.bf16.msra.mxu1 %v5544_v30 }
 0x29b   :  { %1247 = vmatprep.subr.bf16.mxu0 %v5510_v24  ;;  %1290 = vmatprep.subr.bf16.mxu1 %v5551_v31 }
 0x29e   :  { %1248 = vmatpush1.bf16.msra.mxu0 %v5532_v28  ;;  %1291 = vmatpush1.bf16.msra.mxu1 %v5572_v34 }
 0x29f   :  { %1249 = vmatprep.subr.bf16.mxu0 %v5537_v29  ;;  %1292 = vmatprep.subr.bf16.mxu1 %v5579_v35 }
 0x2a2   :  { %1250 = vmatpush1.bf16.msra.mxu0 %v5560_v32  ;;  %1293 = vmatpush1.bf16.msra.mxu1 %v5594_v38 }
 0x2a3   :  { %1251 = vmatprep.subr.bf16.mxu0 %v5567_v33  ;;  %1294 = vmatprep.subr.bf16.mxu1 %v5606_v40 }
 0x2a6   :  { %1252 = vmatpush1.bf16.msra.mxu0 %v5587_v37  ;;  %1295 = vmatpush1.bf16.msra.mxu1 %v5618_v42 }
 0x2a7   :  { %1253 = vmatprep.subr.bf16.mxu0 %v5601_v39  ;;  %1296 = vmatprep.subr.bf16.mxu1 %v5625_v43 }
 0x2aa   :  { %1254 = vmatpush1.bf16.msra.mxu0 %v5613_v41  ;;  %1297 = vmatpush1.bf16.msra.mxu1 %v5637_v45 }
 0x2ab   :  { %1394 = vmatprep.subr.bf16.mxu0 %v5426_v10  ;;  %1437 = vmatprep.subr.bf16.mxu1 %v5442_v13 }
 0x360   :  { %v1118_v11 = vpop.f32.mrb[8].mxu0  ;;  %v1161_v12 = vpop.f32.mrb[8].mxu1 }
 0x361   :  { %v4251_v14 = vadd.f32 %v1118_v11, %v5715_v54  ;;  %v1120_v15 = vpop.f32.mrb[9].mxu0  ;;  %v1163_v16 = vpop.f32.mrb[9].mxu1  ;;  %v4283_v6 = vadd.f32 %v1161_v12, %v5733_v36 }
 0x362   :  { %v4252_v17 = vadd.f32 %v1120_v15, %v5719_v55  ;;  %v1122_v19 = vpop.f32.mrb[10].mxu0  ;;  %v1165_v20 = vpop.f32.mrb[10].mxu1  ;;  %v4284_v5 = vadd.f32 %v1163_v16, %v5728_v8 }
 0x363   :  { %v4091_v60 = vmul.f32 -1.442695, %v4251_v14  ;;  %v4253_v44 = vadd.f32 %v1122_v19, %v5715_v54  ;;  %v1124_v52 = vpop.f32.mrb[11].mxu0  ;;  %v1167_v61 = vpop.f32.mrb[11].mxu1  ;;  %v4285_v48 = vadd.f32 %v1165_v20, %v5733_v36 }
 0x364   :  { %v4093_v2 = vmul.f32 -1.442695, %v4252_v17  ;;  %v4254_v10 = vadd.f32 %v1124_v52, %v5719_v55  ;;  %v4095_v18 = vmul.f32 -1.442695, %v4284_v5  ;;  %v4286_v27 = vadd.f32 %v1167_v61, %v5728_v8 }
 0x365   :  { %4733 = vpow2.f32 %v4091_v60  ;;  %v4092_v13 = vmul.f32 -1.442695, %v4253_v44 }
 0x366   :  { %4735 = vpow2.f32 %v4093_v2  ;;  %v4094_v57 = vmul.f32 -1.442695, %v4254_v10  ;;  %v4096_v47 = vmul.f32 -1.442695, %v4286_v27 }
 0x367   :  { %4737 = vpow2.f32 %v4092_v13 }
 0x368   :  { %4739 = vpow2.f32 %v4094_v57 }
 0x369   :  { %4741 = vtanh.f32 %v4283_v6 }
 0x36a   :  { %4743 = vpow2.f32 %v4095_v18 }
 0x36b   :  { %4745 = vtanh.f32 %v4285_v48 }
 0x36f   :  { %v4734_v46 = vpop.eup %4733 }
 0x370   :  { %v4736_v9 = vpop.eup %4735  ;;  %v1184_v59 = vadd.f32 1.0, %v4734_v46 }
 0x371   :  { %v1196_v1 = vadd.f32 1.0, %v4736_v9  ;;  %v4738_v56 = vpop.eup %4737 }
 0x372   :  { %4747 = vrcp.f32 %v1184_v59  ;;  %v1185_v62 = vadd.f32 1.0, %v4738_v56  ;;  %v4740_v11 = vpop.eup %4739  ;;  %v5878_v56 = vld [vmem:[%s6838_s2 + $0x2c] ss:$16 sps:$4 sm:$0xff]  }
 0x373   :  { %4749 = vrcp.f32 %v1196_v1  ;;  %v1197_v12 = vadd.f32 1.0, %v4740_v11  ;;  %v4742_v14 = vpop.eup %4741  ;;  %v5872_v1 = vld [vmem:[%s6838_s2 + $0x24] ss:$16 sps:$4 sm:$0xff]  }
 0x374   :  { %4751 = vpow2.f32 %v4096_v47  ;;  %v4744_v15 = vpop.eup %4743  ;;  %v5866_v47 = vld [vmem:[%s6838_s2 + $0x8] ss:$16 sps:$4 sm:$0xff]   ;;  %v5893_v11 = vld [vmem:[%s6838_s2 + $0x44] ss:$16 sps:$4 sm:$0xff]  }
 0x375   :  { %4753 = vrcp.f32 %v1185_v62  ;;  %v4746_v16 = vpop.eup %4745  ;;  %v1210_v61 = vadd.f32 1.0, %v4744_v15  ;;  %v5886_v62 = vld [vmem:[%s6838_s2 + $0x20] ss:$16 sps:$4 sm:$0xff]  }
 0x376   :  { %4755 = vrcp.f32 %v1197_v12  ;;  %v5900_v12 = vld [vmem:[%s6838_s2 + $0x40] ss:$16 sps:$4 sm:$0xff]  }
 0x377   :  { %4757 = vrcp.f32 %v1210_v61 }
 0x37c   :  { %v4748_v17 = vpop.eup %4747 }
 0x37d   :  { %v4750_v19 = vpop.eup %4749  ;;  %v1218_v20 = vmul.f32 %v4748_v17, %v4742_v14 }
 0x37e   :  { %v4752_v60 = vpop.eup %4751  ;;  %v1216_v44 = vmul.f32 %v4750_v19, %v5792_v7 }
 0x37f   :  { %v4754_v52 = vpop.eup %4753  ;;  %v1211_v57 = vadd.f32 1.0, %v4752_v60 }
 0x380   :  { %v5846_v2 = vadd.f32 %v1218_v20, %v1216_v44  ;;  %v1219_v10 = vmul.f32 %v4754_v52, %v4746_v16  ;;  %v4756_v13 = vpop.eup %4755 }
 0x381   :  { %v1217_v5 = vmul.f32 %v4756_v13, %v5796_v49  ;;  %v4758_v18 = vpop.eup %4757  ;;  %v5860_v49 = vld [vmem:[%s6838_s2] ss:$16 sps:$4 sm:$0xff]  }
 0x382   :  { %4759 = vtanh.f32 %v5846_v2 }
 0x383   :  { %v5850_v6 = vadd.f32 %v1219_v10, %v1217_v5  ;;  %4761 = vrcp.f32 %v1211_v57 }
 0x385   :  { %4763 = vtanh.f32 %v5850_v6 }
 0x38c   :  { %v4760_v27 = vpop.eup %4759 }
 0x38d   :  { %v4762_v7 = vpop.eup %4761  ;;  %v1224_v46 = vmul.f32 %v4760_v27, %v4758_v18 }
 0x38f   :  { %v4764_v48 = vpop.eup %4763 }
 0x390   :  { %v1225_v9 = vmul.f32 %v4764_v48, %v4762_v7 }
 0x392   :  { %v5853_v59 = vpack.c.bf16 %v1225_v9, %v1224_v46 }
 0x394   :  { %1272 = vmatmul.mubr.bf16.vlgmr.msra.gmra.mrb[12].mxu0 %v5853_v59  ;;  %1315 = vmatmul.mubr.bf16.vlgmr.msra.gmra.mrb[12].mxu1 %v5853_v59 }
 0x395   :  { %1395 = vmatpush1.bf16.msra.mxu0 %v5860_v49  ;;  %1438 = vmatpush1.bf16.msra.mxu1 %v5866_v47 }
 0x396   :  { %1396 = vmatprep.subr.bf16.mxu0 %v5872_v1  ;;  %1439 = vmatprep.subr.bf16.mxu1 %v5878_v56 }
 0x397   :  { %1426 = vmatprep.mubr.bf16.mxu0 %v5320_v0  ;;  %1469 = vmatprep.mubr.bf16.mxu1 %v5320_v0 }
 0x399   :  { %1397 = vmatpush1.bf16.msra.mxu0 %v5886_v62  ;;  %1440 = vmatpush1.bf16.msra.mxu1 %v5491_v21  ;;  %v5907_v21 = vld [vmem:[%s6838_s2 + $0x64] ss:$16 sps:$4 sm:$0xff]  }
 0x39a   :  { %1398 = vmatprep.subr.bf16.mxu0 %v5893_v11  ;;  %1441 = vmatprep.subr.bf16.mxu1 %v5496_v22  ;;  %v5932_v22 = vld [vmem:[%s6838_s2 + $0x4] ss:$16 sps:$4 sm:$0xff]  }
 0x39d   :  { %1399 = vmatpush1.bf16.msra.mxu0 %v5900_v12  ;;  %1442 = vmatpush1.bf16.msra.mxu1 %v5517_v25 }
 0x39e   :  { %1400 = vmatprep.subr.bf16.mxu0 %v5907_v21  ;;  %1443 = vmatprep.subr.bf16.mxu1 %v5524_v26 }
 0x3a1   :  { %1401 = vmatpush1.bf16.msra.mxu0 %v5505_v23  ;;  %1444 = vmatpush1.bf16.msra.mxu1 %v5544_v30  ;;  %v5938_v23 = vld [vmem:[%s6838_s2 + $0xc] ss:$16 sps:$4 sm:$0xff]  }
 0x3a2   :  { %1402 = vmatprep.subr.bf16.mxu0 %v5510_v24  ;;  %1445 = vmatprep.subr.bf16.mxu1 %v5551_v31 }
 0x3a5   :  { %1403 = vmatpush1.bf16.msra.mxu0 %v5532_v28  ;;  %1446 = vmatpush1.bf16.msra.mxu1 %v5572_v34 }
 0x3a6   :  { %1404 = vmatprep.subr.bf16.mxu0 %v5537_v29  ;;  %1447 = vmatprep.subr.bf16.mxu1 %v5579_v35 }
 0x3a9   :  { %1405 = vmatpush1.bf16.msra.mxu0 %v5560_v32  ;;  %1448 = vmatpush1.bf16.msra.mxu1 %v5594_v38 }
 0x3aa   :  { %1406 = vmatprep.subr.bf16.mxu0 %v5567_v33  ;;  %1449 = vmatprep.subr.bf16.mxu1 %v5606_v40 }
 0x3ad   :  { %1407 = vmatpush1.bf16.msra.mxu0 %v5587_v37  ;;  %1450 = vmatpush1.bf16.msra.mxu1 %v5618_v42 }
 0x3ae   :  { %1408 = vmatprep.subr.bf16.mxu0 %v5601_v39  ;;  %1451 = vmatprep.subr.bf16.mxu1 %v5625_v43 }
 0x3b1   :  { %1409 = vmatpush1.bf16.msra.mxu0 %v5613_v41  ;;  %1452 = vmatpush1.bf16.msra.mxu1 %v5637_v45 }
 0x3b2   :  { %1549 = vmatprep.subr.bf16.mxu0 %v5932_v22  ;;  %1592 = vmatprep.subr.bf16.mxu1 %v5938_v23 }
 0x467   :  { %v1273_v24 = vpop.f32.mrb[12].mxu0  ;;  %v1316_v25 = vpop.f32.mrb[12].mxu1 }
 0x468   :  { %v4255_v26 = vadd.f32 %v1273_v24, %v5715_v54  ;;  %v1275_v28 = vpop.f32.mrb[13].mxu0  ;;  %v1318_v29 = vpop.f32.mrb[13].mxu1  ;;  %v4287_v43 = vadd.f32 %v1316_v25, %v5733_v36 }
 0x469   :  { %v4256_v30 = vadd.f32 %v1275_v28, %v5719_v55  ;;  %v1277_v31 = vpop.f32.mrb[14].mxu0  ;;  %v1320_v32 = vpop.f32.mrb[14].mxu1  ;;  %v4288_v42 = vadd.f32 %v1318_v29, %v5728_v8 }
 0x46a   :  { %v4097_v33 = vmul.f32 -1.442695, %v4255_v26  ;;  %v4257_v34 = vadd.f32 %v1277_v31, %v5715_v54  ;;  %v1279_v35 = vpop.f32.mrb[15].mxu0  ;;  %v1322_v37 = vpop.f32.mrb[15].mxu1  ;;  %v4289_v15 = vadd.f32 %v1320_v32, %v5733_v36 }
 0x46b   :  { %v4099_v38 = vmul.f32 -1.442695, %v4256_v30  ;;  %v4258_v39 = vadd.f32 %v1279_v35, %v5719_v55  ;;  %v4101_v45 = vmul.f32 -1.442695, %v4288_v42  ;;  %v4290_v14 = vadd.f32 %v1322_v37, %v5728_v8  ;;  %v5998_v42 = vld [vmem:[%s6838_s2 + $0x60] ss:$16 sps:$4 sm:$0xff]  }
 0x46c   :  { %4765 = vpow2.f32 %v4097_v33  ;;  %v4098_v40 = vmul.f32 -1.442695, %v4257_v34 }
 0x46d   :  { %4767 = vpow2.f32 %v4099_v38  ;;  %v4100_v41 = vmul.f32 -1.442695, %v4258_v39  ;;  %v4102_v20 = vmul.f32 -1.442695, %v4290_v14  ;;  %v5978_v39 = vld [vmem:[%s6838_s2 + $0x4c] ss:$16 sps:$4 sm:$0xff]  }
 0x46e   :  { %4769 = vpow2.f32 %v4098_v40  ;;  %v5985_v40 = vld [vmem:[%s6838_s2 + $0x48] ss:$16 sps:$4 sm:$0xff]   ;;  %v6016_v14 = vld [vmem:[%s6838_s2 + $0x8c] ss:$16 sps:$4 sm:$0xff]  }
 0x46f   :  { %4771 = vpow2.f32 %v4100_v41  ;;  %v5992_v41 = vld [vmem:[%s6838_s2 + $0x6c] ss:$16 sps:$4 sm:$0xff]  }
 0x470   :  { %4773 = vtanh.f32 %v4287_v43  ;;  %v6004_v43 = vld [vmem:[%s6838_s2 + $0x68] ss:$16 sps:$4 sm:$0xff]  }
 0x471   :  { %4775 = vpow2.f32 %v4101_v45  ;;  %v6010_v45 = vld [vmem:[%s6838_s2 + $0x84] ss:$16 sps:$4 sm:$0xff]  }
 0x472   :  { %4777 = vtanh.f32 %v4289_v15  ;;  %v6022_v15 = vld [vmem:[%s6838_s2 + $0x80] ss:$16 sps:$4 sm:$0xff]  }
 0x476   :  { %v4766_v16 = vpop.eup %4765 }
 0x477   :  { %v4768_v17 = vpop.eup %4767  ;;  %v1339_v19 = vadd.f32 1.0, %v4766_v16  ;;  %v6028_v16 = vld [vmem:[%s6838_s2 + $0x88] ss:$16 sps:$4 sm:$0xff]  }
 0x478   :  { %v1351_v60 = vadd.f32 1.0, %v4768_v17  ;;  %v4770_v44 = vpop.eup %4769  ;;  %v6034_v17 = vld [vmem:[%s6838_s2 + $0xa4] ss:$16 sps:$4 sm:$0xff]  }
 0x479   :  { %4779 = vrcp.f32 %v1339_v19  ;;  %v1340_v52 = vadd.f32 1.0, %v4770_v44  ;;  %v4772_v61 = vpop.eup %4771  ;;  %v6040_v19 = vld [vmem:[%s6838_s2 + $0xac] ss:$16 sps:$4 sm:$0xff]   ;;  %v6058_v44 = vld [vmem:[%s6838_s2 + $0xc4] ss:$16 sps:$4 sm:$0xff]  }
 0x47a   :  { %4781 = vrcp.f32 %v1351_v60  ;;  %v1352_v10 = vadd.f32 1.0, %v4772_v61  ;;  %v4774_v13 = vpop.eup %4773  ;;  %v6052_v60 = vld [vmem:[%s6838_s2 + $0xa8] ss:$16 sps:$4 sm:$0xff]   ;;  %v6070_v61 = vld [vmem:[%s6838_s2 + $0xc0] ss:$16 sps:$4 sm:$0xff]  }
 0x47b   :  { %4783 = vpow2.f32 %v4102_v20  ;;  %v4776_v57 = vpop.eup %4775  ;;  %v6046_v20 = vld [vmem:[%s6838_s2 + $0xa0] ss:$16 sps:$4 sm:$0xff]  }
 0x47c   :  { %4785 = vrcp.f32 %v1340_v52  ;;  %v4778_v5 = vpop.eup %4777  ;;  %v1365_v24 = vadd.f32 1.0, %v4776_v57  ;;  %v6064_v52 = vld [vmem:[%s6838_s2 + $0xcc] ss:$16 sps:$4 sm:$0xff]  }
 0x47d   :  { %4787 = vrcp.f32 %v1352_v10  ;;  %v6076_v10 = vld [vmem:[%s6838_s2 + $0xc8] ss:$16 sps:$4 sm:$0xff]   ;;  %v6088_v57 = vld [vmem:[%s6838_s2 + $0xec] ss:$16 sps:$4 sm:$0xff]  }
 0x47e   :  { %4789 = vrcp.f32 %v1365_v24 }
 0x483   :  { %v4780_v18 = vpop.eup %4779 }
 0x484   :  { %v4782_v27 = vpop.eup %4781  ;;  %v1373_v7 = vmul.f32 %v4780_v18, %v4774_v13  ;;  %v6082_v13 = vld [vmem:[%s6838_s2 + $0xe4] ss:$16 sps:$4 sm:$0xff]   ;;  %v6100_v18 = vld [vmem:[%s6838_s2 + $0xe8] ss:$16 sps:$4 sm:$0xff]  }
 0x485   :  { %v4784_v48 = vpop.eup %4783  ;;  %v1371_v46 = vmul.f32 %v4782_v27, %v5846_v2 }
 0x486   :  { %v4786_v9 = vpop.eup %4785  ;;  %v1366_v29 = vadd.f32 1.0, %v4784_v48 }
 0x487   :  { %v5950_v25 = vadd.f32 %v1373_v7, %v1371_v46  ;;  %v1374_v26 = vmul.f32 %v4786_v9, %v4778_v5  ;;  %v4788_v28 = vpop.eup %4787  ;;  %v6094_v5 = vld [vmem:[%s6838_s2 + $0xe0] ss:$16 sps:$4 sm:$0xff]  }
 0x488   :  { %v1372_v30 = vmul.f32 %v4788_v28, %v5850_v6  ;;  %v4790_v32 = vpop.eup %4789  ;;  %v5971_v6 = vld [vmem:[%s6838_s2 + $0x28] ss:$16 sps:$4 sm:$0xff]  }
 0x489   :  { %4791 = vtanh.f32 %v5950_v25 }
 0x48a   :  { %v5954_v31 = vadd.f32 %v1374_v26, %v1372_v30  ;;  %4793 = vrcp.f32 %v1366_v29 }
 0x48c   :  { %4795 = vtanh.f32 %v5954_v31 }
 0x493   :  { %v4792_v33 = vpop.eup %4791 }
 0x494   :  { %v4794_v2 = vpop.eup %4793  ;;  %v1379_v35 = vmul.f32 %v4792_v33, %v4790_v32 }
 0x496   :  { %v4796_v34 = vpop.eup %4795 }
 0x497   :  { %v1380_v37 = vmul.f32 %v4796_v34, %v4794_v2 }
 0x499   :  { %v5957_v38 = vpack.c.bf16 %v1380_v37, %v1379_v35 }
 0x49b   :  { %1427 = vmatmul.mubr.bf16.vlgmr.msra.gmra.mrb[16].mxu0 %v5957_v38  ;;  %1470 = vmatmul.mubr.bf16.vlgmr.msra.gmra.mrb[16].mxu1 %v5957_v38 }
 0x49c   :  { %1550 = vmatpush1.bf16.msra.mxu0 %v5860_v49  ;;  %1593 = vmatpush1.bf16.msra.mxu1 %v5866_v47 }
 0x49d   :  { %1551 = vmatprep.subr.bf16.mxu0 %v5872_v1  ;;  %1594 = vmatprep.subr.bf16.mxu1 %v5878_v56 }
 0x49e   :  { %1581 = vmatprep.mubr.bf16.mxu0 %v5320_v0  ;;  %1624 = vmatprep.mubr.bf16.mxu1 %v5320_v0 }
 0x4a0   :  { %1552 = vmatpush1.bf16.msra.mxu0 %v5886_v62  ;;  %1595 = vmatpush1.bf16.msra.mxu1 %v5971_v6 }
 0x4a1   :  { %1553 = vmatprep.subr.bf16.mxu0 %v5893_v11  ;;  %1596 = vmatprep.subr.bf16.mxu1 %v5978_v39 }
 0x4a4   :  { %1554 = vmatpush1.bf16.msra.mxu0 %v5900_v12  ;;  %1597 = vmatpush1.bf16.msra.mxu1 %v5985_v40 }
 0x4a5   :  { %1555 = vmatprep.subr.bf16.mxu0 %v5907_v21  ;;  %1598 = vmatprep.subr.bf16.mxu1 %v5992_v41 }
 0x4a8   :  { %1556 = vmatpush1.bf16.msra.mxu0 %v5998_v42  ;;  %1599 = vmatpush1.bf16.msra.mxu1 %v6004_v43 }
 0x4a9   :  { %1557 = vmatprep.subr.bf16.mxu0 %v6010_v45  ;;  %1600 = vmatprep.subr.bf16.mxu1 %v6016_v14 }
 0x4ac   :  { %1558 = vmatpush1.bf16.msra.mxu0 %v6022_v15  ;;  %1601 = vmatpush1.bf16.msra.mxu1 %v6028_v16 }
 0x4ad   :  { %1559 = vmatprep.subr.bf16.mxu0 %v6034_v17  ;;  %1602 = vmatprep.subr.bf16.mxu1 %v6040_v19 }
 0x4b0   :  { %1560 = vmatpush1.bf16.msra.mxu0 %v6046_v20  ;;  %1603 = vmatpush1.bf16.msra.mxu1 %v6052_v60 }
 0x4b1   :  { %1561 = vmatprep.subr.bf16.mxu0 %v6058_v44  ;;  %1604 = vmatprep.subr.bf16.mxu1 %v6064_v52 }
 0x4b4   :  { %1562 = vmatpush1.bf16.msra.mxu0 %v6070_v61  ;;  %1605 = vmatpush1.bf16.msra.mxu1 %v6076_v10 }
 0x4b5   :  { %1563 = vmatprep.subr.bf16.mxu0 %v6082_v13  ;;  %1606 = vmatprep.subr.bf16.mxu1 %v6088_v57 }
 0x4b8   :  { %1564 = vmatpush1.bf16.msra.mxu0 %v6094_v5  ;;  %1607 = vmatpush1.bf16.msra.mxu1 %v6100_v18 }
 0x4b9   :  { %1704 = vmatprep.subr.bf16.mxu0 %v5932_v22  ;;  %1747 = vmatprep.subr.bf16.mxu1 %v5938_v23 }
 0x56e   :  { %v1428_v27 = vpop.f32.mrb[16].mxu0  ;;  %v1471_v7 = vpop.f32.mrb[16].mxu1 }
 0x56f   :  { %v4259_v48 = vadd.f32 %v1428_v27, %v5715_v54  ;;  %v1430_v46 = vpop.f32.mrb[17].mxu0  ;;  %v1473_v9 = vpop.f32.mrb[17].mxu1 }
 0x570   :  { %v4260_v24 = vadd.f32 %v1430_v46, %v5719_v55  ;;  %v1432_v26 = vpop.f32.mrb[18].mxu0  ;;  %v1475_v28 = vpop.f32.mrb[18].mxu1  ;;  %v4292_v27 = vadd.f32 %v1473_v9, %v5728_v8  ;;  %v4291_v46 = vadd.f32 %v1471_v7, %v5733_v36 }
 0x571   :  { %v4103_v29 = vmul.f32 -1.442695, %v4259_v48  ;;  %v4261_v30 = vadd.f32 %v1432_v26, %v5715_v54  ;;  %v1434_v32 = vpop.f32.mrb[19].mxu0  ;;  %v1477_v33 = vpop.f32.mrb[19].mxu1  ;;  %v4293_v26 = vadd.f32 %v1475_v28, %v5733_v36 }
 0x572   :  { %v4105_v2 = vmul.f32 -1.442695, %v4260_v24  ;;  %v4262_v34 = vadd.f32 %v1434_v32, %v5719_v55  ;;  %v4107_v3 = vmul.f32 -1.442695, %v4292_v27  ;;  %v4294_v48 = vadd.f32 %v1477_v33, %v5728_v8 }
 0x573   :  { %4797 = vpow2.f32 %v4103_v29  ;;  %v4104_v35 = vmul.f32 -1.442695, %v4261_v30 }
 0x574   :  { %4799 = vpow2.f32 %v4105_v2  ;;  %v4106_v37 = vmul.f32 -1.442695, %v4262_v34  ;;  %v4108_v29 = vmul.f32 -1.442695, %v4294_v48 }
 0x575   :  { %4801 = vpow2.f32 %v4104_v35 }
 0x576   :  { %4803 = vpow2.f32 %v4106_v37 }
 0x577   :  { %4805 = vtanh.f32 %v4291_v46 }
 0x578   :  { %4807 = vpow2.f32 %v4107_v3 }
 0x579   :  { %4809 = vtanh.f32 %v4293_v26 }
 0x57d   :  { %v4798_v58 = vpop.eup %4797 }
 0x57e   :  { %v4800_v24 = vpop.eup %4799  ;;  %v1494_v53 = vadd.f32 1.0, %v4798_v58 }
 0x57f   :  { %v1506_v30 = vadd.f32 1.0, %v4800_v24  ;;  %v4802_v32 = vpop.eup %4801 }
 0x580   :  { %4811 = vrcp.f32 %v1494_v53  ;;  %v1495_v9 = vadd.f32 1.0, %v4802_v32  ;;  %v4804_v2 = vpop.eup %4803 }
 0x581   :  { %4813 = vrcp.f32 %v1506_v30  ;;  %v1507_v7 = vadd.f32 1.0, %v4804_v2  ;;  %v4806_v33 = vpop.eup %4805 }
 0x582   :  { %4815 = vpow2.f32 %v4108_v29  ;;  %v4808_v34 = vpop.eup %4807 }
 0x583   :  { %4817 = vrcp.f32 %v1495_v9  ;;  %v4810_v28 = vpop.eup %4809  ;;  %v1520_v48 = vadd.f32 1.0, %v4808_v34 }
 0x584   :  { %4819 = vrcp.f32 %v1507_v7 }
 0x585   :  { %4821 = vrcp.f32 %v1520_v48 }
 0x58a   :  { %v4812_v35 = vpop.eup %4811 }
 0x58b   :  { %v4814_v37 = vpop.eup %4813  ;;  %v1528_v27 = vmul.f32 %v4812_v35, %v4806_v33 }
 0x58c   :  { %v4816_v58 = vpop.eup %4815  ;;  %v1526_v3 = vmul.f32 %v4814_v37, %v5950_v25 }
 0x58d   :  { %v4818_v46 = vpop.eup %4817  ;;  %v1521_v30 = vadd.f32 1.0, %v4816_v58 }
 0x58e   :  { %v6114_v26 = vadd.f32 %v1528_v27, %v1526_v3  ;;  %v1529_v53 = vmul.f32 %v4818_v46, %v4810_v28  ;;  %v4820_v24 = vpop.eup %4819 }
 0x58f   :  { %v1527_v29 = vmul.f32 %v4820_v24, %v5954_v31  ;;  %v4822_v9 = vpop.eup %4821 }
 0x590   :  { %4823 = vtanh.f32 %v6114_v26 }
 0x591   :  { %v6118_v32 = vadd.f32 %v1529_v53, %v1527_v29  ;;  %4825 = vrcp.f32 %v1521_v30 }
 0x593   :  { %4827 = vtanh.f32 %v6118_v32 }
 0x59a   :  { %v4824_v2 = vpop.eup %4823 }
 0x59b   :  { %v4826_v25 = vpop.eup %4825  ;;  %v1534_v33 = vmul.f32 %v4824_v2, %v4822_v9 }
 0x59d   :  { %v4828_v7 = vpop.eup %4827 }
 0x59e   :  { %v1535_v34 = vmul.f32 %v4828_v7, %v4826_v25 }
 0x5a0   :  { %v6121_v35 = vpack.c.bf16 %v1535_v34, %v1534_v33 }
 0x5a2   :  { %1582 = vmatmul.mubr.bf16.vlgmr.msra.gmra.mrb[20].mxu0 %v6121_v35  ;;  %1625 = vmatmul.mubr.bf16.vlgmr.msra.gmra.mrb[20].mxu1 %v6121_v35 }
 0x5a3   :  { %1705 = vmatpush1.bf16.msra.mxu0 %v5860_v49  ;;  %1748 = vmatpush1.bf16.msra.mxu1 %v5866_v47 }
 0x5a4   :  { %1706 = vmatprep.subr.bf16.mxu0 %v5872_v1  ;;  %1749 = vmatprep.subr.bf16.mxu1 %v5878_v56 }
 0x5a5   :  { %1736 = vmatprep.mubr.bf16.mxu0 %v5320_v0  ;;  %1779 = vmatprep.mubr.bf16.mxu1 %v5320_v0 }
 0x5a7   :  { %1707 = vmatpush1.bf16.msra.mxu0 %v5886_v62  ;;  %1750 = vmatpush1.bf16.msra.mxu1 %v5971_v6 }
 0x5a8   :  { %1708 = vmatprep.subr.bf16.mxu0 %v5893_v11  ;;  %1751 = vmatprep.subr.bf16.mxu1 %v5978_v39 }
 0x5ab   :  { %1709 = vmatpush1.bf16.msra.mxu0 %v5900_v12  ;;  %1752 = vmatpush1.bf16.msra.mxu1 %v5985_v40 }
 0x5ac   :  { %1710 = vmatprep.subr.bf16.mxu0 %v5907_v21  ;;  %1753 = vmatprep.subr.bf16.mxu1 %v5992_v41 }
 0x5af   :  { %1711 = vmatpush1.bf16.msra.mxu0 %v5998_v42  ;;  %1754 = vmatpush1.bf16.msra.mxu1 %v6004_v43 }
 0x5b0   :  { %1712 = vmatprep.subr.bf16.mxu0 %v6010_v45  ;;  %1755 = vmatprep.subr.bf16.mxu1 %v6016_v14 }
 0x5b3   :  { %1713 = vmatpush1.bf16.msra.mxu0 %v6022_v15  ;;  %1756 = vmatpush1.bf16.msra.mxu1 %v6028_v16 }
 0x5b4   :  { %1714 = vmatprep.subr.bf16.mxu0 %v6034_v17  ;;  %1757 = vmatprep.subr.bf16.mxu1 %v6040_v19 }
 0x5b7   :  { %1715 = vmatpush1.bf16.msra.mxu0 %v6046_v20  ;;  %1758 = vmatpush1.bf16.msra.mxu1 %v6052_v60 }
 0x5b8   :  { %1716 = vmatprep.subr.bf16.mxu0 %v6058_v44  ;;  %1759 = vmatprep.subr.bf16.mxu1 %v6064_v52 }
 0x5bb   :  { %1717 = vmatpush1.bf16.msra.mxu0 %v6070_v61  ;;  %1760 = vmatpush1.bf16.msra.mxu1 %v6076_v10 }
 0x5bc   :  { %1718 = vmatprep.subr.bf16.mxu0 %v6082_v13  ;;  %1761 = vmatprep.subr.bf16.mxu1 %v6088_v57 }
 0x5bf   :  { %1719 = vmatpush1.bf16.msra.mxu0 %v6094_v5  ;;  %1762 = vmatpush1.bf16.msra.mxu1 %v6100_v18 }
 0x5c0   :  { %1859 = vmatprep.subr.bf16.mxu0 %v5932_v22  ;;  %1902 = vmatprep.subr.bf16.mxu1 %v5938_v23 }
 0x675   :  { %v1583_v31 = vpop.f32.mrb[20].mxu0  ;;  %v1626_v28 = vpop.f32.mrb[20].mxu1 }
 0x676   :  { %v4263_v37 = vadd.f32 %v1583_v31, %v5715_v54  ;;  %v1585_v27 = vpop.f32.mrb[21].mxu0  ;;  %v1628_v58 = vpop.f32.mrb[21].mxu1  ;;  %v4295_v7 = vadd.f32 %v1626_v28, %v5733_v36 }
 0x677   :  { %v4264_v3 = vadd.f32 %v1585_v27, %v5719_v55  ;;  %v1587_v46 = vpop.f32.mrb[22].mxu0  ;;  %v1630_v48 = vpop.f32.mrb[22].mxu1  ;;  %v4296_v25 = vadd.f32 %v1628_v58, %v5728_v8 }
 0x678   :  { %v4109_v53 = vmul.f32 -1.442695, %v4263_v37  ;;  %v4265_v24 = vadd.f32 %v1587_v46, %v5715_v54  ;;  %v1589_v30 = vpop.f32.mrb[23].mxu0  ;;  %v1632_v29 = vpop.f32.mrb[23].mxu1  ;;  %v4297_v31 = vadd.f32 %v1630_v48, %v5733_v36 }
 0x679   :  { %v4111_v9 = vmul.f32 -1.442695, %v4264_v3  ;;  %v4266_v22 = vadd.f32 %v1589_v30, %v5719_v55  ;;  %v4113_v33 = vmul.f32 -1.442695, %v4296_v25  ;;  %v4298_v34 = vadd.f32 %v1632_v29, %v5728_v8 }
 0x67a   :  { %4829 = vpow2.f32 %v4109_v53  ;;  %v4110_v23 = vmul.f32 -1.442695, %v4265_v24 }
 0x67b   :  { %4831 = vpow2.f32 %v4111_v9  ;;  %v4112_v2 = vmul.f32 -1.442695, %v4266_v22  ;;  %v4114_v46 = vmul.f32 -1.442695, %v4298_v34 }
 0x67c   :  { %4833 = vpow2.f32 %v4110_v23 }
 0x67d   :  { %4835 = vpow2.f32 %v4112_v2 }
 0x67e   :  { %4837 = vtanh.f32 %v4295_v7 }
 0x67f   :  { %4839 = vpow2.f32 %v4113_v33 }
 0x680   :  { %4841 = vtanh.f32 %v4297_v31 }
 0x684   :  { %v4830_v37 = vpop.eup %4829 }
 0x685   :  { %v4832_v27 = vpop.eup %4831  ;;  %v1649_v3 = vadd.f32 1.0, %v4830_v37 }
 0x686   :  { %v1661_v53 = vadd.f32 1.0, %v4832_v27  ;;  %v4834_v24 = vpop.eup %4833 }
 0x687   :  { %4843 = vrcp.f32 %v1649_v3  ;;  %v1650_v58 = vadd.f32 1.0, %v4834_v24  ;;  %v4836_v30 = vpop.eup %4835 }
 0x688   :  { %4845 = vrcp.f32 %v1661_v53  ;;  %v1662_v28 = vadd.f32 1.0, %v4836_v30  ;;  %v4838_v29 = vpop.eup %4837 }
 0x689   :  { %4847 = vpow2.f32 %v4114_v46  ;;  %v4840_v9 = vpop.eup %4839 }
 0x68a   :  { %4849 = vrcp.f32 %v1650_v58  ;;  %v4842_v48 = vpop.eup %4841  ;;  %v1675_v34 = vadd.f32 1.0, %v4840_v9 }
 0x68b   :  { %4851 = vrcp.f32 %v1662_v28 }
 0x68c   :  { %4853 = vrcp.f32 %v1675_v34 }
 0x691   :  { %v4844_v22 = vpop.eup %4843 }
 0x692   :  { %v4846_v23 = vpop.eup %4845  ;;  %v1683_v2 = vmul.f32 %v4844_v22, %v4838_v29 }
 0x693   :  { %v4848_v25 = vpop.eup %4847  ;;  %v1681_v7 = vmul.f32 %v4846_v23, %v6114_v26 }
 0x694   :  { %v4850_v33 = vpop.eup %4849  ;;  %v1676_v3 = vadd.f32 1.0, %v4848_v25 }
 0x695   :  { %v6168_v31 = vadd.f32 %v1683_v2, %v1681_v7  ;;  %v1684_v37 = vmul.f32 %v4850_v33, %v4842_v48  ;;  %v4852_v27 = vpop.eup %4851 }
 0x696   :  { %v1682_v46 = vmul.f32 %v4852_v27, %v6118_v32  ;;  %v4854_v24 = vpop.eup %4853 }
 0x697   :  { %4855 = vtanh.f32 %v6168_v31 }
 0x698   :  { %v6172_v53 = vadd.f32 %v1684_v37, %v1682_v46  ;;  %4857 = vrcp.f32 %v1676_v3 }
 0x69a   :  { %4859 = vtanh.f32 %v6172_v53 }
 0x6a1   :  { %v4856_v58 = vpop.eup %4855 }
 0x6a2   :  { %v4858_v26 = vpop.eup %4857  ;;  %v1689_v28 = vmul.f32 %v4856_v58, %v4854_v24 }
 0x6a4   :  { %v4860_v30 = vpop.eup %4859 }
 0x6a5   :  { %v1690_v29 = vmul.f32 %v4860_v30, %v4858_v26 }
 0x6a7   :  { %v6175_v9 = vpack.c.bf16 %v1690_v29, %v1689_v28 }
 0x6a9   :  { %1737 = vmatmul.mubr.bf16.vlgmr.msra.gmra.mrb[24].mxu0 %v6175_v9  ;;  %1780 = vmatmul.mubr.bf16.vlgmr.msra.gmra.mrb[24].mxu1 %v6175_v9 }
 0x6aa   :  { %1860 = vmatpush1.bf16.msra.mxu0 %v5860_v49  ;;  %1903 = vmatpush1.bf16.msra.mxu1 %v5866_v47  ;;  %v4575_v49 = vld [vmem:[#allocation6 + $0x4] ss:$16 sps:$4 sm:$0xff]   ;;  %v4578_v47 = vld [vmem:[#allocation6 + $0xc] ss:$16 sps:$4 sm:$0xff]  }
 0x6ab   :  { %1861 = vmatprep.subr.bf16.mxu0 %v5872_v1  ;;  %1904 = vmatprep.subr.bf16.mxu1 %v5878_v56 }
 0x6ac   :  { %1891 = vmatprep.mubr.bf16.mxu0 %v5320_v0  ;;  %1934 = vmatprep.mubr.bf16.mxu1 %v5320_v0 }
 0x6ae   :  { %1862 = vmatpush1.bf16.msra.mxu0 %v5886_v62  ;;  %1905 = vmatpush1.bf16.msra.mxu1 %v5971_v6 }
 0x6af   :  { %1863 = vmatprep.subr.bf16.mxu0 %v5893_v11  ;;  %1906 = vmatprep.subr.bf16.mxu1 %v5978_v39 }
 0x6b2   :  { %1864 = vmatpush1.bf16.msra.mxu0 %v5900_v12  ;;  %1907 = vmatpush1.bf16.msra.mxu1 %v5985_v40 }
 0x6b3   :  { %1865 = vmatprep.subr.bf16.mxu0 %v5907_v21  ;;  %1908 = vmatprep.subr.bf16.mxu1 %v5992_v41 }
 0x6b6   :  { %1866 = vmatpush1.bf16.msra.mxu0 %v5998_v42  ;;  %1909 = vmatpush1.bf16.msra.mxu1 %v6004_v43 }
 0x6b7   :  { %1867 = vmatprep.subr.bf16.mxu0 %v6010_v45  ;;  %1910 = vmatprep.subr.bf16.mxu1 %v6016_v14 }
 0x6ba   :  { %1868 = vmatpush1.bf16.msra.mxu0 %v6022_v15  ;;  %1911 = vmatpush1.bf16.msra.mxu1 %v6028_v16 }
 0x6bb   :  { %1869 = vmatprep.subr.bf16.mxu0 %v6034_v17  ;;  %1912 = vmatprep.subr.bf16.mxu1 %v6040_v19 }
 0x6be   :  { %1870 = vmatpush1.bf16.msra.mxu0 %v6046_v20  ;;  %1913 = vmatpush1.bf16.msra.mxu1 %v6052_v60 }
 0x6bf   :  { %1871 = vmatprep.subr.bf16.mxu0 %v6058_v44  ;;  %1914 = vmatprep.subr.bf16.mxu1 %v6064_v52 }
 0x6c2   :  { %1872 = vmatpush1.bf16.msra.mxu0 %v6070_v61  ;;  %1915 = vmatpush1.bf16.msra.mxu1 %v6076_v10 }
 0x6c3   :  { %1873 = vmatprep.subr.bf16.mxu0 %v6082_v13  ;;  %1916 = vmatprep.subr.bf16.mxu1 %v6088_v57 }
 0x6c6   :  { %1874 = vmatpush1.bf16.msra.mxu0 %v6094_v5  ;;  %1917 = vmatpush1.bf16.msra.mxu1 %v6100_v18 }
 0x6c7   :  { %2224 = vmatprep.subr.bf16.mxu0 %v4575_v49  ;;  %2337 = vmatprep.subr.bf16.mxu1 %v4578_v47 }
 0x77c   :  { %v1738_v1 = vpop.f32.mrb[24].mxu0  ;;  %v1781_v56 = vpop.f32.mrb[24].mxu1 }
 0x77d   :  { %v4267_v62 = vadd.f32 %v1738_v1, %v5715_v54  ;;  %v1740_v11 = vpop.f32.mrb[25].mxu0  ;;  %v1783_v12 = vpop.f32.mrb[25].mxu1  ;;  %v4299_v19 = vadd.f32 %v1781_v56, %v5733_v36 }
 0x77e   :  { %v4268_v21 = vadd.f32 %v1740_v11, %v5719_v55  ;;  %v1742_v6 = vpop.f32.mrb[26].mxu0  ;;  %v1785_v39 = vpop.f32.mrb[26].mxu1  ;;  %v4300_v17 = vadd.f32 %v1783_v12, %v5728_v8  ;;  %v4576_v11 = vld [vmem:[#allocation6 + $0x8] ss:$16 sps:$4 sm:$0xff]  }
 0x77f   :  { %v4115_v40 = vmul.f32 -1.442695, %v4267_v62  ;;  %v4269_v41 = vadd.f32 %v1742_v6, %v5715_v54  ;;  %v1744_v42 = vpop.f32.mrb[27].mxu0  ;;  %v1787_v43 = vpop.f32.mrb[27].mxu1  ;;  %v4301_v44 = vadd.f32 %v1785_v39, %v5733_v36  ;;  %v4573_v62 = vld [vmem:[#allocation6] ss:$16 sps:$4 sm:$0xff]  }
 0x780   :  { %v4117_v45 = vmul.f32 -1.442695, %v4268_v21  ;;  %v4270_v14 = vadd.f32 %v1744_v42, %v5719_v55  ;;  %v4119_v20 = vmul.f32 -1.442695, %v4300_v17  ;;  %v4302_v60 = vadd.f32 %v1787_v43, %v5728_v8  ;;  %v4581_v21 = vld [vmem:[#allocation6 + $0x24] ss:$16 sps:$4 sm:$0xff]  }
 0x781   :  { %4861 = vpow2.f32 %v4115_v40  ;;  %v4116_v15 = vmul.f32 -1.442695, %v4269_v41  ;;  %v4579_v6 = vld [vmem:[#allocation6 + $0x20] ss:$16 sps:$4 sm:$0xff]   ;;  %v4582_v39 = vld [vmem:[#allocation6 + $0x28] ss:$16 sps:$4 sm:$0xff]  }
 0x782   :  { %4863 = vpow2.f32 %v4117_v45  ;;  %v4118_v16 = vmul.f32 -1.442695, %v4270_v14  ;;  %v4120_v13 = vmul.f32 -1.442695, %v4302_v60  ;;  %v4587_v40 = vld [vmem:[#allocation6 + $0x44] ss:$16 sps:$4 sm:$0xff]  }
 0x783   :  { %4865 = vpow2.f32 %v4116_v15  ;;  %v4590_v41 = vld [vmem:[#allocation6 + $0x4c] ss:$16 sps:$4 sm:$0xff]   ;;  %v4585_v42 = vld [vmem:[#allocation6 + $0x40] ss:$16 sps:$4 sm:$0xff]   ;;  %v4588_v43 = vld [vmem:[#allocation6 + $0x48] ss:$16 sps:$4 sm:$0xff]  }
 0x784   :  { %4867 = vpow2.f32 %v4118_v16  ;;  %v4593_v45 = vld [vmem:[#allocation6 + $0x64] ss:$16 sps:$4 sm:$0xff]   ;;  %v4596_v14 = vld [vmem:[#allocation6 + $0x6c] ss:$16 sps:$4 sm:$0xff]   ;;  %v4591_v15 = vld [vmem:[#allocation6 + $0x60] ss:$16 sps:$4 sm:$0xff]  }
 0x785   :  { %4869 = vtanh.f32 %v4299_v19  ;;  %v4594_v16 = vld [vmem:[#allocation6 + $0x68] ss:$16 sps:$4 sm:$0xff]   ;;  %v4599_v17 = vld [vmem:[#allocation6 + $0x84] ss:$16 sps:$4 sm:$0xff]   ;;  %v4602_v19 = vld [vmem:[#allocation6 + $0x8c] ss:$16 sps:$4 sm:$0xff]  }
 0x786   :  { %4871 = vpow2.f32 %v4119_v20  ;;  %v4597_v20 = vld [vmem:[#allocation6 + $0x80] ss:$16 sps:$4 sm:$0xff]   ;;  %v4600_v60 = vld [vmem:[#allocation6 + $0x88] ss:$16 sps:$4 sm:$0xff]  }
 0x787   :  { %4873 = vtanh.f32 %v4301_v44  ;;  %v4605_v44 = vld [vmem:[#allocation6 + $0xa4] ss:$16 sps:$4 sm:$0xff]  }
 0x78b   :  { %v4862_v52 = vpop.eup %4861 }
 0x78c   :  { %v4864_v61 = vpop.eup %4863  ;;  %v1804_v10 = vadd.f32 1.0, %v4862_v52  ;;  %v4608_v52 = vld [vmem:[#allocation6 + $0xac] ss:$16 sps:$4 sm:$0xff]  }
 0x78d   :  { %v1816_v57 = vadd.f32 1.0, %v4864_v61  ;;  %v4866_v5 = vpop.eup %4865  ;;  %v4603_v61 = vld [vmem:[#allocation6 + $0xa0] ss:$16 sps:$4 sm:$0xff]  }
 0x78e   :  { %4875 = vrcp.f32 %v1804_v10  ;;  %v1805_v18 = vadd.f32 1.0, %v4866_v5  ;;  %v4868_v32 = vpop.eup %4867  ;;  %v4606_v10 = vld [vmem:[#allocation6 + $0xa8] ss:$16 sps:$4 sm:$0xff]   ;;  %v4609_v5 = vld [vmem:[#allocation6 + $0xc0] ss:$16 sps:$4 sm:$0xff]  }
 0x78f   :  { %4877 = vrcp.f32 %v1816_v57  ;;  %v1817_v48 = vadd.f32 1.0, %v4868_v32  ;;  %v4870_v22 = vpop.eup %4869  ;;  %v4614_v57 = vld [vmem:[#allocation6 + $0xcc] ss:$16 sps:$4 sm:$0xff]   ;;  %v4617_v32 = vld [vmem:[#allocation6 + $0xe4] ss:$16 sps:$4 sm:$0xff]  }
 0x790   :  { %4879 = vpow2.f32 %v4120_v13  ;;  %v4872_v23 = vpop.eup %4871  ;;  %v4611_v13 = vld [vmem:[#allocation6 + $0xc4] ss:$16 sps:$4 sm:$0xff]  }
 0x791   :  { %4881 = vrcp.f32 %v1805_v18  ;;  %v4874_v2 = vpop.eup %4873  ;;  %v1830_v3 = vadd.f32 1.0, %v4872_v23  ;;  %v4612_v18 = vld [vmem:[#allocation6 + $0xc8] ss:$16 sps:$4 sm:$0xff]  }
 0x792   :  { %4883 = vrcp.f32 %v1817_v48  ;;  %v4620_v48 = vld [vmem:[#allocation6 + $0xec] ss:$16 sps:$4 sm:$0xff]   ;;  %v4618_v23 = vld [vmem:[#allocation6 + $0xe8] ss:$16 sps:$4 sm:$0xff]  }
 0x793   :  { %4885 = vrcp.f32 %v1830_v3  ;;  %v6298_v3 = vld [vmem:[#allocation8 + $0x60] ss:$16 sps:$4 sm:$0xff]  }
 0x798   :  { %v4876_v25 = vpop.eup %4875 }
 0x799   :  { %v4878_v7 = vpop.eup %4877  ;;  %v1838_v33 = vmul.f32 %v4876_v25, %v4870_v22  ;;  %v4615_v22 = vld [vmem:[#allocation6 + $0xe0] ss:$16 sps:$4 sm:$0xff]  }
 0x79a   :  { %v4880_v34 = vpop.eup %4879  ;;  %v1836_v37 = vmul.f32 %v4878_v7, %v6168_v31  ;;  %v6236_v25 = vld [vmem:[#allocation8] ss:$16 sps:$4 sm:$0xff]   ;;  %v6285_v7 = vld [vmem:[#allocation8 + $0x44] ss:$16 sps:$4 sm:$0xff]  }
 0x79b   :  { %v4882_v27 = vpop.eup %4881  ;;  %v1831_v26 = vadd.f32 1.0, %v4880_v34  ;;  %v6289_v34 = vld [vmem:[#allocation8 + $0x40] ss:$16 sps:$4 sm:$0xff]  }
 0x79c   :  { %v6220_v46 = vadd.f32 %v1838_v33, %v1836_v37  ;;  %v1839_v24 = vmul.f32 %v4882_v27, %v4874_v2  ;;  %v4884_v58 = vpop.eup %4883  ;;  %v6233_v2 = vld [vmem:[#allocation8 + $0x4] ss:$16 sps:$4 sm:$0xff]   ;;  %v6287_v33 = vld [vmem:[#allocation8 + $0x4c] ss:$16 sps:$4 sm:$0xff]   ;;  %v6295_v27 = vld [vmem:[#allocation8 + $0x48] ss:$16 sps:$4 sm:$0xff]  }
 0x79d   :  { %v1837_v30 = vmul.f32 %v4884_v58, %v6172_v53  ;;  %v4886_v29 = vpop.eup %4885  ;;  %v4584_v53 = vld [vmem:[#allocation6 + $0x2c] ss:$16 sps:$4 sm:$0xff]   ;;  %v6291_v37 = vld [vmem:[#allocation8 + $0x64] ss:$16 sps:$4 sm:$0xff]  }
 0x79e   :  { %4887 = vtanh.f32 %v6220_v46  ;;  %v6303_v58 = vld [vmem:[#allocation8 + $0x84] ss:$16 sps:$4 sm:$0xff]  }
 0x79f   :  { %v6224_v28 = vadd.f32 %v1839_v24, %v1837_v30  ;;  %4889 = vrcp.f32 %v1831_v26  ;;  %v6300_v24 = vld [vmem:[#allocation8 + $0x6c] ss:$16 sps:$4 sm:$0xff]   ;;  %v6306_v26 = vld [vmem:[#allocation8 + $0x68] ss:$16 sps:$4 sm:$0xff]  }
 0x7a0   :  { %v6309_v30 = vld [vmem:[#allocation8 + $0x8c] ss:$16 sps:$4 sm:$0xff]  }
 0x7a1   :  { %4891 = vtanh.f32 %v6224_v28 }
 0x7a8   :  { %v4888_v49 = vpop.eup %4887 }
 0x7a9   :  { %v4890_v31 = vpop.eup %4889  ;;  %v1844_v1 = vmul.f32 %v4888_v49, %v4886_v29  ;;  %v6312_v29 = vld [vmem:[#allocation8 + $0x80] ss:$16 sps:$4 sm:$0xff]   ;;  %v6315_v49 = vld [vmem:[#allocation8 + $0xa4] ss:$16 sps:$4 sm:$0xff]  }
 0x7ab   :  { %v4892_v47 = vpop.eup %4891 }
 0x7ac   :  { %v1845_v56 = vmul.f32 %v4892_v47, %v4890_v31  ;;  %v6318_v31 = vld [vmem:[#allocation8 + $0x88] ss:$16 sps:$4 sm:$0xff]   ;;  %v6321_v47 = vld [vmem:[#allocation8 + $0xac] ss:$16 sps:$4 sm:$0xff]  }
 0x7ae   :  { %v6227_v12 = vpack.c.bf16 %v1845_v56, %v1844_v1  ;;  %v6324_v1 = vld [vmem:[#allocation8 + $0xa0] ss:$16 sps:$4 sm:$0xff]   ;;  %v6327_v56 = vld [vmem:[#allocation8 + $0xc4] ss:$16 sps:$4 sm:$0xff]  }
 0x7b0   :  { %1892 = vmatmul.mubr.bf16.vlgmr.msra.gmra.mrb[28].mxu0 %v6227_v12  ;;  %1935 = vmatmul.mubr.bf16.vlgmr.msra.gmra.mrb[28].mxu1 %v6227_v12 }
 0x7b1   :  { %2225 = vmatpush1.bf16.msra.mxu0 %v4573_v62  ;;  %2338 = vmatpush1.bf16.msra.mxu1 %v4576_v11  ;;  %v6330_v62 = vld [vmem:[#allocation8 + $0xa8] ss:$16 sps:$4 sm:$0xff]   ;;  %v6334_v11 = vld [vmem:[#allocation8 + $0xc0] ss:$16 sps:$4 sm:$0xff]  }
 0x7b2   :  { %2226 = vmatprep.subr.bf16.mxu0 %v4581_v21  ;;  %2339 = vmatprep.subr.bf16.mxu1 %v4584_v53  ;;  %v6340_v21 = vld [vmem:[#allocation8 + $0xcc] ss:$16 sps:$4 sm:$0xff]   ;;  %v6342_v53 = vld [vmem:[#allocation8 + $0xc8] ss:$16 sps:$4 sm:$0xff]  }
 0x7b3   :  { %2256 = vmatprep.mubr.bf16.mxu0 %v5320_v0  ;;  %2369 = vmatprep.mubr.bf16.mxu1 %v5320_v0 }
 0x7b5   :  { %2227 = vmatpush1.bf16.msra.mxu0 %v4579_v6  ;;  %2340 = vmatpush1.bf16.msra.mxu1 %v4582_v39  ;;  %v6344_v6 = vld [vmem:[#allocation8 + $0xec] ss:$16 sps:$4 sm:$0xff]   ;;  %v6348_v39 = vld [vmem:[#allocation8 + $0xe0] ss:$16 sps:$4 sm:$0xff]  }
 0x7b6   :  { %2228 = vmatprep.subr.bf16.mxu0 %v4587_v40  ;;  %2341 = vmatprep.subr.bf16.mxu1 %v4590_v41  ;;  %v6352_v40 = vld [vmem:[#allocation8 + $0xe8] ss:$16 sps:$4 sm:$0xff]  }
 0x7b9   :  { %2229 = vmatpush1.bf16.msra.mxu0 %v4585_v42  ;;  %2342 = vmatpush1.bf16.msra.mxu1 %v4588_v43 }
 0x7ba   :  { %2230 = vmatprep.subr.bf16.mxu0 %v4593_v45  ;;  %2343 = vmatprep.subr.bf16.mxu1 %v4596_v14 }
 0x7bd   :  { %2231 = vmatpush1.bf16.msra.mxu0 %v4591_v15  ;;  %2344 = vmatpush1.bf16.msra.mxu1 %v4594_v16 }
 0x7be   :  { %2232 = vmatprep.subr.bf16.mxu0 %v4599_v17  ;;  %2345 = vmatprep.subr.bf16.mxu1 %v4602_v19 }
 0x7c1   :  { %2233 = vmatpush1.bf16.msra.mxu0 %v4597_v20  ;;  %2346 = vmatpush1.bf16.msra.mxu1 %v4600_v60 }
 0x7c2   :  { %2234 = vmatprep.subr.bf16.mxu0 %v4605_v44  ;;  %2347 = vmatprep.subr.bf16.mxu1 %v4608_v52 }
 0x7c5   :  { %2235 = vmatpush1.bf16.msra.mxu0 %v4603_v61  ;;  %2348 = vmatpush1.bf16.msra.mxu1 %v4606_v10 }
 0x7c6   :  { %2236 = vmatprep.subr.bf16.mxu0 %v4611_v13  ;;  %2349 = vmatprep.subr.bf16.mxu1 %v4614_v57 }
 0x7c9   :  { %2237 = vmatpush1.bf16.msra.mxu0 %v4609_v5  ;;  %2350 = vmatpush1.bf16.msra.mxu1 %v4612_v18 }
 0x7ca   :  { %2238 = vmatprep.subr.bf16.mxu0 %v4617_v32  ;;  %2351 = vmatprep.subr.bf16.mxu1 %v4620_v48 }
 0x7cd   :  { %2239 = vmatpush1.bf16.msra.mxu0 %v4615_v22  ;;  %2352 = vmatpush1.bf16.msra.mxu1 %v4618_v23 }
 0x7ce   :  { %2800 = vmatprep.subr.bf16.mxu0 %v6233_v2 }
 0x7d0   :  { %2257 = vmatmul.mubr.bf16.vlgmr.msra.gmra.mrb[32].mxu0 %v5745_v4  ;;  %2370 = vmatmul.mubr.bf16.vlgmr.msra.gmra.mrb[32].mxu1 %v5745_v4  ;;  %v6267_v4 = vld [vmem:[#allocation8 + $0xc] ss:$16 sps:$4 sm:$0xff]  }
 0x7d1   :  { %2266 = vmatprep.mubr.bf16.mxu0 %v5320_v0  ;;  %2379 = vmatprep.mubr.bf16.mxu1 %v5320_v0 }
 0x7d2   :  { %2801 = vmatpush1.bf16.msra.mxu0 %v6236_v25  ;;  %2843 = vmatprep.subr.bf16.mxu1 %v6267_v4 }
 0x7d8   :  { %2267 = vmatmul.mubr.bf16.gmra.mrb[36].mxu0 %v5799_v63  ;;  %2380 = vmatmul.mubr.bf16.gmra.mrb[36].mxu1 %v5799_v63  ;;  %v6269_v63 = vld [vmem:[#allocation8 + $0x8] ss:$16 sps:$4 sm:$0xff]  }
 0x7d9   :  { %2276 = vmatprep.mubr.bf16.mxu0 %v5320_v0  ;;  %2389 = vmatprep.mubr.bf16.mxu1 %v5320_v0 }
 0x7da   :  { %2844 = vmatpush1.bf16.msra.mxu1 %v6269_v63 }
 0x7e0   :  { %2277 = vmatmul.mubr.bf16.gmra.mrb[40].mxu0 %v5853_v59  ;;  %2390 = vmatmul.mubr.bf16.gmra.mrb[40].mxu1 %v5853_v59  ;;  %v6273_v59 = vld [vmem:[#allocation8 + $0x24] ss:$16 sps:$4 sm:$0xff]  }
 0x7e1   :  { %2286 = vmatprep.mubr.bf16.mxu0 %v5320_v0  ;;  %2399 = vmatprep.mubr.bf16.mxu1 %v5320_v0 }
 0x7e2   :  { %2802 = vmatprep.subr.bf16.mxu0 %v6273_v59 }
 0x7e8   :  { %2287 = vmatmul.mubr.bf16.gmra.mrb[44].mxu0 %v5957_v38  ;;  %2400 = vmatmul.mubr.bf16.gmra.mrb[44].mxu1 %v5957_v38  ;;  %v6275_v38 = vld [vmem:[#allocation8 + $0x2c] ss:$16 sps:$4 sm:$0xff]  }
 0x7e9   :  { %2296 = vmatprep.mubr.bf16.mxu0 %v5320_v0  ;;  %2409 = vmatprep.mubr.bf16.mxu1 %v5320_v0 }
 0x7ea   :  { %2845 = vmatprep.subr.bf16.mxu1 %v6275_v38 }
 0x7f0   :  { %2297 = vmatmul.mubr.bf16.gmra.mrb[48].mxu0 %v6121_v35  ;;  %2410 = vmatmul.mubr.bf16.gmra.mrb[48].mxu1 %v6121_v35  ;;  %v6277_v35 = vld [vmem:[#allocation8 + $0x20] ss:$16 sps:$4 sm:$0xff]  }
 0x7f1   :  { %2306 = vmatprep.mubr.bf16.mxu0 %v5320_v0  ;;  %2419 = vmatprep.mubr.bf16.mxu1 %v5320_v0 }
 0x7f2   :  { %2803 = vmatpush1.bf16.msra.mxu0 %v6277_v35 }
 0x7f3   :  { %2804 = vmatprep.subr.bf16.mxu0 %v6285_v7 }
 0x7f6   :  { %2805 = vmatpush1.bf16.msra.mxu0 %v6289_v34 }
 0x7f7   :  { %2806 = vmatprep.subr.bf16.mxu0 %v6291_v37 }
 0x7f8   :  { %2307 = vmatmul.mubr.bf16.gmra.mrb[52].mxu0 %v6175_v9  ;;  %2420 = vmatmul.mubr.bf16.gmra.mrb[52].mxu1 %v6175_v9  ;;  %v6279_v9 = vld [vmem:[#allocation8 + $0x28] ss:$16 sps:$4 sm:$0xff]  }
 0x7f9   :  { %2316 = vmatprep.mubr.bf16.mxu0 %v5320_v0  ;;  %2429 = vmatprep.mubr.bf16.mxu1 %v5320_v0 }
 0x7fa   :  { %2846 = vmatpush1.bf16.msra.mxu1 %v6279_v9  ;;  %2807 = vmatpush1.bf16.msra.mxu0 %v6298_v3 }
 0x7fb   :  { %2847 = vmatprep.subr.bf16.mxu1 %v6287_v33  ;;  %2808 = vmatprep.subr.bf16.mxu0 %v6303_v58 }
 0x7fe   :  { %2848 = vmatpush1.bf16.msra.mxu1 %v6295_v27  ;;  %2809 = vmatpush1.bf16.msra.mxu0 %v6312_v29 }
 0x7ff   :  { %2849 = vmatprep.subr.bf16.mxu1 %v6300_v24  ;;  %2810 = vmatprep.subr.bf16.mxu0 %v6315_v49 }
 0x800   :  { %2317 = vmatmul.mubr.bf16.gmra.mrb[56].mxu0 %v6227_v12  ;;  %2430 = vmatmul.mubr.bf16.gmra.mrb[56].mxu1 %v6227_v12  ;;  %v6338_v12 = vld [vmem:[#allocation8 + $0xe4] ss:$16 sps:$4 sm:$0xff]  }
 0x801   :  { %2326 = vmatprep.mubr.bf16.mxu0 %v5320_v0  ;;  %2439 = vmatprep.mubr.bf16.mxu1 %v5320_v0 }
 0x802   :  { %2850 = vmatpush1.bf16.msra.mxu1 %v6306_v26  ;;  %2811 = vmatpush1.bf16.msra.mxu0 %v6324_v1 }
 0x803   :  { %2851 = vmatprep.subr.bf16.mxu1 %v6309_v30  ;;  %2812 = vmatprep.subr.bf16.mxu0 %v6327_v56 }
 0x806   :  { %2852 = vmatpush1.bf16.msra.mxu1 %v6318_v31  ;;  %2813 = vmatpush1.bf16.msra.mxu0 %v6334_v11 }
 0x807   :  { %2853 = vmatprep.subr.bf16.mxu1 %v6321_v47  ;;  %2814 = vmatprep.subr.bf16.mxu0 %v6338_v12 }
 0x80a   :  { %2854 = vmatpush1.bf16.msra.mxu1 %v6330_v62  ;;  %2815 = vmatpush1.bf16.msra.mxu0 %v6348_v39 }
 0x80b   :  { %2855 = vmatprep.subr.bf16.mxu1 %v6340_v21  ;;  %2951 = vmatprep.subr.bf16.mxu0 %v6233_v2 }
 0x80e   :  { %2856 = vmatpush1.bf16.msra.mxu1 %v6342_v53 }
 0x80f   :  { %2857 = vmatprep.subr.bf16.mxu1 %v6344_v6 }
 0x812   :  { %2858 = vmatpush1.bf16.msra.mxu1 %v6352_v40 }
 0x813   :  { %2994 = vmatprep.subr.bf16.mxu1 %v6267_v4 }
 0x883   :  { %v1893_v41 = vpop.f32.mrb[28].mxu0  ;;  %v1936_v42 = vpop.f32.mrb[28].mxu1 }
 0x884   :  { %v4271_v43 = vadd.f32 %v1893_v41, %v5715_v54  ;;  %v1895_v45 = vpop.f32.mrb[29].mxu0  ;;  %v1938_v14 = vpop.f32.mrb[29].mxu1  ;;  %v4303_v5 = vadd.f32 %v1936_v42, %v5733_v36 }
 0x885   :  { %v4272_v15 = vadd.f32 %v1895_v45, %v5719_v55  ;;  %v1897_v16 = vpop.f32.mrb[30].mxu0  ;;  %v1940_v17 = vpop.f32.mrb[30].mxu1  ;;  %v4304_v57 = vadd.f32 %v1938_v14, %v5728_v8 }
 0x886   :  { %v4121_v19 = vmul.f32 -1.442695, %v4271_v43  ;;  %v4273_v20 = vadd.f32 %v1897_v16, %v5715_v54  ;;  %v1899_v60 = vpop.f32.mrb[31].mxu0  ;;  %v1942_v44 = vpop.f32.mrb[31].mxu1  ;;  %v4305_v54 = vadd.f32 %v1940_v17, %v5733_v36 }
 0x887   :  { %v4123_v52 = vmul.f32 -1.442695, %v4272_v15  ;;  %v4274_v61 = vadd.f32 %v1899_v60, %v5719_v55  ;;  %v4125_v18 = vmul.f32 -1.442695, %v4304_v57  ;;  %v4306_v32 = vadd.f32 %v1942_v44, %v5728_v8 }
 0x888   :  { %4893 = vpow2.f32 %v4121_v19  ;;  %v4122_v10 = vmul.f32 -1.442695, %v4273_v20 }
 0x889   :  { %4895 = vpow2.f32 %v4123_v52  ;;  %v4124_v13 = vmul.f32 -1.442695, %v4274_v61  ;;  %v4126_v55 = vmul.f32 -1.442695, %v4306_v32 }
 0x88a   :  { %4897 = vpow2.f32 %v4122_v10 }
 0x88b   :  { %4899 = vpow2.f32 %v4124_v13 }
 0x88c   :  { %4901 = vtanh.f32 %v4303_v5 }
 0x88d   :  { %4903 = vpow2.f32 %v4125_v18 }
 0x88e   :  { %4905 = vtanh.f32 %v4305_v54 }
 0x892   :  { %v4894_v48 = vpop.eup %4893 }
 0x893   :  { %v4896_v22 = vpop.eup %4895  ;;  %v1959_v23 = vadd.f32 1.0, %v4894_v48 }
 0x894   :  { %v1971_v41 = vadd.f32 1.0, %v4896_v22  ;;  %v4898_v43 = vpop.eup %4897 }
 0x895   :  { %4907 = vrcp.f32 %v1959_v23  ;;  %v1960_v45 = vadd.f32 1.0, %v4898_v43  ;;  %v4900_v14 = vpop.eup %4899  ;;  %v6848_v43 = vsub.s32 1, %v5706_v50 }
 0x896   :  { %4909 = vrcp.f32 %v1971_v41  ;;  %v1972_v42 = vadd.f32 1.0, %v4900_v14  ;;  %v4902_v8 = vpop.eup %4901 }
 0x897   :  { %4911 = vpow2.f32 %v4126_v55  ;;  %v4904_v15 = vpop.eup %4903  ;;  %v2450_v55 = vld [vmem:[%s6842_s6] sm:$0xf] }
 0x898   :  { %4913 = vrcp.f32 %v1960_v45  ;;  %v4906_v36 = vpop.eup %4905  ;;  %v1985_v20 = vadd.f32 1.0, %v4904_v15  ;;  %v6424_v41 = vrot.slane %v2450_v55, %v429_v51  ;;  %v6428_v45 = vrot.slane %v2450_v55, %v6848_v43 }
 0x899   :  { %4915 = vrcp.f32 %v1972_v42 }
 0x89a   :  { %4917 = vrcp.f32 %v1985_v20 }
 0x89f   :  { %v4908_v16 = vpop.eup %4907 }
 0x8a0   :  { %v4910_v17 = vpop.eup %4909  ;;  %v1993_v19 = vmul.f32 %v4908_v16, %v4902_v8 }
 0x8a1   :  { %v4912_v60 = vpop.eup %4911  ;;  %v1991_v44 = vmul.f32 %v4910_v17, %v6220_v46 }
 0x8a2   :  { %v4914_v52 = vpop.eup %4913  ;;  %v1986_v57 = vadd.f32 1.0, %v4912_v60 }
 0x8a3   :  { %v1995_v61 = vadd.f32 %v1993_v19, %v1991_v44  ;;  %v1994_v10 = vmul.f32 %v4914_v52, %v4906_v36  ;;  %v4916_v13 = vpop.eup %4915 }
 0x8a4   :  { %v1992_v5 = vmul.f32 %v4916_v13, %v6224_v28  ;;  %v4918_v46 = vpop.eup %4917 }
 0x8a5   :  { %2006 = vst [vmem:[%s6844_s8] sm:$0xff] %v1995_v61  ;;  %4919 = vtanh.f32 %v1995_v61  ;;  %v6849_v61 = vsub.s32 3, %v5706_v50 }
 0x8a6   :  { %v1996_v18 = vadd.f32 %v1994_v10, %v1992_v5  ;;  %4921 = vrcp.f32 %v1986_v57 }
 0x8a7   :  { %v6435_v10 = vrot.slane %v2450_v55, %v6849_v61 }
 0x8a8   :  { %2007 = vst [vmem:[%s6844_s8 + $0x8] sm:$0xff] %v1996_v18  ;;  %4923 = vtanh.f32 %v1996_v18  ;;  %v6850_v18 = vsub.s32 2, %v5706_v50 }
 0x8af   :  { %v4920_v32 = vpop.eup %4919 }
 0x8b0   :  { %v1999_v54 = vmul.f32 %v4920_v32, %v4918_v46  ;;  %v4922_v48 = vpop.eup %4921  ;;  %v6440_v46 = vrot.slane %v2450_v55, %v6850_v18 }
 0x8b2   :  { %2004 = vst [vmem:[%s6843_s7] sm:$0xff] %v1999_v54  ;;  %v4924_v22 = vpop.eup %4923 }
 0x8b3   :  { %v2000_v23 = vmul.f32 %v4924_v22, %v4922_v48 }
 0x8b5   :  { %2005 = vst [vmem:[%s6843_s7 + $0x8] sm:$0xff] %v2000_v23  ;;  %v2031_v28 = vpack.c.bf16 %v2000_v23, %v1999_v54 }
 0x8b7   :  { %2327 = vmatmul.mubr.bf16.gmra.mrb[60].mxu0 %v2031_v28  ;;  %2440 = vmatmul.mubr.bf16.gmra.mrb[60].mxu1 %v2031_v28 }
 0x8b8   :  { %2832 = vmatprep.mubr.bf16.mxu0 %v5320_v0  ;;  %2875 = vmatprep.mubr.bf16.mxu1 %v5320_v0 }
 0x8bf   :  { %2833 = vmatmul.mubr.bf16.vlgmr.msra.gmra.mrb[32].mxu0 %v5320_v0  ;;  %2876 = vmatmul.mubr.bf16.vlgmr.msra.gmra.mrb[32].mxu1 %v5320_v0 }
 0x8c0   :  { %2952 = vmatpush1.bf16.msra.mxu0 %v6236_v25  ;;  %2995 = vmatpush1.bf16.msra.mxu1 %v6269_v63 }
 0x8c1   :  { %2953 = vmatprep.subr.bf16.mxu0 %v6273_v59  ;;  %2996 = vmatprep.subr.bf16.mxu1 %v6275_v38 }
 0x8c2   :  { %2983 = vmatprep.mubr.bf16.mxu0 %v5320_v0  ;;  %3026 = vmatprep.mubr.bf16.mxu1 %v5320_v0 }
 0x8c4   :  { %2954 = vmatpush1.bf16.msra.mxu0 %v6277_v35  ;;  %2997 = vmatpush1.bf16.msra.mxu1 %v6279_v9 }
 0x8c5   :  { %2955 = vmatprep.subr.bf16.mxu0 %v6285_v7  ;;  %2998 = vmatprep.subr.bf16.mxu1 %v6287_v33 }
 0x8c8   :  { %2956 = vmatpush1.bf16.msra.mxu0 %v6289_v34  ;;  %2999 = vmatpush1.bf16.msra.mxu1 %v6295_v27 }
 0x8c9   :  { %2957 = vmatprep.subr.bf16.mxu0 %v6291_v37  ;;  %3000 = vmatprep.subr.bf16.mxu1 %v6300_v24 }
 0x8cc   :  { %2958 = vmatpush1.bf16.msra.mxu0 %v6298_v3  ;;  %3001 = vmatpush1.bf16.msra.mxu1 %v6306_v26 }
 0x8cd   :  { %2959 = vmatprep.subr.bf16.mxu0 %v6303_v58  ;;  %3002 = vmatprep.subr.bf16.mxu1 %v6309_v30 }
 0x8d0   :  { %2960 = vmatpush1.bf16.msra.mxu0 %v6312_v29  ;;  %3003 = vmatpush1.bf16.msra.mxu1 %v6318_v31 }
 0x8d1   :  { %2961 = vmatprep.subr.bf16.mxu0 %v6315_v49  ;;  %3004 = vmatprep.subr.bf16.mxu1 %v6321_v47 }
 0x8d4   :  { %2962 = vmatpush1.bf16.msra.mxu0 %v6324_v1  ;;  %3005 = vmatpush1.bf16.msra.mxu1 %v6330_v62 }
 0x8d5   :  { %2963 = vmatprep.subr.bf16.mxu0 %v6327_v56  ;;  %3006 = vmatprep.subr.bf16.mxu1 %v6340_v21 }
 0x8d8   :  { %2964 = vmatpush1.bf16.msra.mxu0 %v6334_v11  ;;  %3007 = vmatpush1.bf16.msra.mxu1 %v6342_v53 }
 0x8d9   :  { %2965 = vmatprep.subr.bf16.mxu0 %v6338_v12  ;;  %3008 = vmatprep.subr.bf16.mxu1 %v6344_v6 }
 0x8dc   :  { %2966 = vmatpush1.bf16.msra.mxu0 %v6348_v39  ;;  %3009 = vmatpush1.bf16.msra.mxu1 %v6352_v40 }
 0x8dd   :  { %3102 = vmatprep.subr.bf16.mxu0 %v6233_v2  ;;  %3145 = vmatprep.subr.bf16.mxu1 %v6267_v4 }
 0x992   :  { %v2834_v14 = vpop.f32.mrb[32].mxu0  ;;  %v2877_v42 = vpop.f32.mrb[32].mxu1 }
 0x993   :  { %v4307_v8 = vadd.f32 %v2834_v14, %v6424_v41  ;;  %v2836_v15 = vpop.f32.mrb[33].mxu0  ;;  %v2879_v36 = vpop.f32.mrb[33].mxu1  ;;  %v4339_v54 = vadd.f32 %v2877_v42, %v6440_v46 }
 0x994   :  { %v4308_v16 = vadd.f32 %v2836_v15, %v6428_v45  ;;  %v2838_v17 = vpop.f32.mrb[34].mxu0  ;;  %v2881_v19 = vpop.f32.mrb[34].mxu1  ;;  %v4340_v32 = vadd.f32 %v2879_v36, %v6435_v10 }
 0x995   :  { %v4191_v20 = vmul.f32 -1.442695, %v4307_v8  ;;  %v4309_v60 = vadd.f32 %v2838_v17, %v6424_v41  ;;  %v2840_v44 = vpop.f32.mrb[35].mxu0  ;;  %v2883_v51 = vpop.f32.mrb[35].mxu1  ;;  %v4341_v23 = vadd.f32 %v2881_v19, %v6440_v46 }
 0x996   :  { %v4193_v52 = vmul.f32 -1.442695, %v4308_v16  ;;  %v4310_v13 = vadd.f32 %v2840_v44, %v6428_v45  ;;  %v4195_v48 = vmul.f32 -1.442695, %v4340_v32  ;;  %v4342_v22 = vadd.f32 %v2883_v51, %v6435_v10 }
 0x997   :  { %4925 = vpow2.f32 %v4191_v20  ;;  %v4192_v57 = vmul.f32 -1.442695, %v4309_v60 }
 0x998   :  { %4927 = vpow2.f32 %v4193_v52  ;;  %v4194_v5 = vmul.f32 -1.442695, %v4310_v13  ;;  %v4196_v8 = vmul.f32 -1.442695, %v4342_v22 }
 0x999   :  { %4929 = vpow2.f32 %v4192_v57 }
 0x99a   :  { %4931 = vpow2.f32 %v4194_v5 }
 0x99b   :  { %4933 = vtanh.f32 %v4339_v54 }
 0x99c   :  { %4935 = vpow2.f32 %v4195_v48 }
 0x99d   :  { %4937 = vtanh.f32 %v4341_v23 }
 0x9a1   :  { %v4926_v28 = vpop.eup %4925 }
 0x9a2   :  { %v4928_v43 = vpop.eup %4927  ;;  %v2900_v14 = vadd.f32 1.0, %v4926_v28 }
 0x9a3   :  { %v2912_v50 = vadd.f32 1.0, %v4928_v43  ;;  %v4930_v55 = vpop.eup %4929 }
 0x9a4   :  { %4939 = vrcp.f32 %v2900_v14  ;;  %v2901_v15 = vadd.f32 1.0, %v4930_v55  ;;  %v4932_v36 = vpop.eup %4931 }
 0x9a5   :  { %4941 = vrcp.f32 %v2912_v50  ;;  %v2913_v42 = vadd.f32 1.0, %v4932_v36  ;;  %v4934_v16 = vpop.eup %4933 }
 0x9a6   :  { %4943 = vpow2.f32 %v4196_v8  ;;  %v4936_v17 = vpop.eup %4935 }
 0x9a7   :  { %4945 = vrcp.f32 %v2901_v15  ;;  %v4938_v19 = vpop.eup %4937  ;;  %v2926_v13 = vadd.f32 1.0, %v4936_v17 }
 0x9a8   :  { %4947 = vrcp.f32 %v2913_v42 }
 0x9a9   :  { %4949 = vrcp.f32 %v2926_v13 }
 0x9ae   :  { %v4940_v20 = vpop.eup %4939 }
 0x9af   :  { %v4942_v60 = vpop.eup %4941  ;;  %v2934_v44 = vmul.f32 %v4940_v20, %v4934_v16 }
 0x9b0   :  { %v4944_v51 = vpop.eup %4943  ;;  %v2932_v52 = vmul.f32 0.0, %v4942_v60 }
 0x9b1   :  { %v4946_v61 = vpop.eup %4945  ;;  %v2927_v32 = vadd.f32 1.0, %v4944_v51 }
 0x9b2   :  { %v6446_v57 = vadd.f32 %v2934_v44, %v2932_v52  ;;  %v2935_v5 = vmul.f32 %v4946_v61, %v4938_v19  ;;  %v4948_v18 = vpop.eup %4947 }
 0x9b3   :  { %v2933_v54 = vmul.f32 0.0, %v4948_v18  ;;  %v4950_v22 = vpop.eup %4949 }
 0x9b4   :  { %4951 = vtanh.f32 %v6446_v57 }
 0x9b5   :  { %v6449_v48 = vadd.f32 %v2935_v5, %v2933_v54  ;;  %4953 = vrcp.f32 %v2927_v32 }
 0x9b7   :  { %4955 = vtanh.f32 %v6449_v48 }
 0x9be   :  { %v4952_v23 = vpop.eup %4951 }
 0x9bf   :  { %v4954_v28 = vpop.eup %4953  ;;  %v2940_v14 = vmul.f32 %v4952_v23, %v4950_v22 }
 0x9c1   :  { %v4956_v43 = vpop.eup %4955 }
 0x9c2   :  { %v2941_v8 = vmul.f32 %v4956_v43, %v4954_v28 }
 0x9c4   :  { %v2950_v50 = vpack.c.bf16 %v2941_v8, %v2940_v14 }
 0x9c6   :  { %2984 = vmatmul.mubr.bf16.vlgmr.msra.gmra.mrb[36].mxu0 %v2950_v50  ;;  %3027 = vmatmul.mubr.bf16.vlgmr.msra.gmra.mrb[36].mxu1 %v2950_v50 }
 0x9c7   :  { %3103 = vmatpush1.bf16.msra.mxu0 %v6236_v25  ;;  %3146 = vmatpush1.bf16.msra.mxu1 %v6269_v63 }
 0x9c8   :  { %3104 = vmatprep.subr.bf16.mxu0 %v6273_v59  ;;  %3147 = vmatprep.subr.bf16.mxu1 %v6275_v38 }
 0x9c9   :  { %3134 = vmatprep.mubr.bf16.mxu0 %v5320_v0  ;;  %3177 = vmatprep.mubr.bf16.mxu1 %v5320_v0 }
 0x9cb   :  { %3105 = vmatpush1.bf16.msra.mxu0 %v6277_v35  ;;  %3148 = vmatpush1.bf16.msra.mxu1 %v6279_v9 }
 0x9cc   :  { %3106 = vmatprep.subr.bf16.mxu0 %v6285_v7  ;;  %3149 = vmatprep.subr.bf16.mxu1 %v6287_v33 }
 0x9cf   :  { %3107 = vmatpush1.bf16.msra.mxu0 %v6289_v34  ;;  %3150 = vmatpush1.bf16.msra.mxu1 %v6295_v27 }
 0x9d0   :  { %3108 = vmatprep.subr.bf16.mxu0 %v6291_v37  ;;  %3151 = vmatprep.subr.bf16.mxu1 %v6300_v24 }
 0x9d3   :  { %3109 = vmatpush1.bf16.msra.mxu0 %v6298_v3  ;;  %3152 = vmatpush1.bf16.msra.mxu1 %v6306_v26 }
 0x9d4   :  { %3110 = vmatprep.subr.bf16.mxu0 %v6303_v58  ;;  %3153 = vmatprep.subr.bf16.mxu1 %v6309_v30 }
 0x9d7   :  { %3111 = vmatpush1.bf16.msra.mxu0 %v6312_v29  ;;  %3154 = vmatpush1.bf16.msra.mxu1 %v6318_v31 }
 0x9d8   :  { %3112 = vmatprep.subr.bf16.mxu0 %v6315_v49  ;;  %3155 = vmatprep.subr.bf16.mxu1 %v6321_v47 }
 0x9db   :  { %3113 = vmatpush1.bf16.msra.mxu0 %v6324_v1  ;;  %3156 = vmatpush1.bf16.msra.mxu1 %v6330_v62 }
 0x9dc   :  { %3114 = vmatprep.subr.bf16.mxu0 %v6327_v56  ;;  %3157 = vmatprep.subr.bf16.mxu1 %v6340_v21 }
 0x9df   :  { %3115 = vmatpush1.bf16.msra.mxu0 %v6334_v11  ;;  %3158 = vmatpush1.bf16.msra.mxu1 %v6342_v53 }
 0x9e0   :  { %3116 = vmatprep.subr.bf16.mxu0 %v6338_v12  ;;  %3159 = vmatprep.subr.bf16.mxu1 %v6344_v6 }
 0x9e3   :  { %3117 = vmatpush1.bf16.msra.mxu0 %v6348_v39  ;;  %3160 = vmatpush1.bf16.msra.mxu1 %v6352_v40 }
 0x9e4   :  { %3253 = vmatprep.subr.bf16.mxu0 %v6233_v2  ;;  %3296 = vmatprep.subr.bf16.mxu1 %v6267_v4 }
 0xa99   :  { %v2985_v55 = vpop.f32.mrb[36].mxu0  ;;  %v3028_v15 = vpop.f32.mrb[36].mxu1 }
 0xa9a   :  { %v4311_v36 = vadd.f32 %v2985_v55, %v6424_v41  ;;  %v2987_v42 = vpop.f32.mrb[37].mxu0  ;;  %v3030_v16 = vpop.f32.mrb[37].mxu1  ;;  %v4343_v54 = vadd.f32 %v3028_v15, %v6440_v46 }
 0xa9b   :  { %v4312_v17 = vadd.f32 %v2987_v42, %v6428_v45  ;;  %v2989_v19 = vpop.f32.mrb[38].mxu0  ;;  %v3032_v20 = vpop.f32.mrb[38].mxu1  ;;  %v4344_v32 = vadd.f32 %v3030_v16, %v6435_v10 }
 0xa9c   :  { %v4197_v60 = vmul.f32 -1.442695, %v4311_v36  ;;  %v4313_v44 = vadd.f32 %v2989_v19, %v6424_v41  ;;  %v2991_v51 = vpop.f32.mrb[39].mxu0  ;;  %v3034_v52 = vpop.f32.mrb[39].mxu1  ;;  %v4345_v28 = vadd.f32 %v3032_v20, %v6440_v46 }
 0xa9d   :  { %v4199_v61 = vmul.f32 -1.442695, %v4312_v17  ;;  %v4314_v13 = vadd.f32 %v2991_v51, %v6428_v45  ;;  %v4201_v22 = vmul.f32 -1.442695, %v4344_v32  ;;  %v4346_v23 = vadd.f32 %v3034_v52, %v6435_v10 }
 0xa9e   :  { %4957 = vpow2.f32 %v4197_v60  ;;  %v4198_v5 = vmul.f32 -1.442695, %v4313_v44 }
 0xa9f   :  { %4959 = vpow2.f32 %v4199_v61  ;;  %v4200_v18 = vmul.f32 -1.442695, %v4314_v13  ;;  %v4202_v50 = vmul.f32 -1.442695, %v4346_v23 }
 0xaa0   :  { %4961 = vpow2.f32 %v4198_v5 }
 0xaa1   :  { %4963 = vpow2.f32 %v4200_v18 }
 0xaa2   :  { %4965 = vtanh.f32 %v4343_v54 }
 0xaa3   :  { %4967 = vpow2.f32 %v4201_v22 }
 0xaa4   :  { %4969 = vtanh.f32 %v4345_v28 }
 0xaa8   :  { %v4958_v43 = vpop.eup %4957 }
 0xaa9   :  { %v4960_v14 = vpop.eup %4959  ;;  %v3051_v8 = vadd.f32 1.0, %v4958_v43 }
 0xaaa   :  { %v3063_v55 = vadd.f32 1.0, %v4960_v14  ;;  %v4962_v36 = vpop.eup %4961 }
 0xaab   :  { %4971 = vrcp.f32 %v3051_v8  ;;  %v3052_v42 = vadd.f32 1.0, %v4962_v36  ;;  %v4964_v16 = vpop.eup %4963 }
 0xaac   :  { %4973 = vrcp.f32 %v3063_v55  ;;  %v3064_v15 = vadd.f32 1.0, %v4964_v16  ;;  %v4966_v17 = vpop.eup %4965 }
 0xaad   :  { %4975 = vpow2.f32 %v4202_v50  ;;  %v4968_v19 = vpop.eup %4967 }
 0xaae   :  { %4977 = vrcp.f32 %v3052_v42  ;;  %v4970_v20 = vpop.eup %4969  ;;  %v3077_v5 = vadd.f32 1.0, %v4968_v19 }
 0xaaf   :  { %4979 = vrcp.f32 %v3064_v15 }
 0xab0   :  { %4981 = vrcp.f32 %v3077_v5 }
 0xab5   :  { %v4972_v60 = vpop.eup %4971 }
 0xab6   :  { %v4974_v44 = vpop.eup %4973  ;;  %v3085_v51 = vmul.f32 %v4972_v60, %v4966_v17 }
 0xab7   :  { %v4976_v52 = vpop.eup %4975  ;;  %v3083_v61 = vmul.f32 %v4974_v44, %v6446_v57 }
 0xab8   :  { %v4978_v13 = vpop.eup %4977  ;;  %v3078_v22 = vadd.f32 1.0, %v4976_v52 }
 0xab9   :  { %v6495_v18 = vadd.f32 %v3085_v51, %v3083_v61  ;;  %v3086_v32 = vmul.f32 %v4978_v13, %v4970_v20  ;;  %v4980_v54 = vpop.eup %4979 }
 0xaba   :  { %v3084_v23 = vmul.f32 %v4980_v54, %v6449_v48  ;;  %v4982_v43 = vpop.eup %4981 }
 0xabb   :  { %4983 = vtanh.f32 %v6495_v18 }
 0xabc   :  { %v6499_v28 = vadd.f32 %v3086_v32, %v3084_v23  ;;  %4985 = vrcp.f32 %v3078_v22 }
 0xabe   :  { %4987 = vtanh.f32 %v6499_v28 }
 0xac5   :  { %v4984_v14 = vpop.eup %4983 }
 0xac6   :  { %v4986_v57 = vpop.eup %4985  ;;  %v3091_v50 = vmul.f32 %v4984_v14, %v4982_v43 }
 0xac8   :  { %v4988_v8 = vpop.eup %4987 }
 0xac9   :  { %v3092_v55 = vmul.f32 %v4988_v8, %v4986_v57 }
 0xacb   :  { %v3101_v36 = vpack.c.bf16 %v3092_v55, %v3091_v50 }
 0xacd   :  { %3135 = vmatmul.mubr.bf16.vlgmr.msra.gmra.mrb[40].mxu0 %v3101_v36  ;;  %3178 = vmatmul.mubr.bf16.vlgmr.msra.gmra.mrb[40].mxu1 %v3101_v36 }
 0xace   :  { %3254 = vmatpush1.bf16.msra.mxu0 %v6236_v25  ;;  %3297 = vmatpush1.bf16.msra.mxu1 %v6269_v63 }
 0xacf   :  { %3255 = vmatprep.subr.bf16.mxu0 %v6273_v59  ;;  %3298 = vmatprep.subr.bf16.mxu1 %v6275_v38 }
 0xad0   :  { %3285 = vmatprep.mubr.bf16.mxu0 %v5320_v0  ;;  %3328 = vmatprep.mubr.bf16.mxu1 %v5320_v0 }
 0xad2   :  { %3256 = vmatpush1.bf16.msra.mxu0 %v6277_v35  ;;  %3299 = vmatpush1.bf16.msra.mxu1 %v6279_v9 }
 0xad3   :  { %3257 = vmatprep.subr.bf16.mxu0 %v6285_v7  ;;  %3300 = vmatprep.subr.bf16.mxu1 %v6287_v33 }
 0xad6   :  { %3258 = vmatpush1.bf16.msra.mxu0 %v6289_v34  ;;  %3301 = vmatpush1.bf16.msra.mxu1 %v6295_v27 }
 0xad7   :  { %3259 = vmatprep.subr.bf16.mxu0 %v6291_v37  ;;  %3302 = vmatprep.subr.bf16.mxu1 %v6300_v24 }
 0xada   :  { %3260 = vmatpush1.bf16.msra.mxu0 %v6298_v3  ;;  %3303 = vmatpush1.bf16.msra.mxu1 %v6306_v26 }
 0xadb   :  { %3261 = vmatprep.subr.bf16.mxu0 %v6303_v58  ;;  %3304 = vmatprep.subr.bf16.mxu1 %v6309_v30 }
 0xade   :  { %3262 = vmatpush1.bf16.msra.mxu0 %v6312_v29  ;;  %3305 = vmatpush1.bf16.msra.mxu1 %v6318_v31 }
 0xadf   :  { %3263 = vmatprep.subr.bf16.mxu0 %v6315_v49  ;;  %3306 = vmatprep.subr.bf16.mxu1 %v6321_v47 }
 0xae2   :  { %3264 = vmatpush1.bf16.msra.mxu0 %v6324_v1  ;;  %3307 = vmatpush1.bf16.msra.mxu1 %v6330_v62 }
 0xae3   :  { %3265 = vmatprep.subr.bf16.mxu0 %v6327_v56  ;;  %3308 = vmatprep.subr.bf16.mxu1 %v6340_v21 }
 0xae6   :  { %3266 = vmatpush1.bf16.msra.mxu0 %v6334_v11  ;;  %3309 = vmatpush1.bf16.msra.mxu1 %v6342_v53 }
 0xae7   :  { %3267 = vmatprep.subr.bf16.mxu0 %v6338_v12  ;;  %3310 = vmatprep.subr.bf16.mxu1 %v6344_v6 }
 0xaea   :  { %3268 = vmatpush1.bf16.msra.mxu0 %v6348_v39  ;;  %3311 = vmatpush1.bf16.msra.mxu1 %v6352_v40 }
 0xaeb   :  { %3404 = vmatprep.subr.bf16.mxu0 %v6233_v2  ;;  %3447 = vmatprep.subr.bf16.mxu1 %v6267_v4 }
 0xba0   :  { %v3136_v48 = vpop.f32.mrb[40].mxu0  ;;  %v3179_v42 = vpop.f32.mrb[40].mxu1 }
 0xba1   :  { %v4315_v16 = vadd.f32 %v3136_v48, %v6424_v41  ;;  %v3138_v15 = vpop.f32.mrb[41].mxu0  ;;  %v3181_v17 = vpop.f32.mrb[41].mxu1  ;;  %v4347_v22 = vadd.f32 %v3179_v42, %v6440_v46 }
 0xba2   :  { %v4316_v19 = vadd.f32 %v3138_v15, %v6428_v45  ;;  %v3140_v20 = vpop.f32.mrb[42].mxu0  ;;  %v3183_v60 = vpop.f32.mrb[42].mxu1  ;;  %v4348_v54 = vadd.f32 %v3181_v17, %v6435_v10 }
 0xba3   :  { %v4203_v44 = vmul.f32 -1.442695, %v4315_v16  ;;  %v4317_v51 = vadd.f32 %v3140_v20, %v6424_v41  ;;  %v3142_v52 = vpop.f32.mrb[43].mxu0  ;;  %v3185_v61 = vpop.f32.mrb[43].mxu1  ;;  %v4349_v14 = vadd.f32 %v3183_v60, %v6440_v46 }
 0xba4   :  { %v4205_v13 = vmul.f32 -1.442695, %v4316_v19  ;;  %v4318_v2 = vadd.f32 %v3142_v52, %v6428_v45  ;;  %v4207_v23 = vmul.f32 -1.442695, %v4348_v54  ;;  %v4350_v43 = vadd.f32 %v3185_v61, %v6435_v10 }
 0xba5   :  { %4989 = vpow2.f32 %v4203_v44  ;;  %v4204_v5 = vmul.f32 -1.442695, %v4317_v51 }
 0xba6   :  { %4991 = vpow2.f32 %v4205_v13  ;;  %v4206_v32 = vmul.f32 -1.442695, %v4318_v2  ;;  %v4208_v55 = vmul.f32 -1.442695, %v4350_v43 }
 0xba7   :  { %4993 = vpow2.f32 %v4204_v5 }
 0xba8   :  { %4995 = vpow2.f32 %v4206_v32 }
 0xba9   :  { %4997 = vtanh.f32 %v4347_v22 }
 0xbaa   :  { %4999 = vpow2.f32 %v4207_v23 }
 0xbab   :  { %5001 = vtanh.f32 %v4349_v14 }
 0xbaf   :  { %v4990_v57 = vpop.eup %4989 }
 0xbb0   :  { %v4992_v8 = vpop.eup %4991  ;;  %v3202_v50 = vadd.f32 1.0, %v4990_v57 }
 0xbb1   :  { %v3214_v36 = vadd.f32 1.0, %v4992_v8  ;;  %v4994_v48 = vpop.eup %4993 }
 0xbb2   :  { %5003 = vrcp.f32 %v3202_v50  ;;  %v3203_v16 = vadd.f32 1.0, %v4994_v48  ;;  %v4996_v15 = vpop.eup %4995 }
 0xbb3   :  { %5005 = vrcp.f32 %v3214_v36  ;;  %v3215_v42 = vadd.f32 1.0, %v4996_v15  ;;  %v4998_v17 = vpop.eup %4997 }
 0xbb4   :  { %5007 = vpow2.f32 %v4208_v55  ;;  %v5000_v19 = vpop.eup %4999 }
 0xbb5   :  { %5009 = vrcp.f32 %v3203_v16  ;;  %v5002_v20 = vpop.eup %5001  ;;  %v3228_v2 = vadd.f32 1.0, %v5000_v19 }
 0xbb6   :  { %5011 = vrcp.f32 %v3215_v42 }
 0xbb7   :  { %5013 = vrcp.f32 %v3228_v2 }
 0xbbc   :  { %v5004_v60 = vpop.eup %5003 }
 0xbbd   :  { %v5006_v44 = vpop.eup %5005  ;;  %v3236_v51 = vmul.f32 %v5004_v60, %v4998_v17 }
 0xbbe   :  { %v5008_v52 = vpop.eup %5007  ;;  %v3234_v61 = vmul.f32 %v5006_v44, %v6495_v18 }
 0xbbf   :  { %v5010_v13 = vpop.eup %5009  ;;  %v3229_v22 = vadd.f32 1.0, %v5008_v52 }
 0xbc0   :  { %v6545_v5 = vadd.f32 %v3236_v51, %v3234_v61  ;;  %v3237_v32 = vmul.f32 %v5010_v13, %v5002_v20  ;;  %v5012_v54 = vpop.eup %5011 }
 0xbc1   :  { %v3235_v23 = vmul.f32 %v5012_v54, %v6499_v28  ;;  %v5014_v14 = vpop.eup %5013 }
 0xbc2   :  { %5015 = vtanh.f32 %v6545_v5 }
 0xbc3   :  { %v6549_v43 = vadd.f32 %v3237_v32, %v3235_v23  ;;  %5017 = vrcp.f32 %v3229_v22 }
 0xbc5   :  { %5019 = vtanh.f32 %v6549_v43 }
 0xbcc   :  { %v5016_v57 = vpop.eup %5015 }
 0xbcd   :  { %v5018_v18 = vpop.eup %5017  ;;  %v3242_v50 = vmul.f32 %v5016_v57, %v5014_v14 }
 0xbcf   :  { %v5020_v8 = vpop.eup %5019 }
 0xbd0   :  { %v3243_v55 = vmul.f32 %v5020_v8, %v5018_v18  ;;  %v6604_v8 = vld [vmem:[#allocation8] ss:$16 sps:$4 sm:$0xff]  }
 0xbd2   :  { %v3252_v36 = vpack.c.bf16 %v3243_v55, %v3242_v50  ;;  %v6610_v50 = vld [vmem:[#allocation8 + $0x24] ss:$16 sps:$4 sm:$0xff]   ;;  %v6613_v55 = vld [vmem:[#allocation8 + $0x2c] ss:$16 sps:$4 sm:$0xff]  }
 0xbd4   :  { %3286 = vmatmul.mubr.bf16.vlgmr.msra.gmra.mrb[44].mxu0 %v3252_v36  ;;  %3329 = vmatmul.mubr.bf16.vlgmr.msra.gmra.mrb[44].mxu1 %v3252_v36  ;;  %v6618_v36 = vld [vmem:[#allocation8 + $0x20] ss:$16 sps:$4 sm:$0xff]  }
 0xbd5   :  { %3405 = vmatpush1.bf16.msra.mxu0 %v6236_v25  ;;  %3448 = vmatpush1.bf16.msra.mxu1 %v6269_v63  ;;  %v6584_v25 = vld [vmem:[#allocation8 + $0x4] ss:$16 sps:$4 sm:$0xff]  }
 0xbd6   :  { %3406 = vmatprep.subr.bf16.mxu0 %v6273_v59  ;;  %3449 = vmatprep.subr.bf16.mxu1 %v6275_v38 }
 0xbd7   :  { %3436 = vmatprep.mubr.bf16.mxu0 %v5320_v0  ;;  %3479 = vmatprep.mubr.bf16.mxu1 %v5320_v0 }
 0xbd9   :  { %3407 = vmatpush1.bf16.msra.mxu0 %v6277_v35  ;;  %3450 = vmatpush1.bf16.msra.mxu1 %v6279_v9 }
 0xbda   :  { %3408 = vmatprep.subr.bf16.mxu0 %v6285_v7  ;;  %3451 = vmatprep.subr.bf16.mxu1 %v6287_v33 }
 0xbdd   :  { %3409 = vmatpush1.bf16.msra.mxu0 %v6289_v34  ;;  %3452 = vmatpush1.bf16.msra.mxu1 %v6295_v27 }
 0xbde   :  { %3410 = vmatprep.subr.bf16.mxu0 %v6291_v37  ;;  %3453 = vmatprep.subr.bf16.mxu1 %v6300_v24 }
 0xbe1   :  { %3411 = vmatpush1.bf16.msra.mxu0 %v6298_v3  ;;  %3454 = vmatpush1.bf16.msra.mxu1 %v6306_v26 }
 0xbe2   :  { %3412 = vmatprep.subr.bf16.mxu0 %v6303_v58  ;;  %3455 = vmatprep.subr.bf16.mxu1 %v6309_v30 }
 0xbe5   :  { %3413 = vmatpush1.bf16.msra.mxu0 %v6312_v29  ;;  %3456 = vmatpush1.bf16.msra.mxu1 %v6318_v31 }
 0xbe6   :  { %3414 = vmatprep.subr.bf16.mxu0 %v6315_v49  ;;  %3457 = vmatprep.subr.bf16.mxu1 %v6321_v47 }
 0xbe9   :  { %3415 = vmatpush1.bf16.msra.mxu0 %v6324_v1  ;;  %3458 = vmatpush1.bf16.msra.mxu1 %v6330_v62 }
 0xbea   :  { %3416 = vmatprep.subr.bf16.mxu0 %v6327_v56  ;;  %3459 = vmatprep.subr.bf16.mxu1 %v6340_v21 }
 0xbed   :  { %3417 = vmatpush1.bf16.msra.mxu0 %v6334_v11  ;;  %3460 = vmatpush1.bf16.msra.mxu1 %v6342_v53 }
 0xbee   :  { %3418 = vmatprep.subr.bf16.mxu0 %v6338_v12  ;;  %3461 = vmatprep.subr.bf16.mxu1 %v6344_v6 }
 0xbf1   :  { %3419 = vmatpush1.bf16.msra.mxu0 %v6348_v39  ;;  %3462 = vmatpush1.bf16.msra.mxu1 %v6352_v40 }
 0xbf2   :  { %3555 = vmatprep.subr.bf16.mxu0 %v6584_v25  ;;  %3598 = vmatprep.subr.bf16.mxu1 %v6267_v4 }
 0xca7   :  { %v3287_v63 = vpop.f32.mrb[44].mxu0  ;;  %v3330_v59 = vpop.f32.mrb[44].mxu1 }
 0xca8   :  { %v4319_v38 = vadd.f32 %v3287_v63, %v6424_v41  ;;  %v3289_v35 = vpop.f32.mrb[45].mxu0  ;;  %v3332_v9 = vpop.f32.mrb[45].mxu1  ;;  %v4351_v49 = vadd.f32 %v3330_v59, %v6440_v46  ;;  %v6621_v63 = vld [vmem:[#allocation8 + $0x28] ss:$16 sps:$4 sm:$0xff]   ;;  %v6624_v59 = vld [vmem:[#allocation8 + $0x44] ss:$16 sps:$4 sm:$0xff]  }
 0xca9   :  { %v4320_v7 = vadd.f32 %v3289_v35, %v6428_v45  ;;  %v3291_v33 = vpop.f32.mrb[46].mxu0  ;;  %v3334_v34 = vpop.f32.mrb[46].mxu1  ;;  %v4352_v29 = vadd.f32 %v3332_v9, %v6435_v10  ;;  %v6630_v35 = vld [vmem:[#allocation8 + $0x40] ss:$16 sps:$4 sm:$0xff]   ;;  %v6633_v9 = vld [vmem:[#allocation8 + $0x48] ss:$16 sps:$4 sm:$0xff]  }
 0xcaa   :  { %v4209_v37 = vmul.f32 -1.442695, %v4319_v38  ;;  %v4321_v27 = vadd.f32 %v3291_v33, %v6424_v41  ;;  %v3293_v3 = vpop.f32.mrb[47].mxu0  ;;  %v3336_v24 = vpop.f32.mrb[47].mxu1  ;;  %v4353_v1 = vadd.f32 %v3334_v34, %v6440_v46  ;;  %v6627_v38 = vld [vmem:[#allocation8 + $0x4c] ss:$16 sps:$4 sm:$0xff]  }
 0xcab   :  { %v4211_v58 = vmul.f32 -1.442695, %v4320_v7  ;;  %v4322_v26 = vadd.f32 %v3293_v3, %v6428_v45  ;;  %v4213_v31 = vmul.f32 -1.442695, %v4352_v29  ;;  %v4354_v47 = vadd.f32 %v3336_v24, %v6435_v10  ;;  %v6636_v7 = vld [vmem:[#allocation8 + $0x64] ss:$16 sps:$4 sm:$0xff]  }
 0xcac   :  { %5021 = vpow2.f32 %v4209_v37  ;;  %v4210_v4 = vmul.f32 -1.442695, %v4321_v27  ;;  %v6639_v33 = vld [vmem:[#allocation8 + $0x6c] ss:$16 sps:$4 sm:$0xff]   ;;  %v6642_v34 = vld [vmem:[#allocation8 + $0x60] ss:$16 sps:$4 sm:$0xff]  }
 0xcad   :  { %5023 = vpow2.f32 %v4211_v58  ;;  %v4212_v30 = vmul.f32 -1.442695, %v4322_v26  ;;  %v4214_v12 = vmul.f32 -1.442695, %v4354_v47  ;;  %v6645_v37 = vld [vmem:[#allocation8 + $0x68] ss:$16 sps:$4 sm:$0xff]  }
 0xcae   :  { %5025 = vpow2.f32 %v4210_v4  ;;  %v6648_v27 = vld [vmem:[#allocation8 + $0x84] ss:$16 sps:$4 sm:$0xff]   ;;  %v6651_v3 = vld [vmem:[#allocation8 + $0x8c] ss:$16 sps:$4 sm:$0xff]   ;;  %v6654_v24 = vld [vmem:[#allocation8 + $0x80] ss:$16 sps:$4 sm:$0xff]  }
 0xcaf   :  { %5027 = vpow2.f32 %v4212_v30  ;;  %v6657_v58 = vld [vmem:[#allocation8 + $0x88] ss:$16 sps:$4 sm:$0xff]   ;;  %v6660_v26 = vld [vmem:[#allocation8 + $0xa4] ss:$16 sps:$4 sm:$0xff]   ;;  %v6663_v4 = vld [vmem:[#allocation8 + $0xac] ss:$16 sps:$4 sm:$0xff]  }
 0xcb0   :  { %5029 = vtanh.f32 %v4351_v49  ;;  %v6666_v30 = vld [vmem:[#allocation8 + $0xa0] ss:$16 sps:$4 sm:$0xff]   ;;  %v6669_v29 = vld [vmem:[#allocation8 + $0xa8] ss:$16 sps:$4 sm:$0xff]   ;;  %v6672_v49 = vld [vmem:[#allocation8 + $0xc4] ss:$16 sps:$4 sm:$0xff]  }
 0xcb1   :  { %5031 = vpow2.f32 %v4213_v31  ;;  %v6675_v31 = vld [vmem:[#allocation8 + $0xcc] ss:$16 sps:$4 sm:$0xff]   ;;  %v6678_v47 = vld [vmem:[#allocation8 + $0xc0] ss:$16 sps:$4 sm:$0xff]  }
 0xcb2   :  { %5033 = vtanh.f32 %v4353_v1  ;;  %v6681_v1 = vld [vmem:[#allocation8 + $0xc8] ss:$16 sps:$4 sm:$0xff]  }
 0xcb6   :  { %v5022_v56 = vpop.eup %5021 }
 0xcb7   :  { %v5024_v62 = vpop.eup %5023  ;;  %v3353_v11 = vadd.f32 1.0, %v5022_v56  ;;  %v6684_v56 = vld [vmem:[#allocation8 + $0xe4] ss:$16 sps:$4 sm:$0xff]  }
 0xcb8   :  { %v3365_v21 = vadd.f32 1.0, %v5024_v62  ;;  %v5026_v53 = vpop.eup %5025  ;;  %v6687_v62 = vld [vmem:[#allocation8 + $0xec] ss:$16 sps:$4 sm:$0xff]  }
 0xcb9   :  { %5035 = vrcp.f32 %v3353_v11  ;;  %v3354_v6 = vadd.f32 1.0, %v5026_v53  ;;  %v5028_v39 = vpop.eup %5027  ;;  %v6690_v11 = vld [vmem:[#allocation8 + $0xe0] ss:$16 sps:$4 sm:$0xff]  }
 0xcba   :  { %5037 = vrcp.f32 %v3365_v21  ;;  %v3366_v40 = vadd.f32 1.0, %v5028_v39  ;;  %v5030_v28 = vpop.eup %5029  ;;  %v6697_v21 = vld [vmem:[#allocation8 + $0xc] ss:$16 sps:$4 sm:$0xff]  }
 0xcbb   :  { %5039 = vpow2.f32 %v4214_v12  ;;  %v5032_v48 = vpop.eup %5031  ;;  %v6693_v12 = vld [vmem:[#allocation8 + $0xe8] ss:$16 sps:$4 sm:$0xff]  }
 0xcbc   :  { %5041 = vrcp.f32 %v3354_v6  ;;  %v5034_v16 = vpop.eup %5033  ;;  %v3379_v44 = vadd.f32 1.0, %v5032_v48 }
 0xcbd   :  { %5043 = vrcp.f32 %v3366_v40 }
 0xcbe   :  { %5045 = vrcp.f32 %v3379_v44 }
 0xcc3   :  { %v5036_v15 = vpop.eup %5035 }
 0xcc4   :  { %v5038_v42 = vpop.eup %5037  ;;  %v3387_v17 = vmul.f32 %v5036_v15, %v5030_v28 }
 0xcc5   :  { %v5040_v19 = vpop.eup %5039  ;;  %v3385_v20 = vmul.f32 %v5038_v42, %v6545_v5 }
 0xcc6   :  { %v5042_v60 = vpop.eup %5041  ;;  %v3380_v13 = vadd.f32 1.0, %v5040_v19 }
 0xcc7   :  { %v6597_v51 = vadd.f32 %v3387_v17, %v3385_v20  ;;  %v3388_v52 = vmul.f32 %v5042_v60, %v5034_v16  ;;  %v5044_v61 = vpop.eup %5043 }
 0xcc8   :  { %v3386_v2 = vmul.f32 %v5044_v61, %v6549_v43  ;;  %v5046_v54 = vpop.eup %5045  ;;  %v6607_v43 = vld [vmem:[#allocation8 + $0x8] ss:$16 sps:$4 sm:$0xff]  }
 0xcc9   :  { %5047 = vtanh.f32 %v6597_v51 }
 0xcca   :  { %v6601_v32 = vadd.f32 %v3388_v52, %v3386_v2  ;;  %5049 = vrcp.f32 %v3380_v13 }
 0xccc   :  { %5051 = vtanh.f32 %v6601_v32 }
 0xcd3   :  { %v5048_v22 = vpop.eup %5047 }
 0xcd4   :  { %v5050_v5 = vpop.eup %5049  ;;  %v3393_v14 = vmul.f32 %v5048_v22, %v5046_v54 }
 0xcd6   :  { %v5052_v23 = vpop.eup %5051 }
 0xcd7   :  { %v3394_v57 = vmul.f32 %v5052_v23, %v5050_v5 }
 0xcd9   :  { %v3403_v18 = vpack.c.bf16 %v3394_v57, %v3393_v14 }
 0xcdb   :  { %3437 = vmatmul.mubr.bf16.vlgmr.msra.gmra.mrb[48].mxu0 %v3403_v18  ;;  %3480 = vmatmul.mubr.bf16.vlgmr.msra.gmra.mrb[48].mxu1 %v3403_v18 }
 0xcdc   :  { %3556 = vmatpush1.bf16.msra.mxu0 %v6604_v8  ;;  %3599 = vmatpush1.bf16.msra.mxu1 %v6607_v43 }
 0xcdd   :  { %3557 = vmatprep.subr.bf16.mxu0 %v6610_v50  ;;  %3600 = vmatprep.subr.bf16.mxu1 %v6613_v55 }
 0xcde   :  { %3587 = vmatprep.mubr.bf16.mxu0 %v5320_v0  ;;  %3630 = vmatprep.mubr.bf16.mxu1 %v5320_v0 }
 0xce0   :  { %3558 = vmatpush1.bf16.msra.mxu0 %v6618_v36  ;;  %3601 = vmatpush1.bf16.msra.mxu1 %v6621_v63 }
 0xce1   :  { %3559 = vmatprep.subr.bf16.mxu0 %v6624_v59  ;;  %3602 = vmatprep.subr.bf16.mxu1 %v6627_v38 }
 0xce4   :  { %3560 = vmatpush1.bf16.msra.mxu0 %v6630_v35  ;;  %3603 = vmatpush1.bf16.msra.mxu1 %v6633_v9 }
 0xce5   :  { %3561 = vmatprep.subr.bf16.mxu0 %v6636_v7  ;;  %3604 = vmatprep.subr.bf16.mxu1 %v6639_v33 }
 0xce8   :  { %3562 = vmatpush1.bf16.msra.mxu0 %v6642_v34  ;;  %3605 = vmatpush1.bf16.msra.mxu1 %v6645_v37 }
 0xce9   :  { %3563 = vmatprep.subr.bf16.mxu0 %v6648_v27  ;;  %3606 = vmatprep.subr.bf16.mxu1 %v6651_v3 }
 0xcec   :  { %3564 = vmatpush1.bf16.msra.mxu0 %v6654_v24  ;;  %3607 = vmatpush1.bf16.msra.mxu1 %v6657_v58 }
 0xced   :  { %3565 = vmatprep.subr.bf16.mxu0 %v6660_v26  ;;  %3608 = vmatprep.subr.bf16.mxu1 %v6663_v4 }
 0xcf0   :  { %3566 = vmatpush1.bf16.msra.mxu0 %v6666_v30  ;;  %3609 = vmatpush1.bf16.msra.mxu1 %v6669_v29 }
 0xcf1   :  { %3567 = vmatprep.subr.bf16.mxu0 %v6672_v49  ;;  %3610 = vmatprep.subr.bf16.mxu1 %v6675_v31 }
 0xcf4   :  { %3568 = vmatpush1.bf16.msra.mxu0 %v6678_v47  ;;  %3611 = vmatpush1.bf16.msra.mxu1 %v6681_v1 }
 0xcf5   :  { %3569 = vmatprep.subr.bf16.mxu0 %v6684_v56  ;;  %3612 = vmatprep.subr.bf16.mxu1 %v6687_v62 }
 0xcf8   :  { %3570 = vmatpush1.bf16.msra.mxu0 %v6690_v11  ;;  %3613 = vmatpush1.bf16.msra.mxu1 %v6693_v12 }
 0xcf9   :  { %3706 = vmatprep.subr.bf16.mxu0 %v6584_v25  ;;  %3749 = vmatprep.subr.bf16.mxu1 %v6697_v21 }
 0xdae   :  { %v3438_v53 = vpop.f32.mrb[48].mxu0  ;;  %v3481_v6 = vpop.f32.mrb[48].mxu1 }
 0xdaf   :  { %v4323_v39 = vadd.f32 %v3438_v53, %v6424_v41  ;;  %v3440_v40 = vpop.f32.mrb[49].mxu0  ;;  %v3483_v28 = vpop.f32.mrb[49].mxu1  ;;  %v4355_v2 = vadd.f32 %v3481_v6, %v6440_v46 }
 0xdb0   :  { %v4324_v48 = vadd.f32 %v3440_v40, %v6428_v45  ;;  %v3442_v16 = vpop.f32.mrb[50].mxu0  ;;  %v3485_v15 = vpop.f32.mrb[50].mxu1  ;;  %v4356_v13 = vadd.f32 %v3483_v28, %v6435_v10 }
 0xdb1   :  { %v4215_v42 = vmul.f32 -1.442695, %v4323_v39  ;;  %v4325_v17 = vadd.f32 %v3442_v16, %v6424_v41  ;;  %v3444_v19 = vpop.f32.mrb[51].mxu0  ;;  %v3487_v20 = vpop.f32.mrb[51].mxu1  ;;  %v4357_v5 = vadd.f32 %v3485_v15, %v6440_v46 }
 0xdb2   :  { %v4217_v60 = vmul.f32 -1.442695, %v4324_v48  ;;  %v4326_v44 = vadd.f32 %v3444_v19, %v6428_v45  ;;  %v4219_v54 = vmul.f32 -1.442695, %v4356_v13  ;;  %v4358_v22 = vadd.f32 %v3487_v20, %v6435_v10 }
 0xdb3   :  { %5053 = vpow2.f32 %v4215_v42  ;;  %v4216_v52 = vmul.f32 -1.442695, %v4325_v17 }
 0xdb4   :  { %5055 = vpow2.f32 %v4217_v60  ;;  %v4218_v61 = vmul.f32 -1.442695, %v4326_v44  ;;  %v4220_v18 = vmul.f32 -1.442695, %v4358_v22 }
 0xdb5   :  { %5057 = vpow2.f32 %v4216_v52 }
 0xdb6   :  { %5059 = vpow2.f32 %v4218_v61 }
 0xdb7   :  { %5061 = vtanh.f32 %v4355_v2 }
 0xdb8   :  { %5063 = vpow2.f32 %v4219_v54 }
 0xdb9   :  { %5065 = vtanh.f32 %v4357_v5 }
 0xdbd   :  { %v5054_v23 = vpop.eup %5053 }
 0xdbe   :  { %v5056_v14 = vpop.eup %5055  ;;  %v3504_v57 = vadd.f32 1.0, %v5054_v23 }
 0xdbf   :  { %v3516_v53 = vadd.f32 1.0, %v5056_v14  ;;  %v5058_v39 = vpop.eup %5057 }
 0xdc0   :  { %5067 = vrcp.f32 %v3504_v57  ;;  %v3505_v40 = vadd.f32 1.0, %v5058_v39  ;;  %v5060_v28 = vpop.eup %5059 }
 0xdc1   :  { %5069 = vrcp.f32 %v3516_v53  ;;  %v3517_v6 = vadd.f32 1.0, %v5060_v28  ;;  %v5062_v48 = vpop.eup %5061 }
 0xdc2   :  { %5071 = vpow2.f32 %v4220_v18  ;;  %v5064_v16 = vpop.eup %5063 }
 0xdc3   :  { %5073 = vrcp.f32 %v3505_v40  ;;  %v5066_v15 = vpop.eup %5065  ;;  %v3530_v52 = vadd.f32 1.0, %v5064_v16 }
 0xdc4   :  { %5075 = vrcp.f32 %v3517_v6 }
 0xdc5   :  { %5077 = vrcp.f32 %v3530_v52 }
 0xdca   :  { %v5068_v42 = vpop.eup %5067 }
 0xdcb   :  { %v5070_v17 = vpop.eup %5069  ;;  %v3538_v19 = vmul.f32 %v5068_v42, %v5062_v48 }
 0xdcc   :  { %v5072_v20 = vpop.eup %5071  ;;  %v3536_v60 = vmul.f32 %v5070_v17, %v6597_v51 }
 0xdcd   :  { %v5074_v44 = vpop.eup %5073  ;;  %v3531_v54 = vadd.f32 1.0, %v5072_v20 }
 0xdce   :  { %v6709_v61 = vadd.f32 %v3538_v19, %v3536_v60  ;;  %v3539_v13 = vmul.f32 %v5074_v44, %v5066_v15  ;;  %v5076_v2 = vpop.eup %5075 }
 0xdcf   :  { %v3537_v22 = vmul.f32 %v5076_v2, %v6601_v32  ;;  %v5078_v23 = vpop.eup %5077 }
 0xdd0   :  { %5079 = vtanh.f32 %v6709_v61 }
 0xdd1   :  { %v6713_v5 = vadd.f32 %v3539_v13, %v3537_v22  ;;  %5081 = vrcp.f32 %v3531_v54 }
 0xdd3   :  { %5083 = vtanh.f32 %v6713_v5 }
 0xdda   :  { %v5080_v14 = vpop.eup %5079 }
 0xddb   :  { %v5082_v51 = vpop.eup %5081  ;;  %v3544_v18 = vmul.f32 %v5080_v14, %v5078_v23 }
 0xddd   :  { %v5084_v57 = vpop.eup %5083 }
 0xdde   :  { %v3545_v53 = vmul.f32 %v5084_v57, %v5082_v51 }
 0xde0   :  { %v3554_v39 = vpack.c.bf16 %v3545_v53, %v3544_v18 }
 0xde2   :  { %3588 = vmatmul.mubr.bf16.vlgmr.msra.gmra.mrb[52].mxu0 %v3554_v39  ;;  %3631 = vmatmul.mubr.bf16.vlgmr.msra.gmra.mrb[52].mxu1 %v3554_v39 }
 0xde3   :  { %3707 = vmatpush1.bf16.msra.mxu0 %v6604_v8  ;;  %3750 = vmatpush1.bf16.msra.mxu1 %v6607_v43 }
 0xde4   :  { %3708 = vmatprep.subr.bf16.mxu0 %v6610_v50  ;;  %3751 = vmatprep.subr.bf16.mxu1 %v6613_v55 }
 0xde5   :  { %3738 = vmatprep.mubr.bf16.mxu0 %v5320_v0  ;;  %3781 = vmatprep.mubr.bf16.mxu1 %v5320_v0 }
 0xde7   :  { %3709 = vmatpush1.bf16.msra.mxu0 %v6618_v36  ;;  %3752 = vmatpush1.bf16.msra.mxu1 %v6621_v63 }
 0xde8   :  { %3710 = vmatprep.subr.bf16.mxu0 %v6624_v59  ;;  %3753 = vmatprep.subr.bf16.mxu1 %v6627_v38 }
 0xdeb   :  { %3711 = vmatpush1.bf16.msra.mxu0 %v6630_v35  ;;  %3754 = vmatpush1.bf16.msra.mxu1 %v6633_v9 }
 0xdec   :  { %3712 = vmatprep.subr.bf16.mxu0 %v6636_v7  ;;  %3755 = vmatprep.subr.bf16.mxu1 %v6639_v33 }
 0xdef   :  { %3713 = vmatpush1.bf16.msra.mxu0 %v6642_v34  ;;  %3756 = vmatpush1.bf16.msra.mxu1 %v6645_v37 }
 0xdf0   :  { %3714 = vmatprep.subr.bf16.mxu0 %v6648_v27  ;;  %3757 = vmatprep.subr.bf16.mxu1 %v6651_v3 }
 0xdf3   :  { %3715 = vmatpush1.bf16.msra.mxu0 %v6654_v24  ;;  %3758 = vmatpush1.bf16.msra.mxu1 %v6657_v58 }
 0xdf4   :  { %3716 = vmatprep.subr.bf16.mxu0 %v6660_v26  ;;  %3759 = vmatprep.subr.bf16.mxu1 %v6663_v4 }
 0xdf7   :  { %3717 = vmatpush1.bf16.msra.mxu0 %v6666_v30  ;;  %3760 = vmatpush1.bf16.msra.mxu1 %v6669_v29 }
 0xdf8   :  { %3718 = vmatprep.subr.bf16.mxu0 %v6672_v49  ;;  %3761 = vmatprep.subr.bf16.mxu1 %v6675_v31 }
 0xdfb   :  { %3719 = vmatpush1.bf16.msra.mxu0 %v6678_v47  ;;  %3762 = vmatpush1.bf16.msra.mxu1 %v6681_v1 }
 0xdfc   :  { %3720 = vmatprep.subr.bf16.mxu0 %v6684_v56  ;;  %3763 = vmatprep.subr.bf16.mxu1 %v6687_v62 }
 0xdff   :  { %3721 = vmatpush1.bf16.msra.mxu0 %v6690_v11  ;;  %3764 = vmatpush1.bf16.msra.mxu1 %v6693_v12 }
 0xe00   :  { %3857 = vmatprep.subr.bf16.mxu0 %v6584_v25  ;;  %3900 = vmatprep.subr.bf16.mxu1 %v6697_v21 }
 0xeb5   :  { %v3589_v32 = vpop.f32.mrb[52].mxu0  ;;  %v3632_v40 = vpop.f32.mrb[52].mxu1 }
 0xeb6   :  { %v4327_v28 = vadd.f32 %v3589_v32, %v6424_v41  ;;  %v3591_v6 = vpop.f32.mrb[53].mxu0  ;;  %v3634_v48 = vpop.f32.mrb[53].mxu1  ;;  %v4359_v2 = vadd.f32 %v3632_v40, %v6440_v46 }
 0xeb7   :  { %v4328_v16 = vadd.f32 %v3591_v6, %v6428_v45  ;;  %v3593_v15 = vpop.f32.mrb[54].mxu0  ;;  %v3636_v42 = vpop.f32.mrb[54].mxu1  ;;  %v4360_v13 = vadd.f32 %v3634_v48, %v6435_v10 }
 0xeb8   :  { %v4221_v17 = vmul.f32 -1.442695, %v4327_v28  ;;  %v4329_v19 = vadd.f32 %v3593_v15, %v6424_v41  ;;  %v3595_v20 = vpop.f32.mrb[55].mxu0  ;;  %v3638_v60 = vpop.f32.mrb[55].mxu1  ;;  %v4361_v23 = vadd.f32 %v3636_v42, %v6440_v46 }
 0xeb9   :  { %v4223_v44 = vmul.f32 -1.442695, %v4328_v16  ;;  %v4330_v25 = vadd.f32 %v3595_v20, %v6428_v45  ;;  %v4225_v54 = vmul.f32 -1.442695, %v4360_v13  ;;  %v4362_v22 = vadd.f32 %v3638_v60, %v6435_v10 }
 0xeba   :  { %5085 = vpow2.f32 %v4221_v17  ;;  %v4222_v21 = vmul.f32 -1.442695, %v4329_v19 }
 0xebb   :  { %5087 = vpow2.f32 %v4223_v44  ;;  %v4224_v52 = vmul.f32 -1.442695, %v4330_v25  ;;  %v4226_v18 = vmul.f32 -1.442695, %v4362_v22 }
 0xebc   :  { %5089 = vpow2.f32 %v4222_v21 }
 0xebd   :  { %5091 = vpow2.f32 %v4224_v52 }
 0xebe   :  { %5093 = vtanh.f32 %v4359_v2 }
 0xebf   :  { %5095 = vpow2.f32 %v4225_v54 }
 0xec0   :  { %5097 = vtanh.f32 %v4361_v23 }
 0xec4   :  { %v5086_v14 = vpop.eup %5085 }
 0xec5   :  { %v5088_v51 = vpop.eup %5087  ;;  %v3655_v57 = vadd.f32 1.0, %v5086_v14 }
 0xec6   :  { %v3667_v53 = vadd.f32 1.0, %v5088_v51  ;;  %v5090_v39 = vpop.eup %5089 }
 0xec7   :  { %5099 = vrcp.f32 %v3655_v57  ;;  %v3656_v32 = vadd.f32 1.0, %v5090_v39  ;;  %v5092_v28 = vpop.eup %5091 }
 0xec8   :  { %5101 = vrcp.f32 %v3667_v53  ;;  %v3668_v40 = vadd.f32 1.0, %v5092_v28  ;;  %v5094_v6 = vpop.eup %5093 }
 0xec9   :  { %5103 = vpow2.f32 %v4226_v18  ;;  %v5096_v48 = vpop.eup %5095 }
 0xeca   :  { %5105 = vrcp.f32 %v3656_v32  ;;  %v5098_v16 = vpop.eup %5097  ;;  %v3681_v44 = vadd.f32 1.0, %v5096_v48 }
 0xecb   :  { %5107 = vrcp.f32 %v3668_v40 }
 0xecc   :  { %5109 = vrcp.f32 %v3681_v44 }
 0xed1   :  { %v5100_v15 = vpop.eup %5099 }
 0xed2   :  { %v5102_v42 = vpop.eup %5101  ;;  %v3689_v17 = vmul.f32 %v5100_v15, %v5094_v6 }
 0xed3   :  { %v5104_v19 = vpop.eup %5103  ;;  %v3687_v20 = vmul.f32 %v5102_v42, %v6709_v61 }
 0xed4   :  { %v5106_v60 = vpop.eup %5105  ;;  %v3682_v13 = vadd.f32 1.0, %v5104_v19 }
 0xed5   :  { %v6759_v25 = vadd.f32 %v3689_v17, %v3687_v20  ;;  %v3690_v21 = vmul.f32 %v5106_v60, %v5098_v16  ;;  %v5108_v52 = vpop.eup %5107 }
 0xed6   :  { %v3688_v2 = vmul.f32 %v5108_v52, %v6713_v5  ;;  %v5110_v22 = vpop.eup %5109 }
 0xed7   :  { %5111 = vtanh.f32 %v6759_v25 }
 0xed8   :  { %v6763_v54 = vadd.f32 %v3690_v21, %v3688_v2  ;;  %5113 = vrcp.f32 %v3682_v13 }
 0xeda   :  { %5115 = vtanh.f32 %v6763_v54 }
 0xee1   :  { %v5112_v23 = vpop.eup %5111 }
 0xee2   :  { %v5114_v61 = vpop.eup %5113  ;;  %v3695_v51 = vmul.f32 %v5112_v23, %v5110_v22 }
 0xee4   :  { %v5116_v14 = vpop.eup %5115 }
 0xee5   :  { %v3696_v57 = vmul.f32 %v5116_v14, %v5114_v61 }
 0xee7   :  { %v3705_v18 = vpack.c.bf16 %v3696_v57, %v3695_v51 }
 0xee9   :  { %3739 = vmatmul.mubr.bf16.vlgmr.msra.gmra.mrb[56].mxu0 %v3705_v18  ;;  %3782 = vmatmul.mubr.bf16.vlgmr.msra.gmra.mrb[56].mxu1 %v3705_v18 }
 0xeea   :  { %3858 = vmatpush1.bf16.msra.mxu0 %v6604_v8  ;;  %3901 = vmatpush1.bf16.msra.mxu1 %v6607_v43 }
 0xeeb   :  { %3859 = vmatprep.subr.bf16.mxu0 %v6610_v50  ;;  %3902 = vmatprep.subr.bf16.mxu1 %v6613_v55 }
 0xeec   :  { %3889 = vmatprep.mubr.bf16.mxu0 %v5320_v0  ;;  %3932 = vmatprep.mubr.bf16.mxu1 %v5320_v0 }
 0xeee   :  { %3860 = vmatpush1.bf16.msra.mxu0 %v6618_v36  ;;  %3903 = vmatpush1.bf16.msra.mxu1 %v6621_v63 }
 0xeef   :  { %3861 = vmatprep.subr.bf16.mxu0 %v6624_v59  ;;  %3904 = vmatprep.subr.bf16.mxu1 %v6627_v38 }
 0xef2   :  { %3862 = vmatpush1.bf16.msra.mxu0 %v6630_v35  ;;  %3905 = vmatpush1.bf16.msra.mxu1 %v6633_v9 }
 0xef3   :  { %3863 = vmatprep.subr.bf16.mxu0 %v6636_v7  ;;  %3906 = vmatprep.subr.bf16.mxu1 %v6639_v33 }
 0xef6   :  { %3864 = vmatpush1.bf16.msra.mxu0 %v6642_v34  ;;  %3907 = vmatpush1.bf16.msra.mxu1 %v6645_v37 }
 0xef7   :  { %3865 = vmatprep.subr.bf16.mxu0 %v6648_v27  ;;  %3908 = vmatprep.subr.bf16.mxu1 %v6651_v3 }
 0xefa   :  { %3866 = vmatpush1.bf16.msra.mxu0 %v6654_v24  ;;  %3909 = vmatpush1.bf16.msra.mxu1 %v6657_v58 }
 0xefb   :  { %3867 = vmatprep.subr.bf16.mxu0 %v6660_v26  ;;  %3910 = vmatprep.subr.bf16.mxu1 %v6663_v4 }
 0xefe   :  { %3868 = vmatpush1.bf16.msra.mxu0 %v6666_v30  ;;  %3911 = vmatpush1.bf16.msra.mxu1 %v6669_v29 }
 0xeff   :  { %3869 = vmatprep.subr.bf16.mxu0 %v6672_v49  ;;  %3912 = vmatprep.subr.bf16.mxu1 %v6675_v31 }
 0xf02   :  { %3870 = vmatpush1.bf16.msra.mxu0 %v6678_v47  ;;  %3913 = vmatpush1.bf16.msra.mxu1 %v6681_v1 }
 0xf03   :  { %3871 = vmatprep.subr.bf16.mxu0 %v6684_v56  ;;  %3914 = vmatprep.subr.bf16.mxu1 %v6687_v62 }
 0xf06   :  { %3872 = vmatpush1.bf16.msra.mxu0 %v6690_v11  ;;  %3915 = vmatpush1.bf16.msra.mxu1 %v6693_v12 }
 0xfbc   :  { %v3740_v0 = vpop.f32.mrb[56].mxu0  ;;  %v3783_v8 = vpop.f32.mrb[56].mxu1 }
 0xfbd   :  { %v4331_v43 = vadd.f32 %v3740_v0, %v6424_v41  ;;  %v3742_v50 = vpop.f32.mrb[57].mxu0  ;;  %v3785_v55 = vpop.f32.mrb[57].mxu1  ;;  %v4363_v24 = vadd.f32 %v3783_v8, %v6440_v46 }
 0xfbe   :  { %v4332_v36 = vadd.f32 %v3742_v50, %v6428_v45  ;;  %v3744_v63 = vpop.f32.mrb[58].mxu0  ;;  %v3787_v59 = vpop.f32.mrb[58].mxu1  ;;  %v4364_v3 = vadd.f32 %v3785_v55, %v6435_v10 }
 0xfbf   :  { %v4227_v38 = vmul.f32 -1.442695, %v4331_v43  ;;  %v4333_v35 = vadd.f32 %v3744_v63, %v6424_v41  ;;  %v3746_v9 = vpop.f32.mrb[59].mxu0  ;;  %v3789_v7 = vpop.f32.mrb[59].mxu1  ;;  %v4365_v4 = vadd.f32 %v3787_v59, %v6440_v46 }
 0xfc0   :  { %v4229_v33 = vmul.f32 -1.442695, %v4332_v36  ;;  %v4334_v34 = vadd.f32 %v3746_v9, %v6428_v45  ;;  %v4231_v58 = vmul.f32 -1.442695, %v4364_v3  ;;  %v4366_v26 = vadd.f32 %v3789_v7, %v6435_v10 }
 0xfc1   :  { %5117 = vpow2.f32 %v4227_v38  ;;  %v4228_v37 = vmul.f32 -1.442695, %v4333_v35 }
 0xfc2   :  { %5119 = vpow2.f32 %v4229_v33  ;;  %v4230_v27 = vmul.f32 -1.442695, %v4334_v34  ;;  %v4232_v31 = vmul.f32 -1.442695, %v4366_v26 }
 0xfc3   :  { %5121 = vpow2.f32 %v4228_v37 }
 0xfc4   :  { %5123 = vpow2.f32 %v4230_v27 }
 0xfc5   :  { %5125 = vtanh.f32 %v4363_v24 }
 0xfc6   :  { %5127 = vpow2.f32 %v4231_v58 }
 0xfc7   :  { %5129 = vtanh.f32 %v4365_v4 }
 0xfcb   :  { %v5118_v30 = vpop.eup %5117 }
 0xfcc   :  { %v5120_v29 = vpop.eup %5119  ;;  %v3806_v49 = vadd.f32 1.0, %v5118_v30 }
 0xfcd   :  { %v3818_v47 = vadd.f32 1.0, %v5120_v29  ;;  %v5122_v1 = vpop.eup %5121 }
 0xfce   :  { %5131 = vrcp.f32 %v3806_v49  ;;  %v3807_v56 = vadd.f32 1.0, %v5122_v1  ;;  %v5124_v62 = vpop.eup %5123 }
 0xfcf   :  { %5133 = vrcp.f32 %v3818_v47  ;;  %v3819_v11 = vadd.f32 1.0, %v5124_v62  ;;  %v5126_v12 = vpop.eup %5125 }
 0xfd0   :  { %5135 = vpow2.f32 %v4232_v31  ;;  %v5128_v5 = vpop.eup %5127 }
 0xfd1   :  { %5137 = vrcp.f32 %v3807_v56  ;;  %v5130_v53 = vpop.eup %5129  ;;  %v3832_v16 = vadd.f32 1.0, %v5128_v5 }
 0xfd2   :  { %5139 = vrcp.f32 %v3819_v11 }
 0xfd3   :  { %5141 = vrcp.f32 %v3832_v16 }
 0xfd8   :  { %v5132_v39 = vpop.eup %5131 }
 0xfd9   :  { %v5134_v32 = vpop.eup %5133  ;;  %v3840_v28 = vmul.f32 %v5132_v39, %v5126_v12 }
 0xfda   :  { %v5136_v40 = vpop.eup %5135  ;;  %v3838_v6 = vmul.f32 %v5134_v32, %v6759_v25 }
 0xfdb   :  { %v5138_v48 = vpop.eup %5137  ;;  %v3833_v19 = vadd.f32 1.0, %v5136_v40 }
 0xfdc   :  { %v6807_v15 = vadd.f32 %v3840_v28, %v3838_v6  ;;  %v3841_v42 = vmul.f32 %v5138_v48, %v5130_v53  ;;  %v5140_v17 = vpop.eup %5139 }
 0xfdd   :  { %v3839_v20 = vmul.f32 %v5140_v17, %v6763_v54  ;;  %v5142_v44 = vpop.eup %5141 }
 0xfde   :  { %5143 = vtanh.f32 %v6807_v15 }
 0xfdf   :  { %v6811_v60 = vadd.f32 %v3841_v42, %v3839_v20  ;;  %5145 = vrcp.f32 %v3833_v19 }
 0xfe1   :  { %5147 = vtanh.f32 %v6811_v60 }
 0xfe8   :  { %v5144_v21 = vpop.eup %5143 }
 0xfe9   :  { %v5146_v25 = vpop.eup %5145  ;;  %v3846_v13 = vmul.f32 %v5144_v21, %v5142_v44 }
 0xfeb   :  { %v5148_v52 = vpop.eup %5147 }
 0xfec   :  { %v3847_v2 = vmul.f32 %v5148_v52, %v5146_v25 }
 0xfee   :  { %v3856_v22 = vpack.c.bf16 %v3847_v2, %v3846_v13 }
 0xff0   :  { %3890 = vmatmul.mubr.bf16.vlgmr.msra.gmra.mrb[60].mxu0 %v3856_v22  ;;  %3933 = vmatmul.mubr.bf16.vlgmr.msra.gmra.mrb[60].mxu1 %v3856_v22 }
0x10c3   :  { %v3891_v23 = vpop.f32.mrb[60].mxu0  ;;  %v3934_v61 = vpop.f32.mrb[60].mxu1 }
0x10c4   :  { %v4335_v54 = vadd.f32 %v3891_v23, %v6424_v41  ;;  %v3893_v14 = vpop.f32.mrb[61].mxu0  ;;  %v3936_v51 = vpop.f32.mrb[61].mxu1  ;;  %v4367_v9 = vadd.f32 %v3934_v61, %v6440_v46 }
0x10c5   :  { %v4336_v57 = vadd.f32 %v3893_v14, %v6428_v45  ;;  %v3895_v18 = vpop.f32.mrb[62].mxu0  ;;  %v3938_v0 = vpop.f32.mrb[62].mxu1  ;;  %v4368_v35 = vadd.f32 %v3936_v51, %v6435_v10 }
0x10c6   :  { %v4233_v8 = vmul.f32 -1.442695, %v4335_v54  ;;  %v4337_v43 = vadd.f32 %v3895_v18, %v6424_v41  ;;  %v3897_v50 = vpop.f32.mrb[63].mxu0  ;;  %v3940_v55 = vpop.f32.mrb[63].mxu1  ;;  %v4369_v41 = vadd.f32 %v3938_v0, %v6440_v46 }
0x10c7   :  { %v4235_v36 = vmul.f32 -1.442695, %v4336_v57  ;;  %v4338_v63 = vadd.f32 %v3897_v50, %v6428_v45  ;;  %v4237_v7 = vmul.f32 -1.442695, %v4368_v35  ;;  %v4370_v33 = vadd.f32 %v3940_v55, %v6435_v10 }
0x10c8   :  { %5149 = vpow2.f32 %v4233_v8  ;;  %v4234_v59 = vmul.f32 -1.442695, %v4337_v43 }
0x10c9   :  { %5151 = vpow2.f32 %v4235_v36  ;;  %v4236_v38 = vmul.f32 -1.442695, %v4338_v63  ;;  %v4238_v45 = vmul.f32 -1.442695, %v4370_v33 }
0x10ca   :  { %5153 = vpow2.f32 %v4234_v59 }
0x10cb   :  { %5155 = vpow2.f32 %v4236_v38 }
0x10cc   :  { %5157 = vtanh.f32 %v4367_v9 }
0x10cd   :  { %5159 = vpow2.f32 %v4237_v7 }
0x10ce   :  { %5161 = vtanh.f32 %v4369_v41 }
0x10d2   :  { %v5150_v34 = vpop.eup %5149 }
0x10d3   :  { %v5152_v37 = vpop.eup %5151  ;;  %v3957_v27 = vadd.f32 1.0, %v5150_v34 }
0x10d4   :  { %v3969_v3 = vadd.f32 1.0, %v5152_v37  ;;  %v5154_v24 = vpop.eup %5153 }
0x10d5   :  { %5163 = vrcp.f32 %v3957_v27  ;;  %v3958_v58 = vadd.f32 1.0, %v5154_v24  ;;  %v5156_v26 = vpop.eup %5155 }
0x10d6   :  { %5165 = vrcp.f32 %v3969_v3  ;;  %v3970_v4 = vadd.f32 1.0, %v5156_v26  ;;  %v5158_v10 = vpop.eup %5157 }
0x10d7   :  { %5167 = vpow2.f32 %v4238_v45  ;;  %v5160_v30 = vpop.eup %5159 }
0x10d8   :  { %5169 = vrcp.f32 %v3958_v58  ;;  %v5162_v46 = vpop.eup %5161  ;;  %v3983_v47 = vadd.f32 1.0, %v5160_v30 }
0x10d9   :  { %5171 = vrcp.f32 %v3970_v4 }
0x10da   :  { %5173 = vrcp.f32 %v3983_v47 }
0x10df   :  { %v5164_v29 = vpop.eup %5163 }
0x10e0   :  { %v5166_v49 = vpop.eup %5165  ;;  %v3991_v31 = vmul.f32 %v5164_v29, %v5158_v10 }
0x10e1   :  { %v5168_v1 = vpop.eup %5167  ;;  %v3989_v56 = vmul.f32 %v5166_v49, %v6807_v15 }
0x10e2   :  { %v5170_v62 = vpop.eup %5169  ;;  %v3984_v53 = vadd.f32 1.0, %v5168_v1 }
0x10e3   :  { %v3993_v11 = vadd.f32 %v3991_v31, %v3989_v56  ;;  %v3992_v12 = vmul.f32 %v5170_v62, %v5162_v46  ;;  %v5172_v5 = vpop.eup %5171 }
0x10e4   :  { %v3990_v39 = vmul.f32 %v5172_v5, %v6811_v60  ;;  %v5174_v28 = vpop.eup %5173 }
0x10e5   :  { %5175 = vtanh.f32 %v3993_v11  ;;  %4241 = vst [vmem:[%s6844_s8 + $0x10] sm:$0xff] %v3993_v11 }
0x10e6   :  { %v3994_v32 = vadd.f32 %v3992_v12, %v3990_v39  ;;  %5177 = vrcp.f32 %v3984_v53 }
0x10e8   :  { %5179 = vtanh.f32 %v3994_v32  ;;  %4242 = vst [vmem:[%s6844_s8 + $0x18] sm:$0xff] %v3994_v32 }
0x10ef   :  { %v5176_v40 = vpop.eup %5175 }
0x10f0   :  { %v3997_v6 = vmul.f32 %v5176_v40, %v5174_v28  ;;  %v5178_v48 = vpop.eup %5177 }
0x10f2   :  { %4239 = vst [vmem:[%s6843_s7 + $0x10] sm:$0xff] %v3997_v6  ;;  %v5180_v16 = vpop.eup %5179 }
0x10f3   :  { %v3998_v15 = vmul.f32 %v5180_v16, %v5178_v48 }
0x10f5   :  { %4240 = vst [vmem:[%s6843_s7 + $0x18] sm:$0xff] %v3998_v15 }
0x10f6   :  { %4013 = vsyncpa [#allocation5], 1 }
0x10f7   :  { %4014 = vsyncpa [#allocation7], 1 }

</bundles_post_ra>
